<compile_context>
chip_gen: v5e
topology: v5e:2x2
jax: 0.10.0
libtpu: 0.0.40
codegen_flags: <defaults>
</compile_context>

<pallas_src>
import functools

import jax
import jax.numpy as jnp
from jax.experimental import pallas as pl
from jax.experimental.pallas import tpu as pltpu

EPS = 1e-5     # nn.BatchNorm1d default eps
LANES = 128    # TPU vreg lane width


# ---------------------------------------------------------------------------
# Pass 1: global BatchNorm statistics (sum / sum-of-squares), tiled over E.
# ---------------------------------------------------------------------------
def _bn_stats_kernel(x12_ref, wblk_ref, stats_ref, *, edge_tile, n_edges):
    i = pl.program_id(0)

    @pl.when(i == 0)
    def _init():
        stats_ref[...] = jnp.zeros_like(stats_ref)

    # [TE, 2*in] @ block-diag([W, W]) -> [x1@W | x2@W]   (bias dropped: it
    # cancels exactly under training-mode BatchNorm)
    z = jnp.dot(x12_ref[...], wblk_ref[...], preferred_element_type=jnp.float32)

    # Mask rows belonging to the zero padding of E so the batch statistics stay
    # global and exact while tiling (train-mode BN spans ALL edges).
    row_ids = i * edge_tile + jax.lax.broadcasted_iota(jnp.int32, z.shape, 0)
    z = jnp.where(row_ids < n_edges, z, 0.0)

    stats_ref[...] += jnp.concatenate(
        [jnp.sum(z, axis=0, keepdims=True),        # per-feature sum
         jnp.sum(z * z, axis=0, keepdims=True)],   # per-feature sum of squares
        axis=0)


# ---------------------------------------------------------------------------
# Pass 2: fused linear + folded BatchNorm + flattened DEDICOM decoder.
# ---------------------------------------------------------------------------
def _decoder_kernel(x12_ref, w_row_ref, w_col_ref, sh_row_ref, sh_col_ref,
                    wflat_ref, out_ref):
    x12 = x12_ref[...]                                            # [TE, 2*in]

    # row_e[a, j*H+k] = BN(lin(x1))[a, j]   (BN scale folded into the weights,
    # col_t[a, j*H+k] = BN(lin(x2))[a, k]    linear bias cancelled by BN)
    row_e = jnp.dot(x12, w_row_ref[...],
                    preferred_element_type=jnp.float32) + sh_row_ref[...]
    col_t = jnp.dot(x12, w_col_ref[...],
                    preferred_element_type=jnp.float32) + sh_col_ref[...]

    # Flattened DEDICOM: one bf16 MXU matmul with K = H*H, 128-lane output.
    t = (row_e * col_t).astype(jnp.bfloat16)                      # [TE, H*H]
    scores = jnp.dot(t, wflat_ref[...], preferred_element_type=jnp.float32)
    out_ref[...] = jax.nn.sigmoid(scores)                         # [TE, OUT_P]


# ---------------------------------------------------------------------------
# Wrapper
# ---------------------------------------------------------------------------
def ddi_dedicom_forward(h, target_edge_index, params, *, edge_tile=512):
    """DDI_dedicom forward. Returns sigmoid scores of shape [E, out_dim]."""
    w_t = params["w_lin_t"].astype(jnp.float32)               # [in_dim, H] (x @ w_t)
    gamma = params["gamma"].reshape(-1).astype(jnp.float32)   # [H]
    beta = params["beta"].reshape(-1).astype(jnp.float32)     # [H]
    r_mat = params["R"].astype(jnp.float32)                   # [H, H]
    d_mat = params["D"].astype(jnp.float32)                   # [out_dim, H]

    in_dim, hidden = w_t.shape
    out_dim = d_mat.shape[0]
    flat_dim = hidden * hidden                                 # flattened (j, k)
    out_p = ((out_dim + LANES - 1) // LANES) * LANES           # lane-dense output

    # Gather both endpoints and pack them into a single [E, 2*in_dim] stream.
    # TODO(synk): gather rows of `h` inside the kernel (scalar-prefetched edge
    # index + per-tile DMA) to avoid the x12 HBM round trip for very large E.
    x1 = jnp.take(h, target_edge_index[0], axis=0)
    x2 = jnp.take(h, target_edge_index[1], axis=0)
    x12 = jnp.concatenate([x1, x2], axis=1).astype(jnp.float32)

    n_edges = x12.shape[0]
    te = max(8, (edge_tile // 8) * 8)                          # f32 sublane multiple
    num_tiles = pl.cdiv(n_edges, te)
    e_pad = num_tiles * te
    x12 = jnp.pad(x12, ((0, e_pad - n_edges), (0, 0)))

    # ---------------- pass 1: global BN statistics --------------------------
    wblk = jnp.zeros((2 * in_dim, 2 * hidden), jnp.float32)
    wblk = wblk.at[:in_dim, :hidden].set(w_t).at[in_dim:, hidden:].set(w_t)

    stats = pl.pallas_call(
        functools.partial(_bn_stats_kernel, edge_tile=te, n_edges=n_edges),
        out_shape=jax.ShapeDtypeStruct((2, 2 * hidden), jnp.float32),
        grid=(num_tiles,),
        in_specs=[
            pl.BlockSpec((te, 2 * in_dim), lambda i: (i, 0)),          # x12 tile
            pl.BlockSpec((2 * in_dim, 2 * hidden), lambda i: (0, 0)),  # resident W
        ],
        out_specs=pl.BlockSpec((2, 2 * hidden), lambda i: (0, 0)),     # accumulator
        compiler_params=pltpu.CompilerParams(
            dimension_semantics=("arbitrary",)),
    )(x12, wblk)

    # Tiny XLA glue: fold train-mode BN into a per-feature scale / shift.
    mean = stats[0] / n_edges
    var = jnp.maximum(stats[1] / n_edges - mean * mean, 0.0)   # biased variance
    gamma2 = jnp.concatenate([gamma, gamma])
    beta2 = jnp.concatenate([beta, beta])
    scale = gamma2 * jax.lax.rsqrt(var + EPS)
    shift = beta2 - mean * scale          # linear bias cancels exactly under BN
    scale_r, scale_c = scale[:hidden], scale[hidden:]
    shift_r, shift_c = shift[:hidden], shift[hidden:]

    # Expanded, scale-folded weights for the flattened decoder:
    #   w_row[:, j*H+k] produces row[a, j] from x1 ; w_col[:, j*H+k] produces
    #   col[a, k] from x2 (block structure selects x1 / x2 out of x12).
    w_row = jnp.zeros((2 * in_dim, flat_dim), jnp.float32)
    w_row = w_row.at[:in_dim, :].set(
        jnp.repeat(w_t * scale_r[None, :], hidden, axis=1))
    w_col = jnp.zeros((2 * in_dim, flat_dim), jnp.float32)
    w_col = w_col.at[in_dim:, :].set(
        jnp.tile(w_t * scale_c[None, :], (1, hidden)))
    sh_row = jnp.repeat(shift_r, hidden)[None, :]               # [1, H*H]
    sh_col = jnp.tile(shift_c, hidden)[None, :]                 # [1, H*H]

    # Flattened DEDICOM weight, zero-padded to 128 output lanes, bf16 operand.
    wflat = (d_mat[:, :, None] * r_mat[None, :, :] * d_mat[:, None, :]
             ).reshape(out_dim, flat_dim)                       # [out_dim, H*H]
    wflat_p = jnp.zeros((out_p, flat_dim), jnp.float32).at[:out_dim, :].set(wflat)
    wflat_p = wflat_p.T.astype(jnp.bfloat16)                    # [H*H, OUT_P]

    # ---------------- pass 2: decoder, tiled + parallel over E --------------
    out_padded = pl.pallas_call(
        _decoder_kernel,
        out_shape=jax.ShapeDtypeStruct((e_pad, out_p), jnp.float32),
        grid=(num_tiles,),
        in_specs=[
            pl.BlockSpec((te, 2 * in_dim), lambda i: (i, 0)),   # x12 tile
            pl.BlockSpec((2 * in_dim, flat_dim), lambda i: (0, 0)),
            pl.BlockSpec((2 * in_dim, flat_dim), lambda i: (0, 0)),
            pl.BlockSpec((1, flat_dim), lambda i: (0, 0)),
            pl.BlockSpec((1, flat_dim), lambda i: (0, 0)),
            pl.BlockSpec((flat_dim, out_p), lambda i: (0, 0)),
        ],
        out_specs=pl.BlockSpec((te, out_p), lambda i: (i, 0)),
        compiler_params=pltpu.CompilerParams(
            dimension_semantics=("parallel",)),
    )(x12, w_row, w_col, sh_row, sh_col, wflat_p)

    return out_padded[:n_edges, :out_dim]


# ---------------------------------------------------------------------------
# Pure-JAX reference mirroring the PyTorch module (for the correctness check).
# ---------------------------------------------------------------------------
def _reference(h, target_edge_index, params, *, match_kernel_precision):
    hp = jax.lax.Precision.HIGHEST
    x1 = jnp.take(h, target_edge_index[0], axis=0)
    x2 = jnp.take(h, target_edge_index[1], axis=0)
    z1 = jnp.dot(x1, params["w_lin_t"], precision=hp) + params["b_lin"]
    z2 = jnp.dot(x2, params["w_lin_t"], precision=hp) + params["b_lin"]

    def bn(z):
        m = jnp.mean(z, axis=0, keepdims=True)
        v = jnp.var(z, axis=0, keepdims=True)          # biased (train-mode BN)
        return params["gamma"] * (z - m) * jax.lax.rsqrt(v + EPS) + params["beta"]

    row, col = bn(z1), bn(z2)
    d_mat, r_mat = params["D"], params["R"]
    if match_kernel_precision:
        e, hidden = row.shape
        t = (row[:, :, None] * col[:, None, :]).reshape(e, hidden * hidden)
        wflat = (d_mat[:, :, None] * r_mat[None, :, :] * d_mat[:, None, :]
                 ).reshape(d_mat.shape[0], hidden * hidden)
        scores = jnp.dot(t.astype(jnp.bfloat16), wflat.astype(jnp.bfloat16).T,
                         preferred_element_type=jnp.float32)
    else:
        m3 = jnp.einsum("bj,jk,bk->bjk", d_mat, r_mat, d_mat, precision=hp)
        scores = jnp.einsum("aj,bjk,ak->ab", row, m3, col, precision=hp)
    return jax.nn.sigmoid(scores)


if __name__ == "__main__":
    # Small, deterministic setup consistent with the module's forward.
    N = 50          # number of nodes
    in_dim = 16
    hidden = 32     # args.hidden_dim
    out_dim = 8
    E = 300         # number of target edges (not a tile multiple -> exercises masking)

    key = jax.random.PRNGKey(0)
    k_w, k_b, k_g, k_be, k_r, k_d, k_h, k_e = jax.random.split(key, 8)

    bound = 1.0 / (in_dim ** 0.5)   # PyTorch nn.Linear default init range
    w_lin = jax.random.uniform(k_w, (hidden, in_dim), jnp.float32,
                               minval=-bound, maxval=bound)
    params = {
        "w_lin_t": w_lin.T,                                        # [in_dim, hidden]
        "b_lin": jax.random.uniform(k_b, (1, hidden), jnp.float32,
                                    minval=-bound, maxval=bound),
        # Freshly-initialized BN would be gamma=1 / beta=0; use non-trivial values
        # so the folded scale/shift path is actually exercised.
        "gamma": jax.random.uniform(k_g, (1, hidden), jnp.float32,
                                    minval=0.5, maxval=1.5),
        "beta": 0.1 * jax.random.normal(k_be, (1, hidden), jnp.float32),
        "R": jax.random.uniform(k_r, (hidden, hidden), jnp.float32),   # U(0,1)
        "D": jax.random.uniform(k_d, (out_dim, hidden), jnp.float32),  # U(0,1)
    }

    h = jax.random.normal(k_h, (N, in_dim), jnp.float32)           # data.x
    target_edge_index = jax.random.randint(k_e, (2, E), 0, N)      # data.target_edge_index

    fwd = jax.jit(ddi_dedicom_forward, static_argnames=("edge_tile",))
    out = fwd(h, target_edge_index, params, edge_tile=128)   # 3 E-tiles + masked tail
    out = jax.block_until_ready(out)

    assert out.shape == (E, out_dim)
    assert bool(jnp.all(jnp.isfinite(out)))

    ref_m = _reference(h, target_edge_index, params, match_kernel_precision=True)
    ref_f = _reference(h, target_edge_index, params, match_kernel_precision=False)
    err_m = float(jnp.max(jnp.abs(out - ref_m)))
    err_f = float(jnp.max(jnp.abs(out - ref_f)))
    assert err_m < 2e-2, f"mismatch vs matched-precision reference: {err_m}"
    assert err_f < 5e-2, f"mismatch vs f32 reference: {err_f}"
    print("KERNEL_OK")
</pallas_src>

<mosaic_0001>
module attributes {stable_mosaic.version = 11 : i64} {
  func.func @_bn_stats_kernel(%arg0: i32, %arg1: memref<128x32xf32, #tpu.memory_space<vmem>>, %arg2: memref<32x64xf32, #tpu.memory_space<vmem>>, %arg3: memref<2x64xf32, #tpu.memory_space<vmem>>) attributes {dimension_semantics = [#tpu.dimension_semantics<arbitrary>], iteration_bounds = array<i64: 3>, scalar_prefetch = 0 : i64, scratch_operands = 0 : i64, tpu.core_type = #tpu.core_type<tc>, window_params = [{transform_indices = @transform_0, window_bounds = array<i64: 128, 32>}, {pipeline_mode = #tpu.pipeline_mode<synchronous>, transform_indices = @transform_1, window_bounds = array<i64: 32, 64>}, {pipeline_mode = #tpu.pipeline_mode<synchronous>, transform_indices = @transform_2, window_bounds = array<i64: 2, 64>}]} {
    %c0_i32 = arith.constant 0 : i32
    %0 = arith.cmpi eq, %arg0, %c0_i32 : i32
    %1 = arith.extui %0 : i1 to i32
    %c0_i32_0 = arith.constant 0 : i32
    %2 = arith.cmpi ne, %1, %c0_i32_0 : i32
    scf.if %2 {
      %cst_11 = arith.constant 0.000000e+00 : f32
      %23 = vector.broadcast %cst_11 : f32 to vector<2x64xf32>
      %c0_12 = arith.constant 0 : index
      %c0_13 = arith.constant 0 : index
      %24 = vector.load %arg3[%c0_12, %c0_13] : memref<2x64xf32, #tpu.memory_space<vmem>>, vector<2x64xf32>
      tpu.vector_store %arg3[%c0_12, %c0_13], %23 {strides = array<i32>} : memref<2x64xf32, #tpu.memory_space<vmem>>, vector<2x64xf32>,
    } else {
    }
    %c0 = arith.constant 0 : index
    %c0_1 = arith.constant 0 : index
    %3 = vector.load %arg1[%c0, %c0_1] : memref<128x32xf32, #tpu.memory_space<vmem>>, vector<128x32xf32>
    %c0_2 = arith.constant 0 : index
    %c0_3 = arith.constant 0 : index
    %4 = vector.load %arg2[%c0_2, %c0_3] : memref<32x64xf32, #tpu.memory_space<vmem>>, vector<32x64xf32>
    %cst = arith.constant dense<0.000000e+00> : vector<128x64xf32>
    %5 = tpu.matmul %3, %4, %cst {dimension_numbers = #tpu.dot_dimension_numbers<[1], [0], [0], [1], [0, 0, 1, 1], [], []>} : vector<128x32xf32>, vector<32x64xf32>, vector<128x64xf32> -> vector<128x64xf32>
    %c128_i32 = arith.constant 128 : i32
    %6 = arith.muli %arg0, %c128_i32 : i32
    %7 = tpu.iota {dimensions = array<i32: 0>} : vector<128x64xi32>
    %8 = vector.broadcast %6 : i32 to vector<128x64xi32>
    %9 = arith.addi %8, %7 : vector<128x64xi32>
    %c300_i32 = arith.constant 300 : i32
    %10 = vector.broadcast %c300_i32 : i32 to vector<128x64xi32>
    %11 = arith.cmpi slt, %9, %10 : vector<128x64xi32>
    %cst_4 = arith.constant 0.000000e+00 : f32
    %12 = vector.broadcast %cst_4 : f32 to vector<128x64xf32>
    %13 = arith.select %11, %5, %12 : vector<128x64xi1>, vector<128x64xf32>
    %c0_5 = arith.constant 0 : index
    %c0_6 = arith.constant 0 : index
    %14 = vector.load %arg3[%c0_5, %c0_6] : memref<2x64xf32, #tpu.memory_space<vmem>>, vector<2x64xf32>
    %cst_7 = arith.constant dense<0.000000e+00> : vector<64xf32>
    %15 = vector.multi_reduction <add>, %13, %cst_7 [0] : vector<128x64xf32> to vector<64xf32>
    %16 = vector.shape_cast %15 : vector<64xf32> to vector<1x64xf32>
    %17 = arith.mulf %13, %13 : vector<128x64xf32>
    %cst_8 = arith.constant dense<0.000000e+00> : vector<64xf32>
    %18 = vector.multi_reduction <add>, %17, %cst_8 [0] : vector<128x64xf32> to vector<64xf32>
    %19 = vector.shape_cast %18 : vector<64xf32> to vector<1x64xf32>
    %20 = tpu.concatenate %16, %19 in 0 : vector<1x64xf32>, vector<1x64xf32> -> vector<2x64xf32>
    %21 = arith.addf %14, %20 : vector<2x64xf32>
    %c0_9 = arith.constant 0 : index
    %c0_10 = arith.constant 0 : index
    %22 = vector.load %arg3[%c0_9, %c0_10] : memref<2x64xf32, #tpu.memory_space<vmem>>, vector<2x64xf32>
    tpu.vector_store %arg3[%c0_9, %c0_10], %21 {strides = array<i32>} : memref<2x64xf32, #tpu.memory_space<vmem>>, vector<2x64xf32>,
    return
  }
  func.func @transform_0(%arg0: i32) -> (i32, i32) {
    %c0_i32 = arith.constant 0 : i32
    %c0_i32_0 = arith.constant 0 : i32
    return %arg0, %c0_i32 : i32, i32
  }
  func.func @transform_1(%arg0: i32) -> (i32, i32) {
    %c0_i32 = arith.constant 0 : i32
    %c0_i32_0 = arith.constant 0 : i32
    %c0_i32_1 = arith.constant 0 : i32
    return %c0_i32, %c0_i32_0 : i32, i32
  }
  func.func @transform_2(%arg0: i32) -> (i32, i32) {
    %c0_i32 = arith.constant 0 : i32
    %c0_i32_0 = arith.constant 0 : i32
    %c0_i32_1 = arith.constant 0 : i32
    return %c0_i32, %c0_i32_0 : i32, i32
  }
}

module attributes {stable_mosaic.version = 11 : i64} {
  func.func @_decoder_kernel(%arg0: i32, %arg1: memref<128x32xf32, #tpu.memory_space<vmem>>, %arg2: memref<32x1024xf32, #tpu.memory_space<vmem>>, %arg3: memref<32x1024xf32, #tpu.memory_space<vmem>>, %arg4: memref<1x1024xf32, #tpu.memory_space<vmem>>, %arg5: memref<1x1024xf32, #tpu.memory_space<vmem>>, %arg6: memref<1024x128xbf16, #tpu.memory_space<vmem>>, %arg7: memref<128x128xf32, #tpu.memory_space<vmem>>) attributes {dimension_semantics = [#tpu.dimension_semantics<parallel>], iteration_bounds = array<i64: 3>, scalar_prefetch = 0 : i64, scratch_operands = 0 : i64, tpu.core_type = #tpu.core_type<tc>, window_params = [{transform_indices = @transform_0, window_bounds = array<i64: 128, 32>}, {pipeline_mode = #tpu.pipeline_mode<synchronous>, transform_indices = @transform_1, window_bounds = array<i64: 32, 1024>}, {pipeline_mode = #tpu.pipeline_mode<synchronous>, transform_indices = @transform_2, window_bounds = array<i64: 32, 1024>}, {pipeline_mode = #tpu.pipeline_mode<synchronous>, transform_indices = @transform_3, window_bounds = array<i64: 1, 1024>}, {pipeline_mode = #tpu.pipeline_mode<synchronous>, transform_indices = @transform_4, window_bounds = array<i64: 1, 1024>}, {pipeline_mode = #tpu.pipeline_mode<synchronous>, transform_indices = @transform_5, window_bounds = array<i64: 1024, 128>}, {transform_indices = @transform_6, window_bounds = array<i64: 128, 128>}]} {
    %c0 = arith.constant 0 : index
    %c0_0 = arith.constant 0 : index
    %0 = vector.load %arg1[%c0, %c0_0] : memref<128x32xf32, #tpu.memory_space<vmem>>, vector<128x32xf32>
    %c0_1 = arith.constant 0 : index
    %c0_2 = arith.constant 0 : index
    %1 = vector.load %arg2[%c0_1, %c0_2] : memref<32x1024xf32, #tpu.memory_space<vmem>>, vector<32x1024xf32>
    %cst = arith.constant dense<0.000000e+00> : vector<128x1024xf32>
    %2 = tpu.matmul %0, %1, %cst {dimension_numbers = #tpu.dot_dimension_numbers<[1], [0], [0], [1], [0, 0, 1, 1], [], []>} : vector<128x32xf32>, vector<32x1024xf32>, vector<128x1024xf32> -> vector<128x1024xf32>
    %c0_3 = arith.constant 0 : index
    %c0_4 = arith.constant 0 : index
    %3 = vector.load %arg4[%c0_3, %c0_4] : memref<1x1024xf32, #tpu.memory_space<vmem>>, vector<1x1024xf32>
    %4 = vector.broadcast %3 : vector<1x1024xf32> to vector<128x1024xf32>
    %5 = arith.addf %2, %4 : vector<128x1024xf32>
    %c0_5 = arith.constant 0 : index
    %c0_6 = arith.constant 0 : index
    %6 = vector.load %arg3[%c0_5, %c0_6] : memref<32x1024xf32, #tpu.memory_space<vmem>>, vector<32x1024xf32>
    %cst_7 = arith.constant dense<0.000000e+00> : vector<128x1024xf32>
    %7 = tpu.matmul %0, %6, %cst_7 {dimension_numbers = #tpu.dot_dimension_numbers<[1], [0], [0], [1], [0, 0, 1, 1], [], []>} : vector<128x32xf32>, vector<32x1024xf32>, vector<128x1024xf32> -> vector<128x1024xf32>
    %c0_8 = arith.constant 0 : index
    %c0_9 = arith.constant 0 : index
    %8 = vector.load %arg5[%c0_8, %c0_9] : memref<1x1024xf32, #tpu.memory_space<vmem>>, vector<1x1024xf32>
    %9 = vector.broadcast %8 : vector<1x1024xf32> to vector<128x1024xf32>
    %10 = arith.addf %7, %9 : vector<128x1024xf32>
    %11 = arith.mulf %5, %10 : vector<128x1024xf32>
    %12 = arith.truncf %11 : vector<128x1024xf32> to vector<128x1024xbf16>
    %c0_10 = arith.constant 0 : index
    %c0_11 = arith.constant 0 : index
    %13 = vector.load %arg6[%c0_10, %c0_11] : memref<1024x128xbf16, #tpu.memory_space<vmem>>, vector<1024x128xbf16>
    %cst_12 = arith.constant dense<0.000000e+00> : vector<128x128xf32>
    %14 = tpu.matmul %12, %13, %cst_12 {dimension_numbers = #tpu.dot_dimension_numbers<[1], [0], [0], [1], [0, 0, 1, 1], [], []>} : vector<128x1024xbf16>, vector<1024x128xbf16>, vector<128x128xf32> -> vector<128x128xf32>
    %15 = arith.negf %14 : vector<128x128xf32>
    %16 = math.exp %15 : vector<128x128xf32>
    %cst_13 = arith.constant 1.000000e+00 : f32
    %17 = vector.broadcast %cst_13 : f32 to vector<128x128xf32>
    %18 = arith.addf %17, %16 : vector<128x128xf32>
    %19 = arith.divf %17, %18 : vector<128x128xf32>
    %c0_14 = arith.constant 0 : index
    %c0_15 = arith.constant 0 : index
    %20 = vector.load %arg7[%c0_14, %c0_15] : memref<128x128xf32, #tpu.memory_space<vmem>>, vector<128x128xf32>
    tpu.vector_store %arg7[%c0_14, %c0_15], %19 {strides = array<i32>} : memref<128x128xf32, #tpu.memory_space<vmem>>, vector<128x128xf32>,
    return
  }
  func.func @transform_0(%arg0: i32) -> (i32, i32) {
    %c0_i32 = arith.constant 0 : i32
    %c0_i32_0 = arith.constant 0 : i32
    return %arg0, %c0_i32 : i32, i32
  }
  func.func @transform_1(%arg0: i32) -> (i32, i32) {
    %c0_i32 = arith.constant 0 : i32
    %c0_i32_0 = arith.constant 0 : i32
    %c0_i32_1 = arith.constant 0 : i32
    return %c0_i32, %c0_i32_0 : i32, i32
  }
  func.func @transform_2(%arg0: i32) -> (i32, i32) {
    %c0_i32 = arith.constant 0 : i32
    %c0_i32_0 = arith.constant 0 : i32
    %c0_i32_1 = arith.constant 0 : i32
    return %c0_i32, %c0_i32_0 : i32, i32
  }
  func.func @transform_3(%arg0: i32) -> (i32, i32) {
    %c0_i32 = arith.constant 0 : i32
    %c0_i32_0 = arith.constant 0 : i32
    %c0_i32_1 = arith.constant 0 : i32
    return %c0_i32, %c0_i32_0 : i32, i32
  }
  func.func @transform_4(%arg0: i32) -> (i32, i32) {
    %c0_i32 = arith.constant 0 : i32
    %c0_i32_0 = arith.constant 0 : i32
    %c0_i32_1 = arith.constant 0 : i32
    return %c0_i32, %c0_i32_0 : i32, i32
  }
  func.func @transform_5(%arg0: i32) -> (i32, i32) {
    %c0_i32 = arith.constant 0 : i32
    %c0_i32_0 = arith.constant 0 : i32
    %c0_i32_1 = arith.constant 0 : i32
    return %c0_i32, %c0_i32_0 : i32, i32
  }
  func.func @transform_6(%arg0: i32) -> (i32, i32) {
    %c0_i32 = arith.constant 0 : i32
    %c0_i32_0 = arith.constant 0 : i32
    return %arg0, %c0_i32 : i32, i32
  }
}

</mosaic_0001>

<bundles_post_ra>
// kernel: tile.18
= control target key start
LH: loop header
LB: loop body
LE: loop exit
PB: predicated region body
PF: predicated region fallthrough
CT: control target
= control target key end

     0   :  { %s40_s0 = inlined_call_operand.vmem [shape: f32[32], index: 0, kind: input, shape index: {}]   ;;  %s41_s1 = inlined_call_operand.vmem [shape: f32[32,32], index: 1, kind: output, shape index: {}]  }
   0x1   :  { %v4_v0 = vld [vmem:[%s40_s0] ss:$0 sm:$0xff] }
   0x2   :  { %5 = vst [vmem:[%s41_s1] sm:$0xff] %v4_v0 }
   0x3   :  { %12 = vst [vmem:[%s41_s1 + $0x8] sm:$0xff] %v4_v0 }
   0x4   :  { %13 = vst [vmem:[%s41_s1 + $0x10] sm:$0xff] %v4_v0 }
   0x5   :  { %14 = vst [vmem:[%s41_s1 + $0x18] sm:$0xff] %v4_v0 }

// kernel: tile.19
= control target key start
LH: loop header
LB: loop body
LE: loop exit
PB: predicated region body
PF: predicated region fallthrough
CT: control target
= control target key end

     0   :  { %s88_s8 = smov 96   ;;  %s89_s11 = smov 32   ;;  %vm3_vm0 = vcmask 261120   ;;  %vm10_vm1 = vcmask 1048320   ;;  %vm17_vm2 = vcmask 785920   ;;  %vm24_vm3 = vcmask 523520   ;;  %s137_s0 = inlined_call_operand.vmem [shape: f32[32,32], index: 0, kind: input, shape index: {}]   ;;  %s138_s1 = inlined_call_operand.vmem [shape: f32[1,1024], index: 1, kind: output, shape index: {}]  }
   0x1   :  { %v75_v0 = vld [vmem:[%s137_s0 + $0x3] ss:$4 sm:$0xff]   ;;  %v77_v1 = vld [vmem:[%s137_s0 + $0x1] ss:$4 sm:$0xff]   ;;  %v76_v2 = vld [vmem:[%s137_s0 + $0x2] ss:$4 sm:$0xff]  }
   0x2   :  { %8 = vrot.lane.b32.xlu0 %v75_v0, %s88_s8  ;;  %22 = vrot.lane.b32.xlu1 %v77_v1, %s89_s11  ;;  %s90_s14 = smov 64   ;;  %v2_v3 = vld [vmem:[%s137_s0] ss:$4 sm:$0xff]  }
   0x3   :  { %4 = vst.msk [vmem:[#allocation0] ss:$8 sm:$0xf] %vm3_vm0, %v2_v3  }
   0x4   :  { %5 = vst.msk [vmem:[#allocation0] ss:$8 sm:$0xf0] %vm3_vm0, %v2_v3  }
   0xa   :  { %15 = vrot.lane.b32.xlu0 %v76_v2, %s90_s14 }
  0x74   :  { %v9_v4 = vpop.permute.xlu0 %8   ;;  %v23_v5 = vpop.permute.xlu1 %22  }
  0x75   :  { %11 = vst.msk [vmem:[#allocation0] ss:$8 sm:$0xf] %vm10_vm1, %v9_v4  }
  0x76   :  { %12 = vst.msk [vmem:[#allocation0] ss:$8 sm:$0xf0] %vm10_vm1, %v9_v4  }
  0x7c   :  { %v16_v6 = vpop.permute.xlu0 %15  }
  0x7d   :  { %18 = vst.msk [vmem:[#allocation0] ss:$8 sm:$0xf] %vm17_vm2, %v16_v6  }
  0x7e   :  { %19 = vst.msk [vmem:[#allocation0] ss:$8 sm:$0xf0] %vm17_vm2, %v16_v6  }
  0x7f   :  { %25 = vst.msk [vmem:[#allocation0] ss:$8 sm:$0xf] %vm24_vm3, %v23_v5  }
  0x80   :  { %26 = vst.msk [vmem:[#allocation0] ss:$8 sm:$0xf0] %vm24_vm3, %v23_v5  }
  0x86   :  { %v29_v7 = vld [vmem:[#allocation0] sm:$0x1]  ;;  %v34_v8 = vld [vmem:[#allocation0 + $0x8] sm:$0x1]  ;;  %v40_v9 = vld [vmem:[#allocation0 + $0x10] sm:$0x1] }
  0x87   :  { %32 = vst [vmem:[%s138_s1] sm:$0x1] %v29_v7  ;;  %v46_v10 = vld [vmem:[#allocation0 + $0x18] sm:$0x1]  ;;  %v52_v11 = vld [vmem:[#allocation0 + $0x20] sm:$0x1] }
  0x88   :  { %78 = vst [vmem:[%s138_s1 + $0x1] sm:$0x1] %v34_v8  ;;  %v58_v12 = vld [vmem:[#allocation0 + $0x28] sm:$0x1]  ;;  %v64_v13 = vld [vmem:[#allocation0 + $0x30] sm:$0x1] }
  0x89   :  { %79 = vst [vmem:[%s138_s1 + $0x2] sm:$0x1] %v40_v9  ;;  %v70_v14 = vld [vmem:[#allocation0 + $0x38] sm:$0x1] }
  0x8a   :  { %80 = vst [vmem:[%s138_s1 + $0x3] sm:$0x1] %v46_v10 }
  0x8b   :  { %81 = vst [vmem:[%s138_s1 + $0x4] sm:$0x1] %v52_v11 }
  0x8c   :  { %82 = vst [vmem:[%s138_s1 + $0x5] sm:$0x1] %v58_v12 }
  0x8d   :  { %83 = vst [vmem:[%s138_s1 + $0x6] sm:$0x1] %v64_v13 }
  0x8e   :  { %84 = vst [vmem:[%s138_s1 + $0x7] sm:$0x1] %v70_v14 }

// kernel: ddi_dedicom_forward.2
= control target key start
LH: loop header
LB: loop body
LE: loop exit
PB: predicated region body
PF: predicated region fallthrough
CT: control target
= control target key end

     0   :  { %s534_s9 = smov 0   ;;  %s703_s0 = inlined_call_operand.vmem [shape: f32[384,32], index: 0, kind: input, shape index: {}]   ;;  %s704_s1 = inlined_call_operand.vmem [shape: f32[32,64], index: 1, kind: input, shape index: {}]   ;;  %s705_s2 = inlined_call_operand.vmem [shape: f32[2,64], index: 2, kind: output, shape index: {}]  }
   0x1 LB: > { %s540_s10 = sadd.s32 4294967295, %s516_s9   ;;  %p466_p0 = scmp.ge.s32.totalorder %s516_s9, 1  ;;  %s516_s9 = sphi %s534_s9, %s12_s9  }
   0x2   : > { %p108_p1 = scmp.lt.s32.totalorder %s516_s9, 4 }
   0x4   : > { %p109_p2 = pnand %p466_p0, %p108_p1 }
   0x5   : > { %s467_s11 = sshll.u32 (!%p109_p2), %s540_s10, 4  ;;  %p469_p4 = scmp.ne.s32.totalorder (!%p109_p2), %s540_s10, 0 }
   0x6   : > { %112 = sbr.rel (%p109_p2) target bundleno = 222 (0xde), region = 28  ;;  %p126_p3 = scmp.lt.s32.totalorder (!%p109_p2), %s467_s11, 47 }
   0xb   : > { %s707_s11 = smov (!%p126_p3, %s467_s11), 47  ;;  %134 = sbr.rel (%p469_p4) target bundleno = 18 (0x12), region = 32 }
   0xc   : > { %s468_s12 = sshll.u32 %s707_s11, 3 }
   0xd   : > { %s548_s15 = scalar_lea.vmem %s703_s0, %s468_s12 }
  0x10   : > { %vm135_vm0 = vcmask 517120   ;;  %v518_v0 = vmov 0.0  }
  0x11   : > { %136 = vst.msk [vmem:[%s705_s2] sm:$0x3] %vm135_vm0, %v518_v0 }
  0x12 PF: > { %v156_v1 = vld [vmem:[%s704_s1 + $0x18] sm:$0xff]  ;;  %v155_v2 = vld [vmem:[%s704_s1 + $0x10] sm:$0xff]  ;;  %v154_v3 = vld [vmem:[%s704_s1 + $0x8] sm:$0xff]  ;;  %vm157_vm1 = vcmask 261120   ;;  %v272_v21 = vlaneseq  ;;  %s486_s26 = sshll.u32 %s540_s10, 7  ;;  %vm339_vm5 = vcmask 523264  }
  0x13   : > { %218 = vmatpush.msra.mxu0 %v156_v1  ;;  %489 = vmatpush.msra.mxu1 %v156_v1  ;;  %v153_v4 = vld [vmem:[%s704_s1] sm:$0xff]  ;;  %v138_v9 = vld [vmem:[%s548_s15 + $0x8] sm:$0xff]  ;;  %v139_v13 = vld [vmem:[%s548_s15 + $0x10] sm:$0xff]  ;;  %v603_v27 = vstv %s486_s26 }
  0x14   : > { %490 = vmatpush.msra.mxu2 %v156_v1  ;;  %491 = vmatpush.msra.mxu3 %v156_v1  ;;  %v137_v5 = vld [vmem:[%s548_s15] sm:$0xff]  ;;  %v142_v10 = vld [vmem:[%s548_s15 + $0x28] sm:$0xff]  ;;  %v143_v14 = vld [vmem:[%s548_s15 + $0x30] sm:$0xff]  ;;  %v598_v24 = vshrl.u32 %v272_v21, 7 }
  0x15   : > { %219 = vmatpush.msra.mxu0 %v155_v2  ;;  %492 = vmatpush.msra.mxu1 %v155_v2  ;;  %v141_v6 = vld [vmem:[%s548_s15 + $0x20] sm:$0xff]  ;;  %v146_v11 = vld [vmem:[%s548_s15 + $0x48] sm:$0xff]  ;;  %v147_v15 = vld [vmem:[%s548_s15 + $0x50] sm:$0xff] }
  0x16   : > { %493 = vmatpush.msra.mxu2 %v155_v2  ;;  %494 = vmatpush.msra.mxu3 %v155_v2  ;;  %v145_v7 = vld [vmem:[%s548_s15 + $0x40] sm:$0xff]  ;;  %v150_v12 = vld [vmem:[%s548_s15 + $0x68] sm:$0xff]  ;;  %v151_v16 = vld [vmem:[%s548_s15 + $0x70] sm:$0xff]  ;;  %v274_v25 = vadd.s32 8, %v598_v24  ;;  %v275_v26 = vadd.s32 16, %v598_v24  ;;  %v290_v32 = vadd.s32 %v603_v27, %v598_v24  ;;  %v277_v33 = vadd.s32 32, %v598_v24 }
  0x17   : > { %220 = vmatpush.msra.mxu0 %v154_v3  ;;  %495 = vmatpush.msra.mxu1 %v154_v3  ;;  %v149_v8 = vld [vmem:[%s548_s15 + $0x60] sm:$0xff]  ;;  %v140_v17 = vld [vmem:[%s548_s15 + $0x18] sm:$0xff]  ;;  %v278_v36 = vadd.s32 40, %v598_v24  ;;  %v281_v37 = vadd.s32 64, %v598_v24  ;;  %v276_v38 = vadd.s32 24, %v598_v24  ;;  %v279_v42 = vadd.s32 48, %v598_v24 }
  0x18   : > { %496 = vmatpush.msra.mxu2 %v154_v3  ;;  %497 = vmatpush.msra.mxu3 %v154_v3  ;;  %v144_v18 = vld [vmem:[%s548_s15 + $0x38] sm:$0xff]  ;;  %v291_v29 = vadd.s32 %v603_v27, %v274_v25  ;;  %v292_v34 = vadd.s32 %v603_v27, %v275_v26  ;;  %vm306_vm3 = vcmp.lt.s32.totalorder %v290_v32, 300  ;;  %v294_v39 = vadd.s32 %v603_v27, %v277_v33 }
  0x19   : > { %221 = vmatpush.msra.mxu0 %v153_v4  ;;  %498 = vmatpush.msra.mxu1 %v153_v4  ;;  %v148_v19 = vld [vmem:[%s548_s15 + $0x58] sm:$0xff]  ;;  %v295_v41 = vadd.s32 %v603_v27, %v278_v36  ;;  %v621_v44 = vadd.s32 %v603_v27, %v281_v37  ;;  %v280_v46 = vadd.s32 56, %v598_v24  ;;  %v293_v49 = vadd.s32 %v603_v27, %v276_v38 }
  0x1a   : > { %470 = vmatmul.msk.f32.vlgmr.msra.gmra.mxu0 %vm157_vm1, %v137_v5  ;;  %474 = vmatmul.msk.f32.vlgmr.msra.gmra.mxu1 %vm157_vm1, %v141_v6  ;;  %v152_v20 = vld [vmem:[%s548_s15 + $0x78] sm:$0xff]  ;;  %vm307_vm2 = vcmp.lt.s32.totalorder %v291_v29, 300  ;;  %vm308_vm4 = vcmp.lt.s32.totalorder %v292_v34, 300  ;;  %v282_v51 = vadd.s32 72, %v598_v24  ;;  %vm310_vm6 = vcmp.lt.s32.totalorder %v294_v39, 300 }
  0x1b   : > { %499 = vmatpush.msra.mxu2 %v153_v4  ;;  %500 = vmatpush.msra.mxu3 %v153_v4  ;;  %vm311_vm7 = vcmp.lt.s32.totalorder %v295_v41, 300  ;;  %v296_v53 = vadd.s32 %v603_v27, %v279_v42  ;;  %v285_v54 = vadd.s32 96, %v598_v24  ;;  %v283_v55 = vadd.s32 80, %v598_v24 }
  0x1c   : > { %478 = vmatmul.msk.f32.vlgmr.msra.gmra.mxu2 %vm157_vm1, %v145_v7  ;;  %482 = vmatmul.msk.f32.vlgmr.msra.gmra.mxu3 %vm157_vm1, %v149_v8  ;;  %v297_v59 = vadd.s32 %v603_v27, %v280_v46  ;;  %vm314_vm8 = vcmp.lt.s32.totalorder %v621_v44, 300  ;;  %vm309_vm9 = vcmp.lt.s32.totalorder %v293_v49, 300  ;;  %v299_v62 = vadd.s32 %v603_v27, %v282_v51 }
  0x1d   : > { %v284_v2 = vadd.s32 88, %v598_v24  ;;  %vm312_vm10 = vcmp.lt.s32.totalorder %v296_v53, 300  ;;  %v642_v4 = vadd.s32 %v603_v27, %v285_v54  ;;  %v300_v5 = vadd.s32 %v603_v27, %v283_v55 }
  0x1e   : > { %vm313_vm11 = vcmp.lt.s32.totalorder %v297_v59, 300  ;;  %vm315_vm12 = vcmp.lt.s32.totalorder %v299_v62, 300  ;;  %v287_v38 = vadd.s32 112, %v598_v24  ;;  %v288_v46 = vadd.s32 120, %v598_v24 }
  0x1f   : > { %vm316_vm13 = vcmp.lt.s32.totalorder %v300_v5, 300  ;;  %vm318_vm15 = vcmp.lt.s32.totalorder %v642_v4, 300 }
  0x20   : > { %v304_v54 = vadd.s32 %v603_v27, %v287_v38 }
  0x22   : > { %471 = vmatmul.msk.f32.gmra.mxu0 %vm157_vm1, %v138_v9  ;;  %475 = vmatmul.msk.f32.gmra.mxu1 %vm157_vm1, %v142_v10 }
  0x24   : > { %479 = vmatmul.msk.f32.gmra.mxu2 %vm157_vm1, %v146_v11  ;;  %483 = vmatmul.msk.f32.gmra.mxu3 %vm157_vm1, %v150_v12 }
  0x2a   : > { %472 = vmatmul.msk.f32.gmra.mxu0 %vm157_vm1, %v139_v13  ;;  %476 = vmatmul.msk.f32.gmra.mxu1 %vm157_vm1, %v143_v14 }
  0x2c   : > { %480 = vmatmul.msk.f32.gmra.mxu2 %vm157_vm1, %v147_v15  ;;  %484 = vmatmul.msk.f32.gmra.mxu3 %vm157_vm1, %v151_v16 }
  0x32   : > { %473 = vmatmul.msk.f32.gmra.mxu0 %vm157_vm1, %v140_v17  ;;  %477 = vmatmul.msk.f32.gmra.mxu1 %vm157_vm1, %v144_v18  ;;  %v301_v18 = vadd.s32 %v603_v27, %v284_v2 }
  0x34   : > { %481 = vmatmul.msk.f32.gmra.mxu2 %vm157_vm1, %v148_v19  ;;  %485 = vmatmul.msk.f32.gmra.mxu3 %vm157_vm1, %v152_v20  ;;  %vm317_vm14 = vcmp.lt.s32.totalorder %v301_v18, 300  ;;  %vm320_vm1 = vcmp.lt.s32.totalorder %v304_v54, 300 }
  0x97   : > { %v223_v22 = vpop.f32.mrf.mxu0  ;;  %v235_v23 = vpop.f32.mrf.mxu1 }
  0x98   : > { %v322_v47 = vsel %vm306_vm3, %v223_v22, 0.0  ;;  %v326_v61 = vsel %vm310_vm6, %v235_v23, 0.0  ;;  %vm430_vm3 = vcmask 1040384  }
  0x99   : > { %v377_v56 = vmul.f32 %v322_v47, %v322_v47  ;;  %v340_v63 = vsel %vm339_vm5, %v322_v47, 0.0  ;;  %v381_v7 = vmul.f32 %v326_v61, %v326_v61  ;;  %v347_v23 = vsel %vm339_vm5, %v326_v61, 0.0 }
  0x9b   : > { %v393_v6 = vsel %vm339_vm5, %v377_v56, 0.0  ;;  %v400_v29 = vsel %vm339_vm5, %v381_v7, 0.0 }
  0x9f   : > { %v226_v28 = vpop.f32.mrf.mxu0  ;;  %v238_v30 = vpop.f32.mrf.mxu1 }
  0xa0   : > { %v606_v31 = vpop.f32.mrf.mxu2  ;;  %v612_v35 = vpop.f32.mrf.mxu3  ;;  %v323_v40 = vsel %vm307_vm2, %v226_v28, 0.0  ;;  %v327_v13 = vsel %vm311_vm7, %v238_v30, 0.0  ;;  %v286_v28 = vadd.s32 104, %v598_v24 }
  0xa1   : > { %v378_v52 = vmul.f32 %v323_v40, %v323_v40  ;;  %v341_v57 = vsel %vm339_vm5, %v323_v40, 0.0  ;;  %v382_v25 = vmul.f32 %v327_v13, %v327_v13  ;;  %v349_v33 = vsel %vm339_vm5, %v327_v13, 0.0 }
  0xa2   : > { %v342_v3 = vadd.f32 %v341_v57, %v340_v63  ;;  %v330_v39 = vsel %vm314_vm8, %v606_v31, 0.0  ;;  %v303_v51 = vadd.s32 %v603_v27, %v286_v28 }
  0xa3   : > { %v394_v0 = vsel %vm339_vm5, %v378_v52, 0.0  ;;  %v402_v42 = vsel %vm339_vm5, %v382_v25, 0.0  ;;  %v385_v31 = vmul.f32 %v330_v39, %v330_v39 }
  0xa4   : > { %v395_v11 = vadd.f32 %v394_v0, %v393_v6  ;;  %vm319_vm0 = vcmp.lt.s32.totalorder %v303_v51, 300 }
  0xa5   : > { %v408_v63 = vsel %vm339_vm5, %v385_v31, 0.0  ;;  %v338_v31 = vld [vmem:[%s705_s2] sm:$0x3] }
  0xa7   : > { %v229_v43 = vpop.f32.mrf.mxu0  ;;  %v241_v45 = vpop.f32.mrf.mxu1 }
  0xa8   : > { %v324_v48 = vsel %vm308_vm4, %v229_v43, 0.0  ;;  %v625_v50 = vpop.f32.mrf.mxu2  ;;  %v633_v60 = vpop.f32.mrf.mxu3  ;;  %v328_v21 = vsel %vm312_vm10, %v241_v45, 0.0  ;;  %vm433_vm4 = vcmask 517120  }
  0xa9   : > { %v379_v58 = vmul.f32 %v324_v48, %v324_v48  ;;  %v343_v1 = vsel %vm339_vm5, %v324_v48, 0.0  ;;  %v383_v34 = vmul.f32 %v328_v21, %v328_v21  ;;  %v351_v43 = vsel %vm339_vm5, %v328_v21, 0.0 }
  0xaa   : > { %v344_v12 = vadd.f32 %v343_v1, %v342_v3  ;;  %v331_v49 = vsel %vm315_vm12, %v625_v50, 0.0  ;;  %v305_v50 = vadd.s32 %v603_v27, %v288_v46  ;;  %v334_v3 = vsel %vm318_vm15, %v612_v35, 0.0 }
  0xab   : > { %v396_v8 = vsel %vm339_vm5, %v379_v58, 0.0  ;;  %v404_v52 = vsel %vm339_vm5, %v383_v34, 0.0  ;;  %v355_v58 = vsel %vm339_vm5, %v330_v39, 0.0  ;;  %v386_v59 = vmul.f32 %v331_v49, %v331_v49 }
  0xac   : > { %v397_v19 = vadd.f32 %v396_v8, %v395_v11  ;;  %v357_v0 = vsel %vm339_vm5, %v331_v49, 0.0  ;;  %vm321_vm2 = vcmp.lt.s32.totalorder %v305_v50, 300  ;;  %v335_v11 = vsel %vm319_vm0, %v633_v60, 0.0 }
  0xad   : > { %v410_v7 = vsel %vm339_vm5, %v386_v59, 0.0  ;;  %v363_v18 = vsel %vm339_vm5, %v334_v3, 0.0 }
  0xaf   : > { %v232_v9 = vpop.f32.mrf.mxu0  ;;  %v244_v10 = vpop.f32.mrf.mxu1 }
  0xb0   : > { %v325_v14 = vsel %vm309_vm9, %v232_v9, 0.0  ;;  %v253_v15 = vpop.f32.mrf.mxu2  ;;  %v329_v22 = vsel %vm313_vm11, %v244_v10, 0.0  ;;  %v265_v37 = vpop.f32.mrf.mxu3 }
  0xb1   : > { %v345_v16 = vsel %vm339_vm5, %v325_v14, 0.0  ;;  %v380_v17 = vmul.f32 %v325_v14, %v325_v14  ;;  %v384_v36 = vmul.f32 %v329_v22, %v329_v22  ;;  %v353_v45 = vsel %vm339_vm5, %v329_v22, 0.0 }
  0xb2   : > { %v346_v20 = vadd.f32 %v345_v16, %v344_v12  ;;  %v332_v57 = vsel %vm316_vm13, %v253_v15, 0.0  ;;  %v389_v12 = vmul.f32 %v334_v3, %v334_v3  ;;  %v336_v16 = vsel %vm320_vm1, %v265_v37, 0.0 }
  0xb3   : > { %v398_v26 = vsel %vm339_vm5, %v380_v17, 0.0  ;;  %v406_v53 = vsel %vm339_vm5, %v384_v36, 0.0  ;;  %v387_v1 = vmul.f32 %v332_v57, %v332_v57  ;;  %v359_v4 = vsel %vm339_vm5, %v332_v57, 0.0 }
  0xb4   : > { %v348_v30 = vadd.f32 %v347_v23, %v346_v20  ;;  %v399_v32 = vadd.f32 %v398_v26, %v397_v19  ;;  %v390_v19 = vmul.f32 %v335_v11, %v335_v11  ;;  %v416_v22 = vsel %vm339_vm5, %v389_v12, 0.0 }
  0xb5   : > { %v412_v13 = vsel %vm339_vm5, %v387_v1, 0.0  ;;  %v365_v23 = vsel %vm339_vm5, %v335_v11, 0.0  ;;  %v391_v25 = vmul.f32 %v336_v16, %v336_v16 }
  0xb6   : > { %v401_v40 = vadd.f32 %v400_v29, %v399_v32  ;;  %v350_v41 = vadd.f32 %v349_v33, %v348_v30  ;;  %v418_v29 = vsel %vm339_vm5, %v390_v19, 0.0  ;;  %v367_v30 = vsel %vm339_vm5, %v336_v16, 0.0 }
  0xb7   : > { %v420_v36 = vsel %vm339_vm5, %v391_v25, 0.0 }
  0xb8   : > { %v352_v47 = vadd.f32 %v351_v43, %v350_v41  ;;  %v403_v48 = vadd.f32 %v402_v42, %v401_v40  ;;  %v256_v44 = vpop.f32.mrf.mxu2  ;;  %v268_v8 = vpop.f32.mrf.mxu3 }
  0xb9   : > { %v333_v24 = vsel %vm317_vm14, %v256_v44, 0.0  ;;  %v337_v17 = vsel %vm321_vm2, %v268_v8, 0.0 }
  0xba   : > { %v405_v55 = vadd.f32 %v404_v52, %v403_v48  ;;  %v354_v56 = vadd.f32 %v353_v45, %v352_v47  ;;  %v388_v2 = vmul.f32 %v333_v24, %v333_v24  ;;  %v361_v27 = vsel %vm339_vm5, %v333_v24, 0.0 }
  0xbb   : > { %v392_v60 = vmul.f32 %v337_v17, %v337_v17  ;;  %v369_v32 = vsel %vm339_vm5, %v337_v17, 0.0 }
  0xbc   : > { %v356_v61 = vadd.f32 %v355_v58, %v354_v56  ;;  %v407_v62 = vadd.f32 %v406_v53, %v405_v55  ;;  %v414_v35 = vsel %vm339_vm5, %v388_v2, 0.0 }
  0xbd   : > { %v422_v37 = vsel %vm339_vm5, %v392_v60, 0.0 }
  0xbe   : > { %v409_v5 = vadd.f32 %v408_v63, %v407_v62  ;;  %v358_v6 = vadd.f32 %v357_v0, %v356_v61 }
  0xc0   : > { %v360_v9 = vadd.f32 %v359_v4, %v358_v6  ;;  %v411_v10 = vadd.f32 %v410_v7, %v409_v5 }
  0xc2   : > { %v413_v14 = vadd.f32 %v412_v13, %v411_v10  ;;  %v362_v15 = vadd.f32 %v361_v27, %v360_v9 }
  0xc4   : > { %v364_v20 = vadd.f32 %v363_v18, %v362_v15  ;;  %v415_v21 = vadd.f32 %v414_v35, %v413_v14 }
  0xc6   : > { %v417_v26 = vadd.f32 %v416_v22, %v415_v21  ;;  %v366_v28 = vadd.f32 %v365_v23, %v364_v20 }
  0xc8   : > { %v368_v33 = vadd.f32 %v367_v30, %v366_v28  ;;  %v419_v34 = vadd.f32 %v418_v29, %v417_v26 }
  0xca   : > { %v421_v38 = vadd.f32 %v420_v36, %v419_v34  ;;  %v370_v39 = vadd.f32 %v369_v32, %v368_v33 }
  0xcc   : > { %v371_v40 = vrot.slane %v370_v39, 4  ;;  %v423_v41 = vadd.f32 %v422_v37, %v421_v38 }
  0xce   : > { %v372_v42 = vadd.f32 %v371_v40, %v370_v39  ;;  %v424_v43 = vrot.slane %v423_v41, 4 }
  0xd0   : > { %v373_v45 = vrot.slane %v372_v42, 2  ;;  %v425_v46 = vadd.f32 %v424_v43, %v423_v41 }
  0xd2   : > { %v374_v47 = vadd.f32 %v373_v45, %v372_v42  ;;  %v426_v48 = vrot.slane %v425_v46, 2 }
  0xd4   : > { %v375_v49 = vrot.slane %v374_v47, 1  ;;  %v427_v51 = vadd.f32 %v426_v48, %v425_v46 }
  0xd6   : > { %v428_v44 = vrot.slane %v427_v51, 1  ;;  %v376_v52 = vadd.f32 %v375_v49, %v374_v47 }
  0xd8   : > { %v429_v53 = vadd.f32 %v428_v44, %v427_v51 }
  0xda   : > { %v431_v54 = vsel %vm430_vm3, %v376_v52, %v429_v53 }
  0xdb   : > { %v432_v55 = vadd.f32 %v431_v54, %v338_v31 }
  0xdd   : > { %434 = vst.msk [vmem:[%s705_s2] sm:$0x3] %vm433_vm4, %v432_v55 }
  0xde PF: > { %s12_s9 = sadd.s32 1, %s516_s9  }
  0xdf   : > { %p9_p5 = scmp.ge.s32.totalorder %s12_s9, 5  }
  0xe1   :  { %11 = sbr.rel (!%p9_p5) target bundleno = 1 (0x1), region = 58 }

// kernel: ddi_dedicom_forward.3
= control target key start
LH: loop header
LB: loop body
LE: loop exit
PB: predicated region body
PF: predicated region fallthrough
CT: control target
= control target key end

     0   :  { %s3660_s21 = smov 0   ;;  %s5916_s0 = inlined_call_operand.vmem [shape: f32[384,32], index: 0, kind: input, shape index: {}]   ;;  %s5917_s1 = inlined_call_operand.vmem [shape: f32[32,1024], index: 1, kind: input, shape index: {}]   ;;  %s5918_s2 = inlined_call_operand.vmem [shape: f32[32,1024], index: 2, kind: input, shape index: {}]   ;;  %s5919_s3 = inlined_call_operand.vmem [shape: f32[1,1024], index: 3, kind: input, shape index: {}]   ;;  %s5920_s4 = inlined_call_operand.vmem [shape: f32[1,1024], index: 4, kind: input, shape index: {}]   ;;  %s5921_s5 = inlined_call_operand.vmem [shape: bf16[1024,128], index: 5, kind: input, shape index: {}]   ;;  %s5922_s6 = inlined_call_operand.vmem [shape: f32[384,128], index: 6, kind: output, shape index: {}]  }
   0x1 LB: > { %s2932_s22 = sadd.s32 4294967295, %s3623_s21   ;;  %p2936_p0 = scmp.ge.s32.totalorder %s3623_s21, 1  ;;  %s3623_s21 = sphi %s3660_s21, %s16_s21  }
   0x2   : > { %p213_p1 = scmp.lt.s32.totalorder %s3623_s21, 4 }
   0x4   : > { %p214_p2 = pnand %p2936_p0, %p213_p1 }
   0x6   : > { %217 = sbr.rel (%p214_p2) target bundleno = 946 (0x3b2), region = 44 }
   0xb   : > { %v295_v0 = vld [vmem:[%s5917_s1 + $0xc0] sm:$0xff]  ;;  %v296_v1 = vld [vmem:[%s5917_s1 + $0xc8] sm:$0xff]  ;;  %v297_v2 = vld [vmem:[%s5917_s1 + $0xd0] sm:$0xff]  ;;  %s2937_s29 = sshll.u32 %s2932_s22, 4  ;;  %vm321_vm0 = vcmask 261120  }
   0xc   : > { %382 = vmatpush.msra.mxu0 %v295_v0  ;;  %447 = vmatpush.msra.mxu1 %v296_v1  ;;  %v298_v3 = vld [vmem:[%s5917_s1 + $0xd8] sm:$0xff]  ;;  %v287_v4 = vld [vmem:[%s5917_s1 + $0x80] sm:$0xff]  ;;  %v288_v5 = vld [vmem:[%s5917_s1 + $0x88] sm:$0xff]  ;;  %p244_p3 = scmp.lt.s32.totalorder %s2937_s29, 47 }
   0xd   : > { %512 = vmatpush.msra.mxu2 %v297_v2  ;;  %577 = vmatpush.msra.mxu3 %v298_v3  ;;  %v289_v6 = vld [vmem:[%s5917_s1 + $0x90] sm:$0xff]  ;;  %v290_v7 = vld [vmem:[%s5917_s1 + $0x98] sm:$0xff]  ;;  %v279_v8 = vld [vmem:[%s5917_s1 + $0x40] sm:$0xff] }
   0xe   : > { %383 = vmatpush.msra.mxu0 %v287_v4  ;;  %448 = vmatpush.msra.mxu1 %v288_v5  ;;  %v280_v9 = vld [vmem:[%s5917_s1 + $0x48] sm:$0xff]  ;;  %v281_v10 = vld [vmem:[%s5917_s1 + $0x50] sm:$0xff]  ;;  %v282_v11 = vld [vmem:[%s5917_s1 + $0x58] sm:$0xff]  ;;  %s6301_s29 = smov (!%p244_p3, %s2937_s29), 47 }
   0xf   : > { %513 = vmatpush.msra.mxu2 %v289_v6  ;;  %578 = vmatpush.msra.mxu3 %v290_v7  ;;  %v271_v12 = vld [vmem:[%s5917_s1] sm:$0xff]  ;;  %v272_v13 = vld [vmem:[%s5917_s1 + $0x8] sm:$0xff]  ;;  %v273_v14 = vld [vmem:[%s5917_s1 + $0x10] sm:$0xff]  ;;  %s2938_s10 = sshll.u32 %s6301_s29, 3 }
  0x10   : > { %384 = vmatpush.msra.mxu0 %v279_v8  ;;  %449 = vmatpush.msra.mxu1 %v280_v9  ;;  %v274_v15 = vld [vmem:[%s5917_s1 + $0x18] sm:$0xff]  ;;  %s3724_s13 = scalar_lea.vmem %s5916_s0, %s2938_s10  ;;  %v301_v17 = vld [vmem:[%s5917_s1 + $0xf0] sm:$0xff]  ;;  %v299_v18 = vld [vmem:[%s5917_s1 + $0xe0] sm:$0xff]  ;;  %s5884_s22 = scalar_lea.vmem %s5922_s6, %s2938_s10 }
  0x11   : > { %514 = vmatpush.msra.mxu2 %v281_v10  ;;  %579 = vmatpush.msra.mxu3 %v282_v11  ;;  %v3727_v16 = vld [vmem:[%s3724_s13] sm:$0xff]  ;;  %v302_v19 = vld [vmem:[%s5917_s1 + $0xf8] sm:$0xff]  ;;  %v300_v20 = vld [vmem:[%s5917_s1 + $0xe8] sm:$0xff] }
  0x12   : > { %385 = vmatpush.msra.mxu0 %v271_v12  ;;  %450 = vmatpush.msra.mxu1 %v272_v13  ;;  %v293_v21 = vld [vmem:[%s5917_s1 + $0xb0] sm:$0xff]  ;;  %v291_v22 = vld [vmem:[%s5917_s1 + $0xa0] sm:$0xff]  ;;  %v294_v23 = vld [vmem:[%s5917_s1 + $0xb8] sm:$0xff] }
  0x13   : > { %515 = vmatpush.msra.mxu2 %v273_v14  ;;  %580 = vmatpush.msra.mxu3 %v274_v15  ;;  %v292_v24 = vld [vmem:[%s5917_s1 + $0xa8] sm:$0xff]  ;;  %v3773_v26 = vld [vmem:[%s3724_s13 + $0x10] sm:$0xff]  ;;  %v3784_v27 = vld [vmem:[%s3724_s13 + $0x18] sm:$0xff] }
  0x14   : > { %2941 = vmatmul.msk.f32.vlgmr.msra.gmra.mxu0 %vm321_vm0, %v3727_v16  ;;  %2957 = vmatmul.msk.f32.vlgmr.msra.gmra.mxu1 %vm321_vm0, %v3727_v16  ;;  %v3762_v25 = vld [vmem:[%s3724_s13 + $0x8] sm:$0xff]  ;;  %v3795_v28 = vld [vmem:[%s3724_s13 + $0x20] sm:$0xff]  ;;  %v285_v29 = vld [vmem:[%s5917_s1 + $0x70] sm:$0xff] }
  0x15   : > { %2973 = vmatmul.msk.f32.vlgmr.msra.gmra.mxu2 %vm321_vm0, %v3727_v16  ;;  %2989 = vmatmul.msk.f32.vlgmr.msra.gmra.mxu3 %vm321_vm0, %v3727_v16  ;;  %v283_v30 = vld [vmem:[%s5917_s1 + $0x60] sm:$0xff]  ;;  %v286_v31 = vld [vmem:[%s5917_s1 + $0x78] sm:$0xff]  ;;  %v284_v32 = vld [vmem:[%s5917_s1 + $0x68] sm:$0xff] }
  0x16   : > { %772 = vmatpush.msrb.mxu2 %v301_v17  ;;  %642 = vmatpush.msrb.mxu0 %v299_v18  ;;  %v3818_v33 = vld [vmem:[%s3724_s13 + $0x28] sm:$0xff]  ;;  %v3829_v34 = vld [vmem:[%s3724_s13 + $0x30] sm:$0xff]  ;;  %v3840_v35 = vld [vmem:[%s3724_s13 + $0x38] sm:$0xff] }
  0x17   : > { %837 = vmatpush.msrb.mxu3 %v302_v19  ;;  %707 = vmatpush.msrb.mxu1 %v300_v20  ;;  %v3851_v36 = vld [vmem:[%s3724_s13 + $0x40] sm:$0xff]  ;;  %v277_v37 = vld [vmem:[%s5917_s1 + $0x30] sm:$0xff]  ;;  %v278_v39 = vld [vmem:[%s5917_s1 + $0x38] sm:$0xff] }
  0x18   : > { %773 = vmatpush.msrb.mxu2 %v293_v21  ;;  %643 = vmatpush.msrb.mxu0 %v291_v22  ;;  %v275_v38 = vld [vmem:[%s5917_s1 + $0x20] sm:$0xff]  ;;  %v276_v40 = vld [vmem:[%s5917_s1 + $0x28] sm:$0xff]  ;;  %v3885_v42 = vld [vmem:[%s3724_s13 + $0x50] sm:$0xff] }
  0x19   : > { %838 = vmatpush.msrb.mxu3 %v294_v23  ;;  %708 = vmatpush.msrb.mxu1 %v292_v24  ;;  %v3874_v41 = vld [vmem:[%s3724_s13 + $0x48] sm:$0xff]  ;;  %v3896_v43 = vld [vmem:[%s3724_s13 + $0x58] sm:$0xff]  ;;  %v3907_v44 = vld [vmem:[%s3724_s13 + $0x60] sm:$0xff] }
  0x1a   : > { %774 = vmatpush.msrb.mxu2 %v285_v29  ;;  %644 = vmatpush.msrb.mxu0 %v283_v30  ;;  %v916_v45 = vld [vmem:[%s5918_s2 + $0xd0] sm:$0xff]  ;;  %v914_v46 = vld [vmem:[%s5918_s2 + $0xc0] sm:$0xff]  ;;  %v917_v47 = vld [vmem:[%s5918_s2 + $0xd8] sm:$0xff] }
  0x1b   : > { %839 = vmatpush.msrb.mxu3 %v286_v31  ;;  %709 = vmatpush.msrb.mxu1 %v284_v32  ;;  %v3927_v48 = vld [vmem:[%s3724_s13 + $0x68] sm:$0xff]  ;;  %v3941_v50 = vld [vmem:[%s3724_s13 + $0x70] sm:$0xff]  ;;  %v3952_v51 = vld [vmem:[%s3724_s13 + $0x78] sm:$0xff] }
  0x1c   : > { %2942 = vmatmul.msk.f32.gmra.mxu0 %vm321_vm0, %v3762_v25  ;;  %2958 = vmatmul.msk.f32.gmra.mxu1 %vm321_vm0, %v3762_v25  ;;  %v915_v49 = vld [vmem:[%s5918_s2 + $0xc8] sm:$0xff]  ;;  %v908_v54 = vld [vmem:[%s5918_s2 + $0x90] sm:$0xff]  ;;  %v906_v55 = vld [vmem:[%s5918_s2 + $0x80] sm:$0xff] }
  0x1d   : > { %2974 = vmatmul.msk.f32.gmra.mxu2 %vm321_vm0, %v3762_v25  ;;  %2990 = vmatmul.msk.f32.gmra.mxu3 %vm321_vm0, %v3762_v25  ;;  %v909_v56 = vld [vmem:[%s5918_s2 + $0x98] sm:$0xff]  ;;  %v907_v61 = vld [vmem:[%s5918_s2 + $0x88] sm:$0xff]  ;;  %v900_v10 = vld [vmem:[%s5918_s2 + $0x50] sm:$0xff] }
  0x1e   : > { %775 = vmatpush.msrb.mxu2 %v277_v37  ;;  %645 = vmatpush.msrb.mxu0 %v275_v38  ;;  %v898_v11 = vld [vmem:[%s5918_s2 + $0x40] sm:$0xff]  ;;  %v901_v12 = vld [vmem:[%s5918_s2 + $0x58] sm:$0xff]  ;;  %v899_v18 = vld [vmem:[%s5918_s2 + $0x48] sm:$0xff] }
  0x1f   : > { %840 = vmatpush.msrb.mxu3 %v278_v39  ;;  %710 = vmatpush.msrb.mxu1 %v276_v40  ;;  %v892_v39 = vld [vmem:[%s5918_s2 + $0x10] sm:$0xff]  ;;  %v890_v40 = vld [vmem:[%s5918_s2] sm:$0xff] }
  0x20   : > { %1082 = vmatpush.msra.mxu2 %v916_v45  ;;  %952 = vmatpush.msra.mxu0 %v914_v46  ;;  %v893_v45 = vld [vmem:[%s5918_s2 + $0x18] sm:$0xff] }
  0x21   : > { %1147 = vmatpush.msra.mxu3 %v917_v47  ;;  %1017 = vmatpush.msra.mxu1 %v915_v49 }
  0x22   : > { %1083 = vmatpush.msra.mxu2 %v908_v54  ;;  %953 = vmatpush.msra.mxu0 %v906_v55  ;;  %v891_v55 = vld [vmem:[%s5918_s2 + $0x8] sm:$0xff] }
  0x23   : > { %1148 = vmatpush.msra.mxu3 %v909_v56  ;;  %1018 = vmatpush.msra.mxu1 %v907_v61 }
  0x24   : > { %2943 = vmatmul.msk.f32.gmra.mxu0 %vm321_vm0, %v3773_v26  ;;  %2959 = vmatmul.msk.f32.gmra.mxu1 %vm321_vm0, %v3773_v26 }
  0x25   : > { %2975 = vmatmul.msk.f32.gmra.mxu2 %vm321_vm0, %v3773_v26  ;;  %2991 = vmatmul.msk.f32.gmra.mxu3 %vm321_vm0, %v3773_v26 }
  0x26   : > { %1084 = vmatpush.msra.mxu2 %v900_v10  ;;  %954 = vmatpush.msra.mxu0 %v898_v11 }
  0x27   : > { %1149 = vmatpush.msra.mxu3 %v901_v12  ;;  %1019 = vmatpush.msra.mxu1 %v899_v18 }
  0x28   : > { %1085 = vmatpush.msra.mxu2 %v892_v39  ;;  %955 = vmatpush.msra.mxu0 %v890_v40 }
  0x29   : > { %1150 = vmatpush.msra.mxu3 %v893_v45  ;;  %1020 = vmatpush.msra.mxu1 %v891_v55 }
  0x2c   : > { %2944 = vmatmul.msk.f32.gmra.mxu0 %vm321_vm0, %v3784_v27  ;;  %2960 = vmatmul.msk.f32.gmra.mxu1 %vm321_vm0, %v3784_v27 }
  0x2d   : > { %2976 = vmatmul.msk.f32.gmra.mxu2 %vm321_vm0, %v3784_v27  ;;  %2992 = vmatmul.msk.f32.gmra.mxu3 %vm321_vm0, %v3784_v27 }
  0x34   : > { %2945 = vmatmul.msk.f32.gmra.mxu0 %vm321_vm0, %v3795_v28  ;;  %2961 = vmatmul.msk.f32.gmra.mxu1 %vm321_vm0, %v3795_v28 }
  0x35   : > { %2977 = vmatmul.msk.f32.gmra.mxu2 %vm321_vm0, %v3795_v28  ;;  %2993 = vmatmul.msk.f32.gmra.mxu3 %vm321_vm0, %v3795_v28 }
  0x3c   : > { %2946 = vmatmul.msk.f32.gmra.mxu0 %vm321_vm0, %v3818_v33  ;;  %2962 = vmatmul.msk.f32.gmra.mxu1 %vm321_vm0, %v3818_v33 }
  0x3d   : > { %2978 = vmatmul.msk.f32.gmra.mxu2 %vm321_vm0, %v3818_v33  ;;  %2994 = vmatmul.msk.f32.gmra.mxu3 %vm321_vm0, %v3818_v33 }
  0x44   : > { %2947 = vmatmul.msk.f32.gmra.mxu0 %vm321_vm0, %v3829_v34  ;;  %2963 = vmatmul.msk.f32.gmra.mxu1 %vm321_vm0, %v3829_v34 }
  0x45   : > { %2979 = vmatmul.msk.f32.gmra.mxu2 %vm321_vm0, %v3829_v34  ;;  %2995 = vmatmul.msk.f32.gmra.mxu3 %vm321_vm0, %v3829_v34 }
  0x4c   : > { %2948 = vmatmul.msk.f32.gmra.mxu0 %vm321_vm0, %v3840_v35  ;;  %2964 = vmatmul.msk.f32.gmra.mxu1 %vm321_vm0, %v3840_v35 }
  0x4d   : > { %2980 = vmatmul.msk.f32.gmra.mxu2 %vm321_vm0, %v3840_v35  ;;  %2996 = vmatmul.msk.f32.gmra.mxu3 %vm321_vm0, %v3840_v35 }
  0x54   : > { %2949 = vmatmul.msk.f32.gmra.mxu0 %vm321_vm0, %v3851_v36  ;;  %2965 = vmatmul.msk.f32.gmra.mxu1 %vm321_vm0, %v3851_v36 }
  0x55   : > { %2981 = vmatmul.msk.f32.gmra.mxu2 %vm321_vm0, %v3851_v36  ;;  %2997 = vmatmul.msk.f32.gmra.mxu3 %vm321_vm0, %v3851_v36 }
  0x5c   : > { %2950 = vmatmul.msk.f32.gmra.mxu0 %vm321_vm0, %v3874_v41  ;;  %2966 = vmatmul.msk.f32.gmra.mxu1 %vm321_vm0, %v3874_v41 }
  0x5d   : > { %2982 = vmatmul.msk.f32.gmra.mxu2 %vm321_vm0, %v3874_v41  ;;  %2998 = vmatmul.msk.f32.gmra.mxu3 %vm321_vm0, %v3874_v41 }
  0x64   : > { %2951 = vmatmul.msk.f32.gmra.mxu0 %vm321_vm0, %v3885_v42  ;;  %2967 = vmatmul.msk.f32.gmra.mxu1 %vm321_vm0, %v3885_v42 }
  0x65   : > { %2983 = vmatmul.msk.f32.gmra.mxu2 %vm321_vm0, %v3885_v42  ;;  %2999 = vmatmul.msk.f32.gmra.mxu3 %vm321_vm0, %v3885_v42 }
  0x6c   : > { %2952 = vmatmul.msk.f32.gmra.mxu0 %vm321_vm0, %v3896_v43  ;;  %2968 = vmatmul.msk.f32.gmra.mxu1 %vm321_vm0, %v3896_v43 }
  0x6d   : > { %2984 = vmatmul.msk.f32.gmra.mxu2 %vm321_vm0, %v3896_v43  ;;  %3000 = vmatmul.msk.f32.gmra.mxu3 %vm321_vm0, %v3896_v43 }
  0x74   : > { %2953 = vmatmul.msk.f32.gmra.mxu0 %vm321_vm0, %v3907_v44  ;;  %2969 = vmatmul.msk.f32.gmra.mxu1 %vm321_vm0, %v3907_v44 }
  0x75   : > { %2985 = vmatmul.msk.f32.gmra.mxu2 %vm321_vm0, %v3907_v44  ;;  %3001 = vmatmul.msk.f32.gmra.mxu3 %vm321_vm0, %v3907_v44 }
  0x7c   : > { %2954 = vmatmul.msk.f32.gmra.mxu0 %vm321_vm0, %v3927_v48  ;;  %2970 = vmatmul.msk.f32.gmra.mxu1 %vm321_vm0, %v3927_v48 }
  0x7d   : > { %2986 = vmatmul.msk.f32.gmra.mxu2 %vm321_vm0, %v3927_v48  ;;  %3002 = vmatmul.msk.f32.gmra.mxu3 %vm321_vm0, %v3927_v48 }
  0x84   : > { %2955 = vmatmul.msk.f32.gmra.mxu0 %vm321_vm0, %v3941_v50  ;;  %2971 = vmatmul.msk.f32.gmra.mxu1 %vm321_vm0, %v3941_v50 }
  0x85   : > { %2987 = vmatmul.msk.f32.gmra.mxu2 %vm321_vm0, %v3941_v50  ;;  %3003 = vmatmul.msk.f32.gmra.mxu3 %vm321_vm0, %v3941_v50 }
  0x8c   : > { %2956 = vmatmul.msk.f32.gmra.mxu0 %vm321_vm0, %v3952_v51  ;;  %2972 = vmatmul.msk.f32.gmra.mxu1 %vm321_vm0, %v3952_v51 }
  0x8d   : > { %2988 = vmatmul.msk.f32.gmra.mxu2 %vm321_vm0, %v3952_v51  ;;  %3004 = vmatmul.msk.f32.gmra.mxu3 %vm321_vm0, %v3952_v51 }
  0x91   : > { %v3962_v52 = vpop.f32.mrf.mxu0  ;;  %v3964_v53 = vpop.f32.mrf.mxu1 }
  0x92   : > { %5966 = vst [vmem:[#allocation2_spill] sm:$0xff] %v3962_v52 }
  0x93   : > { %5967 = vst [vmem:[#allocation3_spill] sm:$0xff] %v3964_v53 }
  0x94   : > { %3005 = vmatmul.msk.f32.vlgmr.msrb.gmra.mxu0 %vm321_vm0, %v3727_v16  ;;  %3021 = vmatmul.msk.f32.vlgmr.msrb.gmra.mxu1 %vm321_vm0, %v3727_v16 }
  0x95   : > { %3037 = vmatmul.msk.f32.vlgmr.msrb.gmra.mxu2 %vm321_vm0, %v3727_v16  ;;  %3053 = vmatmul.msk.f32.vlgmr.msrb.gmra.mxu3 %vm321_vm0, %v3727_v16 }
  0x98   : > { %v3983_v57 = vpop.f32.mrf.mxu2  ;;  %v3985_v58 = vpop.f32.mrf.mxu3 }
  0x99   : > { %v3987_v59 = vpop.f32.mrf.mxu0  ;;  %v3989_v60 = vpop.f32.mrf.mxu1 }
  0x9a   : > { %5968 = vst [vmem:[#allocation4_spill] sm:$0xff] %v3987_v59  ;;  %v911_v59 = vld [vmem:[%s5918_s2 + $0xa8] sm:$0xff] }
  0x9b   : > { %5969 = vst [vmem:[#allocation5_spill] sm:$0xff] %v3989_v60 }
  0x9c   : > { %3006 = vmatmul.msk.f32.gmra.mxu0 %vm321_vm0, %v3762_v25  ;;  %3022 = vmatmul.msk.f32.gmra.mxu1 %vm321_vm0, %v3762_v25 }
  0x9d   : > { %3038 = vmatmul.msk.f32.gmra.mxu2 %vm321_vm0, %v3762_v25  ;;  %3054 = vmatmul.msk.f32.gmra.mxu3 %vm321_vm0, %v3762_v25 }
  0xa0   : > { %v4002_v62 = vpop.f32.mrf.mxu2  ;;  %v4004_v63 = vpop.f32.mrf.mxu3 }
  0xa1   : > { %v4006_v0 = vpop.f32.mrf.mxu0  ;;  %v4008_v1 = vpop.f32.mrf.mxu1 }
  0xa2   : > { %5970 = vst [vmem:[#allocation6_spill] sm:$0xff] %v4006_v0  ;;  %v919_v0 = vld [vmem:[%s5918_s2 + $0xe8] sm:$0xff] }
  0xa3   : > { %5971 = vst [vmem:[#allocation7_spill] sm:$0xff] %v4008_v1  ;;  %1277 = vmatpush.msrb.mxu1 %v919_v0 }
  0xa4   : > { %3007 = vmatmul.msk.f32.gmra.mxu0 %vm321_vm0, %v3773_v26  ;;  %3023 = vmatmul.msk.f32.gmra.mxu1 %vm321_vm0, %v3773_v26 }
  0xa5   : > { %3039 = vmatmul.msk.f32.gmra.mxu2 %vm321_vm0, %v3773_v26  ;;  %3055 = vmatmul.msk.f32.gmra.mxu3 %vm321_vm0, %v3773_v26 }
  0xa6   : > { %1278 = vmatpush.msrb.mxu1 %v911_v59 }
  0xa8   : > { %v4018_v2 = vpop.f32.mrf.mxu2  ;;  %v4020_v3 = vpop.f32.mrf.mxu3 }
  0xa9   : > { %v4022_v4 = vpop.f32.mrf.mxu0  ;;  %v4024_v5 = vpop.f32.mrf.mxu1 }
  0xaa   : > { %5972 = vst [vmem:[#allocation8_spill] sm:$0xff] %v4022_v4 }
  0xab   : > { %5973 = vst [vmem:[#allocation9_spill] sm:$0xff] %v4024_v5 }
  0xac   : > { %3008 = vmatmul.msk.f32.gmra.mxu0 %vm321_vm0, %v3784_v27  ;;  %3024 = vmatmul.msk.f32.gmra.mxu1 %vm321_vm0, %v3784_v27 }
  0xad   : > { %3040 = vmatmul.msk.f32.gmra.mxu2 %vm321_vm0, %v3784_v27  ;;  %3056 = vmatmul.msk.f32.gmra.mxu3 %vm321_vm0, %v3784_v27 }
  0xb0   : > { %v4034_v6 = vpop.f32.mrf.mxu2  ;;  %v4036_v7 = vpop.f32.mrf.mxu3 }
  0xb1   : > { %v4038_v8 = vpop.f32.mrf.mxu0  ;;  %v4040_v9 = vpop.f32.mrf.mxu1 }
  0xb2   : > { %5974 = vst [vmem:[#allocation10_spill] sm:$0xff] %v4038_v8 }
  0xb3   : > { %5975 = vst [vmem:[#allocation11_spill] sm:$0xff] %v4040_v9  ;;  %v921_v9 = vld [vmem:[%s5918_s2 + $0xf8] sm:$0xff] }
  0xb4   : > { %3009 = vmatmul.msk.f32.gmra.mxu0 %vm321_vm0, %v3795_v28  ;;  %3025 = vmatmul.msk.f32.gmra.mxu1 %vm321_vm0, %v3795_v28 }
  0xb5   : > { %3041 = vmatmul.msk.f32.gmra.mxu2 %vm321_vm0, %v3795_v28  ;;  %3057 = vmatmul.msk.f32.gmra.mxu3 %vm321_vm0, %v3795_v28 }
  0xb6   : > { %1407 = vmatpush.msrb.mxu3 %v921_v9 }
  0xb8   : > { %v4059_v13 = vpop.f32.mrf.mxu2  ;;  %v4061_v14 = vpop.f32.mrf.mxu3 }
  0xb9   : > { %v4063_v15 = vpop.f32.mrf.mxu0  ;;  %v4065_v17 = vpop.f32.mrf.mxu1 }
  0xba   : > { %5976 = vst [vmem:[#allocation12_spill] sm:$0xff] %v4063_v15 }
  0xbb   : > { %5977 = vst [vmem:[#allocation13_spill] sm:$0xff] %v4065_v17 }
  0xbc   : > { %3010 = vmatmul.msk.f32.gmra.mxu0 %vm321_vm0, %v3818_v33  ;;  %3026 = vmatmul.msk.f32.gmra.mxu1 %vm321_vm0, %v3818_v33 }
  0xbd   : > { %3042 = vmatmul.msk.f32.gmra.mxu2 %vm321_vm0, %v3818_v33  ;;  %3058 = vmatmul.msk.f32.gmra.mxu3 %vm321_vm0, %v3818_v33 }
  0xc0   : > { %v4078_v19 = vpop.f32.mrf.mxu2  ;;  %v4080_v20 = vpop.f32.mrf.mxu3 }
  0xc1   : > { %v4082_v21 = vpop.f32.mrf.mxu0  ;;  %v4084_v22 = vpop.f32.mrf.mxu1 }
  0xc2   : > { %5978 = vst [vmem:[#allocation14_spill] sm:$0xff] %v4082_v21 }
  0xc3   : > { %5979 = vst [vmem:[#allocation15_spill] sm:$0xff] %v4084_v22 }
  0xc4   : > { %3011 = vmatmul.msk.f32.gmra.mxu0 %vm321_vm0, %v3829_v34  ;;  %3027 = vmatmul.msk.f32.gmra.mxu1 %vm321_vm0, %v3829_v34 }
  0xc5   : > { %3043 = vmatmul.msk.f32.gmra.mxu2 %vm321_vm0, %v3829_v34  ;;  %3059 = vmatmul.msk.f32.gmra.mxu3 %vm321_vm0, %v3829_v34 }
  0xc8   : > { %v4094_v23 = vpop.f32.mrf.mxu2  ;;  %v4096_v24 = vpop.f32.mrf.mxu3 }
  0xc9   : > { %v4098_v29 = vpop.f32.mrf.mxu0  ;;  %v4100_v30 = vpop.f32.mrf.mxu1 }
  0xca   : > { %5980 = vst [vmem:[#allocation16_spill] sm:$0xff] %v4098_v29  ;;  %v918_v29 = vld [vmem:[%s5918_s2 + $0xe0] sm:$0xff] }
  0xcb   : > { %5981 = vst [vmem:[#allocation17_spill] sm:$0xff] %v4100_v30  ;;  %v920_v30 = vld [vmem:[%s5918_s2 + $0xf0] sm:$0xff]  ;;  %1212 = vmatpush.msrb.mxu0 %v918_v29 }
  0xcc   : > { %3012 = vmatmul.msk.f32.gmra.mxu0 %vm321_vm0, %v3840_v35  ;;  %3028 = vmatmul.msk.f32.gmra.mxu1 %vm321_vm0, %v3840_v35 }
  0xcd   : > { %3044 = vmatmul.msk.f32.gmra.mxu2 %vm321_vm0, %v3840_v35  ;;  %3060 = vmatmul.msk.f32.gmra.mxu3 %vm321_vm0, %v3840_v35 }
  0xce   : > { %1342 = vmatpush.msrb.mxu2 %v920_v30 }
  0xd0   : > { %v4110_v31 = vpop.f32.mrf.mxu2  ;;  %v4112_v32 = vpop.f32.mrf.mxu3 }
  0xd1   : > { %v4114_v37 = vpop.f32.mrf.mxu0  ;;  %v4116_v38 = vpop.f32.mrf.mxu1 }
  0xd4   : > { %3013 = vmatmul.msk.f32.gmra.mxu0 %vm321_vm0, %v3851_v36  ;;  %3029 = vmatmul.msk.f32.gmra.mxu1 %vm321_vm0, %v3851_v36 }
  0xd5   : > { %3045 = vmatmul.msk.f32.gmra.mxu2 %vm321_vm0, %v3851_v36  ;;  %3061 = vmatmul.msk.f32.gmra.mxu3 %vm321_vm0, %v3851_v36 }
  0xd8   : > { %v4135_v46 = vpop.f32.mrf.mxu2  ;;  %v4137_v47 = vpop.f32.mrf.mxu3 }
  0xd9   : > { %v4139_v49 = vpop.f32.mrf.mxu0  ;;  %v4141_v54 = vpop.f32.mrf.mxu1 }
  0xdc   : > { %3014 = vmatmul.msk.f32.gmra.mxu0 %vm321_vm0, %v3874_v41  ;;  %3030 = vmatmul.msk.f32.gmra.mxu1 %vm321_vm0, %v3874_v41 }
  0xdd   : > { %3046 = vmatmul.msk.f32.gmra.mxu2 %vm321_vm0, %v3874_v41  ;;  %3062 = vmatmul.msk.f32.gmra.mxu3 %vm321_vm0, %v3874_v41 }
  0xe0   : > { %v4154_v56 = vpop.f32.mrf.mxu2  ;;  %v4156_v61 = vpop.f32.mrf.mxu3 }
  0xe1   : > { %v4158_v10 = vpop.f32.mrf.mxu0  ;;  %v4160_v11 = vpop.f32.mrf.mxu1 }
  0xe4   : > { %3015 = vmatmul.msk.f32.gmra.mxu0 %vm321_vm0, %v3885_v42  ;;  %3031 = vmatmul.msk.f32.gmra.mxu1 %vm321_vm0, %v3885_v42 }
  0xe5   : > { %3047 = vmatmul.msk.f32.gmra.mxu2 %vm321_vm0, %v3885_v42  ;;  %3063 = vmatmul.msk.f32.gmra.mxu3 %vm321_vm0, %v3885_v42 }
  0xe8   : > { %v4170_v12 = vpop.f32.mrf.mxu2  ;;  %v4172_v18 = vpop.f32.mrf.mxu3 }
  0xe9   : > { %v4174_v39 = vpop.f32.mrf.mxu0  ;;  %v4176_v40 = vpop.f32.mrf.mxu1 }
  0xec   : > { %3016 = vmatmul.msk.f32.gmra.mxu0 %vm321_vm0, %v3896_v43  ;;  %3032 = vmatmul.msk.f32.gmra.mxu1 %vm321_vm0, %v3896_v43 }
  0xed   : > { %3048 = vmatmul.msk.f32.gmra.mxu2 %vm321_vm0, %v3896_v43  ;;  %3064 = vmatmul.msk.f32.gmra.mxu3 %vm321_vm0, %v3896_v43 }
  0xf0   : > { %v4186_v45 = vpop.f32.mrf.mxu2  ;;  %v4188_v55 = vpop.f32.mrf.mxu3 }
  0xf1   : > { %v4190_v22 = vpop.f32.mrf.mxu0  ;;  %v4192_v21 = vpop.f32.mrf.mxu1 }
  0xf4   : > { %3017 = vmatmul.msk.f32.gmra.mxu0 %vm321_vm0, %v3907_v44  ;;  %3033 = vmatmul.msk.f32.gmra.mxu1 %vm321_vm0, %v3907_v44 }
  0xf5   : > { %3049 = vmatmul.msk.f32.gmra.mxu2 %vm321_vm0, %v3907_v44  ;;  %3065 = vmatmul.msk.f32.gmra.mxu3 %vm321_vm0, %v3907_v44 }
  0xf8   : > { %v4211_v8 = vpop.f32.mrf.mxu2  ;;  %v4213_v17 = vpop.f32.mrf.mxu3 }
  0xf9   : > { %v4215_v15 = vpop.f32.mrf.mxu0  ;;  %v4217_v1 = vpop.f32.mrf.mxu1 }
  0xfc   : > { %3018 = vmatmul.msk.f32.gmra.mxu0 %vm321_vm0, %v3927_v48  ;;  %3034 = vmatmul.msk.f32.gmra.mxu1 %vm321_vm0, %v3927_v48 }
  0xfd   : > { %3050 = vmatmul.msk.f32.gmra.mxu2 %vm321_vm0, %v3927_v48  ;;  %3066 = vmatmul.msk.f32.gmra.mxu3 %vm321_vm0, %v3927_v48 }
 0x100   : > { %v4230_v9 = vpop.f32.mrf.mxu2  ;;  %v4232_v29 = vpop.f32.mrf.mxu3 }
 0x101   : > { %v4234_v30 = vpop.f32.mrf.mxu0  ;;  %v4236_v5 = vpop.f32.mrf.mxu1 }
 0x102   : > { %5982 = vst [vmem:[#allocation18_spill] sm:$0xff] %v4234_v30 }
 0x103   : > { %5983 = vst [vmem:[#allocation19_spill] sm:$0xff] %v4236_v5 }
 0x104   : > { %3019 = vmatmul.msk.f32.gmra.mxu0 %vm321_vm0, %v3941_v50  ;;  %3035 = vmatmul.msk.f32.gmra.mxu1 %vm321_vm0, %v3941_v50 }
 0x105   : > { %3051 = vmatmul.msk.f32.gmra.mxu2 %vm321_vm0, %v3941_v50  ;;  %3067 = vmatmul.msk.f32.gmra.mxu3 %vm321_vm0, %v3941_v50 }
 0x108   : > { %v4246_v0 = vpop.f32.mrf.mxu2  ;;  %v4248_v4 = vpop.f32.mrf.mxu3 }
 0x109   : > { %5984 = vst [vmem:[#allocation20_spill] sm:$0xff] %v4246_v0  ;;  %v4250_v53 = vpop.f32.mrf.mxu0  ;;  %v4252_v52 = vpop.f32.mrf.mxu1 }
 0x10a   : > { %5985 = vst [vmem:[#allocation21_spill] sm:$0xff] %v4248_v4 }
 0x10b   : > { %5986 = vst [vmem:[#allocation22_spill] sm:$0xff] %v4250_v53 }
 0x10c   : > { %5987 = vst [vmem:[#allocation23_spill] sm:$0xff] %v4252_v52  ;;  %3020 = vmatmul.msk.f32.gmra.mxu0 %vm321_vm0, %v3952_v51  ;;  %3036 = vmatmul.msk.f32.gmra.mxu1 %vm321_vm0, %v3952_v51 }
 0x10d   : > { %3052 = vmatmul.msk.f32.gmra.mxu2 %vm321_vm0, %v3952_v51  ;;  %3068 = vmatmul.msk.f32.gmra.mxu3 %vm321_vm0, %v3952_v51 }
 0x110   : > { %v4262_v5 = vpop.f32.mrf.mxu2  ;;  %v4264_v0 = vpop.f32.mrf.mxu3 }
 0x111   : > { %5988 = vst [vmem:[#allocation24_spill] sm:$0xff] %v4262_v5  ;;  %v4266_v4 = vpop.f32.mrf.mxu0  ;;  %v4268_v53 = vpop.f32.mrf.mxu1 }
 0x112   : > { %5989 = vst [vmem:[#allocation25_spill] sm:$0xff] %v4264_v0  ;;  %v912_v0 = vld [vmem:[%s5918_s2 + $0xb0] sm:$0xff] }
 0x113   : > { %5990 = vst [vmem:[#allocation26_spill] sm:$0xff] %v4266_v4  ;;  %v913_v4 = vld [vmem:[%s5918_s2 + $0xb8] sm:$0xff]  ;;  %1343 = vmatpush.msrb.mxu2 %v912_v0 }
 0x114   : > { %5991 = vst [vmem:[#allocation27_spill] sm:$0xff] %v4268_v53  ;;  %3069 = vmatmul.msk.f32.vlgmr.msra.gmra.mxu0 %vm321_vm0, %v3727_v16  ;;  %3085 = vmatmul.msk.f32.vlgmr.msra.gmra.mxu1 %vm321_vm0, %v3727_v16  ;;  %v910_v53 = vld [vmem:[%s5918_s2 + $0xa0] sm:$0xff] }
 0x115   : > { %3101 = vmatmul.msk.f32.vlgmr.msra.gmra.mxu2 %vm321_vm0, %v3727_v16  ;;  %3117 = vmatmul.msk.f32.vlgmr.msra.gmra.mxu3 %vm321_vm0, %v3727_v16 }
 0x116   : > { %1213 = vmatpush.msrb.mxu0 %v910_v53  ;;  %1408 = vmatpush.msrb.mxu3 %v913_v4 }
 0x118   : > { %v4287_v5 = vpop.f32.mrf.mxu2  ;;  %v4289_v52 = vpop.f32.mrf.mxu3 }
 0x119   : > { %5992 = vst [vmem:[#allocation28_spill] sm:$0xff] %v4287_v5  ;;  %v4291_v30 = vpop.f32.mrf.mxu0  ;;  %v4293_v60 = vpop.f32.mrf.mxu1  ;;  %v903_v5 = vld [vmem:[%s5918_s2 + $0x68] sm:$0xff] }
 0x11a   : > { %5993 = vst [vmem:[#allocation29_spill] sm:$0xff] %v4289_v52  ;;  %1279 = vmatpush.msrb.mxu1 %v903_v5 }
 0x11b   : > { %5994 = vst [vmem:[#allocation30_spill] sm:$0xff] %v4291_v30 }
 0x11c   : > { %5995 = vst [vmem:[#allocation31_spill] sm:$0xff] %v4293_v60  ;;  %3070 = vmatmul.msk.f32.gmra.mxu0 %vm321_vm0, %v3762_v25  ;;  %3086 = vmatmul.msk.f32.gmra.mxu1 %vm321_vm0, %v3762_v25 }
 0x11d   : > { %3102 = vmatmul.msk.f32.gmra.mxu2 %vm321_vm0, %v3762_v25  ;;  %3118 = vmatmul.msk.f32.gmra.mxu3 %vm321_vm0, %v3762_v25 }
 0x120   : > { %v4306_v53 = vpop.f32.mrf.mxu2  ;;  %v4308_v4 = vpop.f32.mrf.mxu3 }
 0x121   : > { %5996 = vst [vmem:[#allocation32_spill] sm:$0xff] %v4306_v53  ;;  %v4310_v0 = vpop.f32.mrf.mxu0  ;;  %v4312_v60 = vpop.f32.mrf.mxu1 }
 0x122   : > { %5997 = vst [vmem:[#allocation33_spill] sm:$0xff] %v4308_v4 }
 0x123   : > { %5998 = vst [vmem:[#allocation34_spill] sm:$0xff] %v4310_v0 }
 0x124   : > { %5999 = vst [vmem:[#allocation35_spill] sm:$0xff] %v4312_v60  ;;  %3071 = vmatmul.msk.f32.gmra.mxu0 %vm321_vm0, %v3773_v26  ;;  %3087 = vmatmul.msk.f32.gmra.mxu1 %vm321_vm0, %v3773_v26 }
 0x125   : > { %3103 = vmatmul.msk.f32.gmra.mxu2 %vm321_vm0, %v3773_v26  ;;  %3119 = vmatmul.msk.f32.gmra.mxu3 %vm321_vm0, %v3773_v26 }
 0x128   : > { %v4322_v59 = vpop.f32.mrf.mxu2  ;;  %v4324_v53 = vpop.f32.mrf.mxu3 }
 0x129   : > { %6000 = vst [vmem:[#allocation36_spill] sm:$0xff] %v4322_v59  ;;  %v4326_v4 = vpop.f32.mrf.mxu0  ;;  %v4328_v0 = vpop.f32.mrf.mxu1 }
 0x12a   : > { %6001 = vst [vmem:[#allocation37_spill] sm:$0xff] %v4324_v53 }
 0x12b   : > { %6002 = vst [vmem:[#allocation38_spill] sm:$0xff] %v4326_v4 }
 0x12c   : > { %6003 = vst [vmem:[#allocation39_spill] sm:$0xff] %v4328_v0  ;;  %3072 = vmatmul.msk.f32.gmra.mxu0 %vm321_vm0, %v3784_v27  ;;  %3088 = vmatmul.msk.f32.gmra.mxu1 %vm321_vm0, %v3784_v27 }
 0x12d   : > { %3104 = vmatmul.msk.f32.gmra.mxu2 %vm321_vm0, %v3784_v27  ;;  %3120 = vmatmul.msk.f32.gmra.mxu3 %vm321_vm0, %v3784_v27 }
 0x130   : > { %v4338_v60 = vpop.f32.mrf.mxu2  ;;  %v4340_v59 = vpop.f32.mrf.mxu3 }
 0x131   : > { %6004 = vst [vmem:[#allocation40_spill] sm:$0xff] %v4338_v60  ;;  %v4342_v53 = vpop.f32.mrf.mxu0  ;;  %v4344_v4 = vpop.f32.mrf.mxu1 }
 0x132   : > { %6005 = vst [vmem:[#allocation41_spill] sm:$0xff] %v4340_v59  ;;  %v904_v59 = vld [vmem:[%s5918_s2 + $0x70] sm:$0xff] }
 0x133   : > { %6006 = vst [vmem:[#allocation42_spill] sm:$0xff] %v4342_v53  ;;  %v905_v53 = vld [vmem:[%s5918_s2 + $0x78] sm:$0xff]  ;;  %1344 = vmatpush.msrb.mxu2 %v904_v59 }
 0x134   : > { %6007 = vst [vmem:[#allocation43_spill] sm:$0xff] %v4344_v4  ;;  %3073 = vmatmul.msk.f32.gmra.mxu0 %vm321_vm0, %v3795_v28  ;;  %3089 = vmatmul.msk.f32.gmra.mxu1 %vm321_vm0, %v3795_v28  ;;  %v902_v4 = vld [vmem:[%s5918_s2 + $0x60] sm:$0xff] }
 0x135   : > { %3105 = vmatmul.msk.f32.gmra.mxu2 %vm321_vm0, %v3795_v28  ;;  %3121 = vmatmul.msk.f32.gmra.mxu3 %vm321_vm0, %v3795_v28 }
 0x136   : > { %1214 = vmatpush.msrb.mxu0 %v902_v4  ;;  %1409 = vmatpush.msrb.mxu3 %v905_v53 }
 0x138   : > { %v4363_v60 = vpop.f32.mrf.mxu2  ;;  %v4365_v0 = vpop.f32.mrf.mxu3 }
 0x139   : > { %6008 = vst [vmem:[#allocation44_spill] sm:$0xff] %v4363_v60  ;;  %v4367_v30 = vpop.f32.mrf.mxu0  ;;  %v4369_v52 = vpop.f32.mrf.mxu1 }
 0x13a   : > { %6009 = vst [vmem:[#allocation45_spill] sm:$0xff] %v4365_v0 }
 0x13b   : > { %6010 = vst [vmem:[#allocation46_spill] sm:$0xff] %v4367_v30 }
 0x13c   : > { %6011 = vst [vmem:[#allocation47_spill] sm:$0xff] %v4369_v52  ;;  %3074 = vmatmul.msk.f32.gmra.mxu0 %vm321_vm0, %v3818_v33  ;;  %3090 = vmatmul.msk.f32.gmra.mxu1 %vm321_vm0, %v3818_v33 }
 0x13d   : > { %3106 = vmatmul.msk.f32.gmra.mxu2 %vm321_vm0, %v3818_v33  ;;  %3122 = vmatmul.msk.f32.gmra.mxu3 %vm321_vm0, %v3818_v33 }
 0x140   : > { %v4382_v53 = vpop.f32.mrf.mxu2  ;;  %v4384_v4 = vpop.f32.mrf.mxu3 }
 0x141   : > { %6012 = vst [vmem:[#allocation48_spill] sm:$0xff] %v4382_v53  ;;  %v4386_v59 = vpop.f32.mrf.mxu0  ;;  %v4388_v52 = vpop.f32.mrf.mxu1 }
 0x142   : > { %6013 = vst [vmem:[#allocation49_spill] sm:$0xff] %v4384_v4 }
 0x143   : > { %6014 = vst [vmem:[#allocation50_spill] sm:$0xff] %v4386_v59 }
 0x144   : > { %6015 = vst [vmem:[#allocation51_spill] sm:$0xff] %v4388_v52  ;;  %3075 = vmatmul.msk.f32.gmra.mxu0 %vm321_vm0, %v3829_v34  ;;  %3091 = vmatmul.msk.f32.gmra.mxu1 %vm321_vm0, %v3829_v34  ;;  %v895_v52 = vld [vmem:[%s5918_s2 + $0x28] sm:$0xff] }
 0x145   : > { %3107 = vmatmul.msk.f32.gmra.mxu2 %vm321_vm0, %v3829_v34  ;;  %3123 = vmatmul.msk.f32.gmra.mxu3 %vm321_vm0, %v3829_v34 }
 0x146   : > { %1280 = vmatpush.msrb.mxu1 %v895_v52 }
 0x148   : > { %v4398_v5 = vpop.f32.mrf.mxu2  ;;  %v4400_v53 = vpop.f32.mrf.mxu3 }
 0x149   : > { %6016 = vst [vmem:[#allocation52_spill] sm:$0xff] %v4398_v5  ;;  %v4402_v4 = vpop.f32.mrf.mxu0  ;;  %v4404_v59 = vpop.f32.mrf.mxu1 }
 0x14a   : > { %6017 = vst [vmem:[#allocation53_spill] sm:$0xff] %v4400_v53 }
 0x14b   : > { %6018 = vst [vmem:[#allocation54_spill] sm:$0xff] %v4402_v4 }
 0x14c   : > { %6019 = vst [vmem:[#allocation55_spill] sm:$0xff] %v4404_v59  ;;  %3076 = vmatmul.msk.f32.gmra.mxu0 %vm321_vm0, %v3840_v35  ;;  %3092 = vmatmul.msk.f32.gmra.mxu1 %vm321_vm0, %v3840_v35 }
 0x14d   : > { %3108 = vmatmul.msk.f32.gmra.mxu2 %vm321_vm0, %v3840_v35  ;;  %3124 = vmatmul.msk.f32.gmra.mxu3 %vm321_vm0, %v3840_v35  ;;  %v896_v35 = vld [vmem:[%s5918_s2 + $0x30] sm:$0xff] }
 0x14e   : > { %1345 = vmatpush.msrb.mxu2 %v896_v35 }
 0x150   : > { %v4414_v34 = vpop.f32.mrf.mxu2  ;;  %v4416_v5 = vpop.f32.mrf.mxu3 }
 0x151   : > { %6020 = vst [vmem:[#allocation56_spill] sm:$0xff] %v4414_v34  ;;  %v4418_v53 = vpop.f32.mrf.mxu0  ;;  %v4420_v4 = vpop.f32.mrf.mxu1 }
 0x152   : > { %6021 = vst [vmem:[#allocation57_spill] sm:$0xff] %v4416_v5 }
 0x153   : > { %6022 = vst [vmem:[#allocation58_spill] sm:$0xff] %v4418_v53  ;;  %v897_v53 = vld [vmem:[%s5918_s2 + $0x38] sm:$0xff] }
 0x154   : > { %6023 = vst [vmem:[#allocation59_spill] sm:$0xff] %v4420_v4  ;;  %3077 = vmatmul.msk.f32.gmra.mxu0 %vm321_vm0, %v3851_v36  ;;  %3093 = vmatmul.msk.f32.gmra.mxu1 %vm321_vm0, %v3851_v36  ;;  %v894_v4 = vld [vmem:[%s5918_s2 + $0x20] sm:$0xff] }
 0x155   : > { %3109 = vmatmul.msk.f32.gmra.mxu2 %vm321_vm0, %v3851_v36  ;;  %3125 = vmatmul.msk.f32.gmra.mxu3 %vm321_vm0, %v3851_v36 }
 0x156   : > { %1215 = vmatpush.msrb.mxu0 %v894_v4  ;;  %1410 = vmatpush.msrb.mxu3 %v897_v53 }
 0x158   : > { %v4439_v5 = vpop.f32.mrf.mxu2  ;;  %v4441_v34 = vpop.f32.mrf.mxu3 }
 0x159   : > { %6024 = vst [vmem:[#allocation60_spill] sm:$0xff] %v4439_v5  ;;  %v4443_v36 = vpop.f32.mrf.mxu0  ;;  %v4445_v59 = vpop.f32.mrf.mxu1 }
 0x15a   : > { %6025 = vst [vmem:[#allocation61_spill] sm:$0xff] %v4441_v34 }
 0x15b   : > { %6026 = vst [vmem:[#allocation62_spill] sm:$0xff] %v4443_v36 }
 0x15c   : > { %6027 = vst [vmem:[#allocation63_spill] sm:$0xff] %v4445_v59  ;;  %3078 = vmatmul.msk.f32.gmra.mxu0 %vm321_vm0, %v3874_v41  ;;  %3094 = vmatmul.msk.f32.gmra.mxu1 %vm321_vm0, %v3874_v41 }
 0x15d   : > { %3110 = vmatmul.msk.f32.gmra.mxu2 %vm321_vm0, %v3874_v41  ;;  %3126 = vmatmul.msk.f32.gmra.mxu3 %vm321_vm0, %v3874_v41 }
 0x160   : > { %v4458_v53 = vpop.f32.mrf.mxu2  ;;  %v4460_v4 = vpop.f32.mrf.mxu3 }
 0x161   : > { %6028 = vst [vmem:[#allocation64_spill] sm:$0xff] %v4458_v53  ;;  %v4462_v35 = vpop.f32.mrf.mxu0  ;;  %v4464_v59 = vpop.f32.mrf.mxu1 }
 0x162   : > { %6029 = vst [vmem:[#allocation65_spill] sm:$0xff] %v4460_v4 }
 0x163   : > { %6030 = vst [vmem:[#allocation66_spill] sm:$0xff] %v4462_v35 }
 0x164   : > { %6031 = vst [vmem:[#allocation67_spill] sm:$0xff] %v4464_v59  ;;  %3079 = vmatmul.msk.f32.gmra.mxu0 %vm321_vm0, %v3885_v42  ;;  %3095 = vmatmul.msk.f32.gmra.mxu1 %vm321_vm0, %v3885_v42  ;;  %v3486_v59 = vld [vmem:[%s5921_s5 + $0x78] sm:$0xff] }
 0x165   : > { %3111 = vmatmul.msk.f32.gmra.mxu2 %vm321_vm0, %v3885_v42  ;;  %3127 = vmatmul.msk.f32.gmra.mxu3 %vm321_vm0, %v3885_v42 }
 0x166   : > { %2213 = vmatpush.bf16.msra.mxu1 %v3486_v59  ;;  %v3477_v59 = vld [vmem:[%s5921_s5 + $0x30] sm:$0xff] }
 0x168   : > { %v4474_v41 = vpop.f32.mrf.mxu2  ;;  %v4476_v52 = vpop.f32.mrf.mxu3 }
 0x169   : > { %6032 = vst [vmem:[#allocation68_spill] sm:$0xff] %v4474_v41  ;;  %v4478_v4 = vpop.f32.mrf.mxu0  ;;  %v4480_v35 = vpop.f32.mrf.mxu1 }
 0x16a   : > { %6033 = vst [vmem:[#allocation69_spill] sm:$0xff] %v4476_v52 }
 0x16b   : > { %6034 = vst [vmem:[#allocation70_spill] sm:$0xff] %v4478_v4 }
 0x16c   : > { %6035 = vst [vmem:[#allocation71_spill] sm:$0xff] %v4480_v35  ;;  %3080 = vmatmul.msk.f32.gmra.mxu0 %vm321_vm0, %v3896_v43  ;;  %3096 = vmatmul.msk.f32.gmra.mxu1 %vm321_vm0, %v3896_v43 }
 0x16d   : > { %3112 = vmatmul.msk.f32.gmra.mxu2 %vm321_vm0, %v3896_v43  ;;  %3128 = vmatmul.msk.f32.gmra.mxu3 %vm321_vm0, %v3896_v43  ;;  %v3494_v43 = vld [vmem:[%s5921_s5 + $0xb8] sm:$0xff] }
 0x16e   : > { %2262 = vmatpush.bf16.msra.mxu2 %v3494_v43 }
 0x170   : > { %v4490_v42 = vpop.f32.mrf.mxu2  ;;  %v4492_v41 = vpop.f32.mrf.mxu3 }
 0x171   : > { %6036 = vst [vmem:[#allocation72_spill] sm:$0xff] %v4490_v42  ;;  %v4494_v52 = vpop.f32.mrf.mxu0  ;;  %v4496_v4 = vpop.f32.mrf.mxu1 }
 0x172   : > { %6037 = vst [vmem:[#allocation73_spill] sm:$0xff] %v4492_v41 }
 0x173   : > { %6038 = vst [vmem:[#allocation74_spill] sm:$0xff] %v4494_v52  ;;  %v3502_v52 = vld [vmem:[%s5921_s5 + $0xf8] sm:$0xff] }
 0x174   : > { %6039 = vst [vmem:[#allocation75_spill] sm:$0xff] %v4496_v4  ;;  %3081 = vmatmul.msk.f32.gmra.mxu0 %vm321_vm0, %v3907_v44  ;;  %3097 = vmatmul.msk.f32.gmra.mxu1 %vm321_vm0, %v3907_v44  ;;  %v3478_v4 = vld [vmem:[%s5921_s5 + $0x38] sm:$0xff] }
 0x175   : > { %3113 = vmatmul.msk.f32.gmra.mxu2 %vm321_vm0, %v3907_v44  ;;  %3129 = vmatmul.msk.f32.gmra.mxu3 %vm321_vm0, %v3907_v44 }
 0x176   : > { %2164 = vmatpush.bf16.msra.mxu0 %v3478_v4  ;;  %2311 = vmatpush.bf16.msra.mxu3 %v3502_v52 }
 0x178   : > { %v4515_v41 = vpop.f32.mrf.mxu2  ;;  %v4517_v42 = vpop.f32.mrf.mxu3 }
 0x179   : > { %6040 = vst [vmem:[#allocation76_spill] sm:$0xff] %v4515_v41  ;;  %v4519_v44 = vpop.f32.mrf.mxu0  ;;  %v4521_v35 = vpop.f32.mrf.mxu1  ;;  %v3500_v41 = vld [vmem:[%s5921_s5 + $0xe8] sm:$0xff] }
 0x17a   : > { %6041 = vst [vmem:[#allocation77_spill] sm:$0xff] %v4517_v42  ;;  %2165 = vmatpush.bf16.msra.mxu0 %v3477_v59  ;;  %v3476_v42 = vld [vmem:[%s5921_s5 + $0x28] sm:$0xff] }
 0x17b   : > { %6042 = vst [vmem:[#allocation78_spill] sm:$0xff] %v4519_v44  ;;  %v3485_v44 = vld [vmem:[%s5921_s5 + $0x70] sm:$0xff] }
 0x17c   : > { %6043 = vst [vmem:[#allocation79_spill] sm:$0xff] %v4521_v35  ;;  %3082 = vmatmul.msk.f32.gmra.mxu0 %vm321_vm0, %v3927_v48  ;;  %3098 = vmatmul.msk.f32.gmra.mxu1 %vm321_vm0, %v3927_v48 }
 0x17d   : > { %3114 = vmatmul.msk.f32.gmra.mxu2 %vm321_vm0, %v3927_v48  ;;  %3130 = vmatmul.msk.f32.gmra.mxu3 %vm321_vm0, %v3927_v48  ;;  %v3493_v48 = vld [vmem:[%s5921_s5 + $0xb0] sm:$0xff] }
 0x17e   : > { %2263 = vmatpush.bf16.msra.mxu2 %v3493_v48  ;;  %2214 = vmatpush.bf16.msra.mxu1 %v3485_v44 }
 0x17f   : > { %2166 = vmatpush.bf16.msra.mxu0 %v3476_v42 }
 0x180   : > { %v4534_v4 = vpop.f32.mrf.mxu2  ;;  %v4536_v52 = vpop.f32.mrf.mxu3 }
 0x181   : > { %6044 = vst [vmem:[#allocation80_spill] sm:$0xff] %v4534_v4  ;;  %v4538_v43 = vpop.f32.mrf.mxu0  ;;  %v4540_v35 = vpop.f32.mrf.mxu1 }
 0x182   : > { %6045 = vst [vmem:[#allocation81_spill] sm:$0xff] %v4536_v52 }
 0x183   : > { %6046 = vst [vmem:[#allocation82_spill] sm:$0xff] %v4538_v43 }
 0x184   : > { %6047 = vst [vmem:[#allocation83_spill] sm:$0xff] %v4540_v35  ;;  %3083 = vmatmul.msk.f32.gmra.mxu0 %vm321_vm0, %v3941_v50  ;;  %3099 = vmatmul.msk.f32.gmra.mxu1 %vm321_vm0, %v3941_v50  ;;  %v3501_v35 = vld [vmem:[%s5921_s5 + $0xf0] sm:$0xff] }
 0x185   : > { %3115 = vmatmul.msk.f32.gmra.mxu2 %vm321_vm0, %v3941_v50  ;;  %3131 = vmatmul.msk.f32.gmra.mxu3 %vm321_vm0, %v3941_v50 }
 0x186   : > { %2312 = vmatpush.bf16.msra.mxu3 %v3501_v35 }
 0x188   : > { %v4559_v43 = vpop.f32.mrf.mxu2  ;;  %v4561_v52 = vpop.f32.mrf.mxu3 }
 0x189   : > { %6048 = vst [vmem:[#allocation84_spill] sm:$0xff] %v4559_v43  ;;  %v4563_v50 = vpop.f32.mrf.mxu0  ;;  %v4565_v4 = vpop.f32.mrf.mxu1  ;;  %v3492_v43 = vld [vmem:[%s5921_s5 + $0xa8] sm:$0xff] }
 0x18a   : > { %6049 = vst [vmem:[#allocation85_spill] sm:$0xff] %v4561_v52  ;;  %2264 = vmatpush.bf16.msra.mxu2 %v3492_v43  ;;  %2313 = vmatpush.bf16.msra.mxu3 %v3500_v41  ;;  %v3484_v41 = vld [vmem:[%s5921_s5 + $0x68] sm:$0xff] }
 0x18b   : > { %6050 = vst [vmem:[#allocation86_spill] sm:$0xff] %v4563_v50  ;;  %v4589_v50 = vld [vmem:[%s5919_s3] sm:$0xff]  ;;  %2215 = vmatpush.bf16.msra.mxu1 %v3484_v41 }
 0x18c   : > { %6051 = vst [vmem:[#allocation87_spill] sm:$0xff] %v4565_v4  ;;  %3084 = vmatmul.msk.f32.gmra.mxu0 %vm321_vm0, %v3952_v51  ;;  %3100 = vmatmul.msk.f32.gmra.mxu1 %vm321_vm0, %v3952_v51  ;;  %v4592_v52 = vperm.slane %v4589_v50, 2  ;;  %v4604_v44 = vperm.slane %v4589_v50, 3  ;;  %v3491_v41 = vld [vmem:[%s5921_s5 + $0xa0] sm:$0xff] }
 0x18d   : > { %3116 = vmatmul.msk.f32.gmra.mxu2 %vm321_vm0, %v3952_v51  ;;  %3132 = vmatmul.msk.f32.gmra.mxu3 %vm321_vm0, %v3952_v51  ;;  %v4597_v51 = vld [vmem:[%s5920_s4] sm:$0xff] }
 0x18e   : > { %v518_v36 = vadd.f32 %v3983_v57, %v4592_v52  ;;  %v583_v34 = vadd.f32 %v3985_v58, %v4604_v44  ;;  %2265 = vmatpush.bf16.msra.mxu2 %v3491_v41 }
 0x190   : > { %v4578_v35 = vpop.f32.mrf.mxu2  ;;  %v4580_v48 = vpop.f32.mrf.mxu3 }
 0x191   : > { %6052 = vst [vmem:[#allocation88_spill] sm:$0xff] %v4578_v35  ;;  %v4582_v59 = vpop.f32.mrf.mxu0  ;;  %v4584_v4 = vpop.f32.mrf.mxu1  ;;  %v4614_v35 = vperm.slane %v4597_v51, 3 }
 0x192   : > { %6053 = vst [vmem:[#allocation89_spill] sm:$0xff] %v4580_v48  ;;  %v4611_v48 = vperm.slane %v4597_v51, 2 }
 0x193   : > { %6054 = vst [vmem:[#allocation90_spill] sm:$0xff] %v4584_v4 }
 0x194   : > { %3133 = vmatmul.msk.f32.vlgmr.msrb.gmra.mxu0 %vm321_vm0, %v3727_v16  ;;  %3149 = vmatmul.msk.f32.vlgmr.msrb.gmra.mxu1 %vm321_vm0, %v3727_v16 }
 0x195   : > { %3165 = vmatmul.msk.f32.vlgmr.msrb.gmra.mxu2 %vm321_vm0, %v3727_v16  ;;  %3181 = vmatmul.msk.f32.vlgmr.msrb.gmra.mxu3 %vm321_vm0, %v3727_v16 }
 0x198   : > { %v1087_v16 = vpop.f32.mrf.mxu2  ;;  %v1152_v53 = vpop.f32.mrf.mxu3 }
 0x199   : > { %v1088_v5 = vadd.f32 %v1087_v16, %v4611_v48  ;;  %v1153_v30 = vadd.f32 %v1152_v53, %v4614_v35  ;;  %v4631_v0 = vpop.f32.mrf.mxu0  ;;  %v4633_v60 = vpop.f32.mrf.mxu1 }
 0x19b   : > { %v4635_v4 = vmul.f32 %v1088_v5, %v518_v36  ;;  %v4637_v42 = vmul.f32 %v1153_v30, %v583_v34  ;;  %v521_v30 = vadd.f32 %v4002_v62, %v4592_v52  ;;  %v586_v5 = vadd.f32 %v4004_v63, %v4604_v44 }
 0x19c   : > { %3134 = vmatmul.msk.f32.gmra.mxu0 %vm321_vm0, %v3762_v25  ;;  %3150 = vmatmul.msk.f32.gmra.mxu1 %vm321_vm0, %v3762_v25 }
 0x19d   : > { %3166 = vmatmul.msk.f32.gmra.mxu2 %vm321_vm0, %v3762_v25  ;;  %3182 = vmatmul.msk.f32.gmra.mxu3 %vm321_vm0, %v3762_v25 }
 0x1a0   : > { %v1090_v57 = vpop.f32.mrf.mxu2  ;;  %v1155_v58 = vpop.f32.mrf.mxu3 }
 0x1a1   : > { %v1091_v34 = vadd.f32 %v1090_v57, %v4611_v48  ;;  %v1156_v36 = vadd.f32 %v1155_v58, %v4614_v35  ;;  %v4656_v53 = vpop.f32.mrf.mxu0  ;;  %v4658_v43 = vpop.f32.mrf.mxu1  ;;  %v3475_v57 = vld [vmem:[%s5921_s5 + $0x20] sm:$0xff] }
 0x1a2   : > { %6055 = vst [vmem:[#allocation91_spill] sm:$0xff] %v4656_v53  ;;  %v3499_v58 = vld [vmem:[%s5921_s5 + $0xe0] sm:$0xff]  ;;  %2167 = vmatpush.bf16.msra.mxu0 %v3475_v57 }
 0x1a3   : > { %6056 = vst [vmem:[#allocation92_spill] sm:$0xff] %v4658_v43  ;;  %v4660_v16 = vmul.f32 %v1091_v34, %v521_v30  ;;  %v4662_v25 = vmul.f32 %v1156_v36, %v586_v5  ;;  %2314 = vmatpush.bf16.msra.mxu3 %v3499_v58  ;;  %v589_v34 = vadd.f32 %v4020_v3, %v4604_v44  ;;  %v3483_v57 = vld [vmem:[%s5921_s5 + $0x60] sm:$0xff] }
 0x1a4   : > { %3135 = vmatmul.msk.f32.gmra.mxu0 %vm321_vm0, %v3773_v26  ;;  %3151 = vmatmul.msk.f32.gmra.mxu1 %vm321_vm0, %v3773_v26  ;;  %v592_v58 = vadd.f32 %v4036_v7, %v4604_v44  ;;  %v3474_v7 = vld [vmem:[%s5921_s5 + $0x18] sm:$0xff] }
 0x1a5   : > { %3167 = vmatmul.msk.f32.gmra.mxu2 %vm321_vm0, %v3773_v26  ;;  %3183 = vmatmul.msk.f32.gmra.mxu3 %vm321_vm0, %v3773_v26  ;;  %v524_v26 = vadd.f32 %v4018_v2, %v4592_v52 }
 0x1a6   : > { %2216 = vmatpush.bf16.msra.mxu1 %v3483_v57  ;;  %v3498_v57 = vld [vmem:[%s5921_s5 + $0xd8] sm:$0xff]  ;;  %2168 = vmatpush.bf16.msra.mxu0 %v3474_v7 }
 0x1a7   : > { %2315 = vmatpush.bf16.msra.mxu3 %v3498_v57  ;;  %v3482_v7 = vld [vmem:[%s5921_s5 + $0x58] sm:$0xff]  ;;  %v598_v57 = vadd.f32 %v4080_v20, %v4604_v44  ;;  %v3473_v20 = vld [vmem:[%s5921_s5 + $0x10] sm:$0xff] }
 0x1a8   : > { %v1093_v30 = vpop.f32.mrf.mxu2  ;;  %v1158_v5 = vpop.f32.mrf.mxu3 }
 0x1a9   : > { %v1094_v36 = vadd.f32 %v1093_v30, %v4611_v48  ;;  %v1159_v63 = vadd.f32 %v1158_v5, %v4614_v35  ;;  %v4691_v62 = vpop.f32.mrf.mxu0  ;;  %v4693_v43 = vpop.f32.mrf.mxu1 }
 0x1aa   : > { %2217 = vmatpush.bf16.msra.mxu1 %v3482_v7  ;;  %v3607_v7 = vld [vmem:[%s3724_s13 + $0x30] sm:$0xff]  ;;  %2169 = vmatpush.bf16.msra.mxu0 %v3473_v20 }
 0x1ab   : > { %v4695_v53 = vmul.f32 %v1094_v36, %v524_v26  ;;  %v4697_v41 = vmul.f32 %v1159_v63, %v589_v34  ;;  %v527_v63 = vadd.f32 %v4034_v6, %v4592_v52  ;;  %v3490_v6 = vld [vmem:[%s5921_s5 + $0x98] sm:$0xff]  ;;  %v3481_v20 = vld [vmem:[%s5921_s5 + $0x50] sm:$0xff] }
 0x1ac   : > { %3136 = vmatmul.msk.f32.gmra.mxu0 %vm321_vm0, %v3784_v27  ;;  %3152 = vmatmul.msk.f32.gmra.mxu1 %vm321_vm0, %v3784_v27 }
 0x1ad   : > { %3168 = vmatmul.msk.f32.gmra.mxu2 %vm321_vm0, %v3784_v27  ;;  %3184 = vmatmul.msk.f32.gmra.mxu3 %vm321_vm0, %v3784_v27 }
 0x1ae   : > { %2266 = vmatpush.bf16.msra.mxu2 %v3490_v6  ;;  %2218 = vmatpush.bf16.msra.mxu1 %v3481_v20  ;;  %v3472_v20 = vld [vmem:[%s5921_s5 + $0x8] sm:$0xff] }
 0x1af   : > { %2170 = vmatpush.bf16.msra.mxu0 %v3472_v20 }
 0x1b0   : > { %v1096_v2 = vpop.f32.mrf.mxu2  ;;  %v1161_v3 = vpop.f32.mrf.mxu3 }
 0x1b1   : > { %v1097_v30 = vadd.f32 %v1096_v2, %v4611_v48  ;;  %v1162_v5 = vadd.f32 %v1161_v3, %v4614_v35  ;;  %v4716_v26 = vpop.f32.mrf.mxu0  ;;  %v4718_v34 = vpop.f32.mrf.mxu1 }
 0x1b2   : > { %6057 = vst [vmem:[#allocation93_spill] sm:$0xff] %v4716_v26 }
 0x1b3   : > { %6058 = vst [vmem:[#allocation94_spill] sm:$0xff] %v4718_v34  ;;  %v4720_v36 = vmul.f32 %v1097_v30, %v527_v63  ;;  %v4722_v27 = vmul.f32 %v1162_v5, %v592_v58  ;;  %v530_v58 = vadd.f32 %v4059_v13, %v4592_v52  ;;  %v595_v30 = vadd.f32 %v4061_v14, %v4604_v44 }
 0x1b4   : > { %3137 = vmatmul.msk.f32.gmra.mxu0 %vm321_vm0, %v3795_v28  ;;  %3153 = vmatmul.msk.f32.gmra.mxu1 %vm321_vm0, %v3795_v28 }
 0x1b5   : > { %3169 = vmatmul.msk.f32.gmra.mxu2 %vm321_vm0, %v3795_v28  ;;  %3185 = vmatmul.msk.f32.gmra.mxu3 %vm321_vm0, %v3795_v28 }
 0x1b8   : > { %v1099_v28 = vpop.f32.mrf.mxu2  ;;  %v1164_v63 = vpop.f32.mrf.mxu3 }
 0x1b9   : > { %v1100_v5 = vadd.f32 %v1099_v28, %v4611_v48  ;;  %v1165_v34 = vadd.f32 %v1164_v63, %v4614_v35  ;;  %v4751_v26 = vpop.f32.mrf.mxu0  ;;  %v4753_v2 = vpop.f32.mrf.mxu1 }
 0x1ba   : > { %6059 = vst [vmem:[#allocation95_spill] sm:$0xff] %v4753_v2 }
 0x1bb   : > { %v4755_v3 = vmul.f32 %v1100_v5, %v530_v58  ;;  %v4757_v6 = vmul.f32 %v1165_v34, %v595_v30  ;;  %v533_v34 = vadd.f32 %v4078_v19, %v4592_v52  ;;  %v3489_v19 = vld [vmem:[%s5921_s5 + $0x90] sm:$0xff] }
 0x1bc   : > { %3138 = vmatmul.msk.f32.gmra.mxu0 %vm321_vm0, %v3818_v33  ;;  %3154 = vmatmul.msk.f32.gmra.mxu1 %vm321_vm0, %v3818_v33 }
 0x1bd   : > { %6060 = vst [vmem:[#allocation96_spill] sm:$0xff] %v4755_v3  ;;  %3170 = vmatmul.msk.f32.gmra.mxu2 %vm321_vm0, %v3818_v33  ;;  %3186 = vmatmul.msk.f32.gmra.mxu3 %vm321_vm0, %v3818_v33 }
 0x1be   : > { %6061 = vst [vmem:[#allocation97_spill] sm:$0xff] %v4757_v6  ;;  %2267 = vmatpush.bf16.msra.mxu2 %v3489_v19 }
 0x1c0   : > { %v1102_v13 = vpop.f32.mrf.mxu2  ;;  %v1167_v14 = vpop.f32.mrf.mxu3 }
 0x1c1   : > { %v1103_v28 = vadd.f32 %v1102_v13, %v4611_v48  ;;  %v1168_v63 = vadd.f32 %v1167_v14, %v4614_v35  ;;  %v4776_v58 = vpop.f32.mrf.mxu0  ;;  %v4778_v30 = vpop.f32.mrf.mxu1  ;;  %v3497_v13 = vld [vmem:[%s5921_s5 + $0xd0] sm:$0xff] }
 0x1c2   : > { %6062 = vst [vmem:[#allocation98_spill] sm:$0xff] %v4776_v58  ;;  %2316 = vmatpush.bf16.msra.mxu3 %v3497_v13  ;;  %v604_v13 = vadd.f32 %v4112_v32, %v4604_v44  ;;  %v3488_v32 = vld [vmem:[%s5921_s5 + $0x88] sm:$0xff] }
 0x1c3   : > { %6063 = vst [vmem:[#allocation99_spill] sm:$0xff] %v4778_v30  ;;  %v4780_v5 = vmul.f32 %v1103_v28, %v533_v34  ;;  %v4782_v33 = vmul.f32 %v1168_v63, %v598_v57  ;;  %v536_v63 = vadd.f32 %v4094_v23, %v4592_v52  ;;  %v3608_v23 = vld [vmem:[%s3724_s13 + $0x38] sm:$0xff]  ;;  %2268 = vmatpush.bf16.msra.mxu2 %v3488_v32 }
 0x1c4   : > { %3139 = vmatmul.msk.f32.gmra.mxu0 %vm321_vm0, %v3607_v7  ;;  %3155 = vmatmul.msk.f32.gmra.mxu1 %vm321_vm0, %v3607_v7 }
 0x1c5   : > { %6064 = vst [vmem:[#allocation100_spill] sm:$0xff] %v4780_v5  ;;  %3171 = vmatmul.msk.f32.gmra.mxu2 %vm321_vm0, %v3607_v7  ;;  %3187 = vmatmul.msk.f32.gmra.mxu3 %vm321_vm0, %v3607_v7  ;;  %v601_v7 = vadd.f32 %v4096_v24, %v4604_v44 }
 0x1c6   : > { %6065 = vst [vmem:[#allocation101_spill] sm:$0xff] %v4782_v33 }
 0x1c8   : > { %v1105_v57 = vpop.f32.mrf.mxu2  ;;  %v1170_v28 = vpop.f32.mrf.mxu3 }
 0x1c9   : > { %v1106_v30 = vadd.f32 %v1105_v57, %v4611_v48  ;;  %v1171_v58 = vadd.f32 %v1170_v28, %v4614_v35  ;;  %v4808_v14 = vpop.f32.mrf.mxu0  ;;  %v4810_v3 = vpop.f32.mrf.mxu1 }
 0x1ca   : > { %6066 = vst [vmem:[#allocation102_spill] sm:$0xff] %v4808_v14 }
 0x1cb   : > { %6067 = vst [vmem:[#allocation103_spill] sm:$0xff] %v4810_v3  ;;  %v4812_v34 = vmul.f32 %v1106_v30, %v536_v63  ;;  %v4814_v19 = vmul.f32 %v1171_v58, %v601_v7  ;;  %v539_v58 = vadd.f32 %v4110_v31, %v4592_v52  ;;  %v4838_v31 = vperm.slane %v4597_v51, 0 }
 0x1cc   : > { %3140 = vmatmul.msk.f32.gmra.mxu0 %vm321_vm0, %v3608_v23  ;;  %3156 = vmatmul.msk.f32.gmra.mxu1 %vm321_vm0, %v3608_v23 }
 0x1cd   : > { %6068 = vst [vmem:[#allocation104_spill] sm:$0xff] %v4812_v34  ;;  %3172 = vmatmul.msk.f32.gmra.mxu2 %vm321_vm0, %v3608_v23  ;;  %3188 = vmatmul.msk.f32.gmra.mxu3 %vm321_vm0, %v3608_v23  ;;  %v3609_v23 = vld [vmem:[%s3724_s13 + $0x40] sm:$0xff]  ;;  %v542_v34 = vadd.f32 %v4135_v46, %v4592_v52 }
 0x1ce   : > { %6069 = vst [vmem:[#allocation105_spill] sm:$0xff] %v4814_v19 }
 0x1d0   : > { %v1108_v24 = vpop.f32.mrf.mxu2  ;;  %v1173_v30 = vpop.f32.mrf.mxu3 }
 0x1d1   : > { %v1109_v57 = vadd.f32 %v1108_v24, %v4611_v48  ;;  %v1174_v28 = vadd.f32 %v1173_v30, %v4614_v35  ;;  %v981_v63 = vpop.f32.mrf.mxu0  ;;  %v1046_v7 = vpop.f32.mrf.mxu1  ;;  %v3496_v24 = vld [vmem:[%s5921_s5 + $0xc8] sm:$0xff] }
 0x1d2   : > { %2317 = vmatpush.bf16.msra.mxu3 %v3496_v24 }
 0x1d3   : > { %v4830_v3 = vmul.f32 %v1109_v57, %v539_v58  ;;  %v4832_v14 = vmul.f32 %v1174_v28, %v604_v13  ;;  %v4856_v13 = vperm.slane %v4589_v50, 0  ;;  %v4859_v57 = vperm.slane %v4589_v50, 1 }
 0x1d4   : > { %3141 = vmatmul.msk.f32.gmra.mxu0 %vm321_vm0, %v3609_v23  ;;  %3157 = vmatmul.msk.f32.gmra.mxu1 %vm321_vm0, %v3609_v23  ;;  %v4862_v28 = vperm.slane %v4597_v51, 1 }
 0x1d5   : > { %6070 = vst [vmem:[#allocation106_spill] sm:$0xff] %v4830_v3  ;;  %3173 = vmatmul.msk.f32.gmra.mxu2 %vm321_vm0, %v3609_v23  ;;  %3189 = vmatmul.msk.f32.gmra.mxu3 %vm321_vm0, %v3609_v23  ;;  %v982_v23 = vadd.f32 %v981_v63, %v4838_v31  ;;  %v412_v6 = vadd.f32 %v4114_v37, %v4856_v13 }
 0x1d6   : > { %6071 = vst [vmem:[#allocation107_spill] sm:$0xff] %v4832_v14  ;;  %v477_v30 = vadd.f32 %v4116_v38, %v4859_v57  ;;  %v1047_v58 = vadd.f32 %v1046_v7, %v4862_v28  ;;  %v607_v3 = vadd.f32 %v4137_v47, %v4604_v44  ;;  %v415_v38 = vadd.f32 %v4139_v49, %v4856_v13 }
 0x1d7   : > { %v480_v7 = vadd.f32 %v4141_v54, %v4859_v57  ;;  %v4882_v33 = vmul.f32 %v982_v23, %v412_v6  ;;  %v3610_v54 = vld [vmem:[%s3724_s13 + $0x48] sm:$0xff]  ;;  %v610_v23 = vadd.f32 %v4156_v61, %v4604_v44  ;;  %v3471_v61 = vld [vmem:[%s5921_s5] sm:$0xff] }
 0x1d8   : > { %v1111_v19 = vpop.f32.mrf.mxu2  ;;  %v1176_v14 = vpop.f32.mrf.mxu3  ;;  %2171 = vmatpush.bf16.msra.mxu0 %v3471_v61 }
 0x1d9   : > { %v1112_v63 = vadd.f32 %v1111_v19, %v4611_v48  ;;  %v1177_v32 = vadd.f32 %v1176_v14, %v4614_v35  ;;  %v984_v37 = vpop.f32.mrf.mxu0  ;;  %v1049_v20 = vpop.f32.mrf.mxu1  ;;  %v3480_v14 = vld [vmem:[%s5921_s5 + $0x48] sm:$0xff]  ;;  %v4891_v19 = vmul.f32 %v1047_v58, %v477_v30  ;;  %v545_v58 = vadd.f32 %v4154_v56, %v4592_v52  ;;  %v3487_v56 = vld [vmem:[%s5921_s5 + $0x80] sm:$0xff] }
 0x1da   : > { %v985_v24 = vadd.f32 %v984_v37, %v4838_v31  ;;  %v1050_v46 = vadd.f32 %v1049_v20, %v4862_v28  ;;  %2219 = vmatpush.bf16.msra.mxu1 %v3480_v14  ;;  %2269 = vmatpush.bf16.msra.mxu2 %v3487_v56 }
 0x1db   : > { %v4884_v47 = vmul.f32 %v1112_v63, %v542_v34  ;;  %v4886_v5 = vmul.f32 %v1177_v32, %v607_v3 }
 0x1dc   : > { %v4893_v49 = vmul.f32 %v985_v24, %v415_v38  ;;  %v4895_v2 = vmul.f32 %v1050_v46, %v480_v7  ;;  %3142 = vmatmul.msk.f32.gmra.mxu0 %vm321_vm0, %v3610_v54  ;;  %3158 = vmatmul.msk.f32.gmra.mxu1 %vm321_vm0, %v3610_v54  ;;  %v3611_v24 = vld [vmem:[%s3724_s13 + $0x50] sm:$0xff]  ;;  %v3495_v46 = vld [vmem:[%s5921_s5 + $0xc0] sm:$0xff] }
 0x1dd   : > { %3174 = vmatmul.msk.f32.gmra.mxu2 %vm321_vm0, %v3610_v54  ;;  %3190 = vmatmul.msk.f32.gmra.mxu3 %vm321_vm0, %v3610_v54  ;;  %v613_v54 = vadd.f32 %v4172_v18, %v4604_v44 }
 0x1de   : > { %2318 = vmatpush.bf16.msra.mxu3 %v3495_v46 }
 0x1e0   : > { %v1114_v34 = vpop.f32.mrf.mxu2  ;;  %v1179_v30 = vpop.f32.mrf.mxu3 }
 0x1e1   : > { %v1115_v63 = vadd.f32 %v1114_v34, %v4611_v48  ;;  %v1180_v32 = vadd.f32 %v1179_v30, %v4614_v35  ;;  %v987_v37 = vpop.f32.mrf.mxu0  ;;  %v1052_v20 = vpop.f32.mrf.mxu1  ;;  %v418_v30 = vadd.f32 %v4158_v10, %v4856_v13 }
 0x1e2   : > { %v988_v34 = vadd.f32 %v987_v37, %v4838_v31 }
 0x1e3   : > { %v4912_v38 = vmul.f32 %v1115_v63, %v545_v58  ;;  %v4914_v7 = vmul.f32 %v1180_v32, %v610_v23  ;;  %v483_v58 = vadd.f32 %v4160_v11, %v4859_v57  ;;  %v1053_v23 = vadd.f32 %v1052_v20, %v4862_v28 }
 0x1e4   : > { %3143 = vmatmul.msk.f32.gmra.mxu0 %vm321_vm0, %v3611_v24  ;;  %3159 = vmatmul.msk.f32.gmra.mxu1 %vm321_vm0, %v3611_v24  ;;  %v421_v11 = vadd.f32 %v4174_v39, %v4856_v13  ;;  %v486_v20 = vadd.f32 %v4176_v40, %v4859_v57  ;;  %v4952_v14 = vmul.f32 %v988_v34, %v418_v30  ;;  %v3612_v40 = vld [vmem:[%s3724_s13 + $0x58] sm:$0xff] }
 0x1e5   : > { %3175 = vmatmul.msk.f32.gmra.mxu2 %vm321_vm0, %v3611_v24  ;;  %3191 = vmatmul.msk.f32.gmra.mxu3 %vm321_vm0, %v3611_v24  ;;  %v548_v24 = vadd.f32 %v4170_v12, %v4592_v52 }
 0x1e8   : > { %v1117_v63 = vpop.f32.mrf.mxu2  ;;  %v1182_v32 = vpop.f32.mrf.mxu3 }
 0x1e9   : > { %v1118_v37 = vadd.f32 %v1117_v63, %v4611_v48  ;;  %v1183_v56 = vadd.f32 %v1182_v32, %v4614_v35  ;;  %v990_v10 = vpop.f32.mrf.mxu0  ;;  %v1055_v61 = vpop.f32.mrf.mxu1  ;;  %v3479_v63 = vld [vmem:[%s5921_s5 + $0x40] sm:$0xff]  ;;  %v4961_v32 = vmul.f32 %v1053_v23, %v483_v58  ;;  %v551_v23 = vadd.f32 %v4186_v45, %v4592_v52  ;;  %v3526_v45 = vld [vmem:[%s5921_s5 + $0x1b8] sm:$0xff] }
 0x1ea   : > { %v991_v46 = vadd.f32 %v990_v10, %v4838_v31  ;;  %v1056_v12 = vadd.f32 %v1055_v61, %v4862_v28  ;;  %2220 = vmatpush.bf16.msra.mxu1 %v3479_v63  ;;  %2458 = vmatpush.bf16.msrb.mxu2 %v3526_v45 }
 0x1eb   : > { %v4954_v18 = vmul.f32 %v1118_v37, %v548_v24  ;;  %v4956_v6 = vmul.f32 %v1183_v56, %v613_v54  ;;  %v616_v24 = vadd.f32 %v4188_v55, %v4604_v44  ;;  %v3510_v55 = vld [vmem:[%s5921_s5 + $0x138] sm:$0xff] }
 0x1ec   : > { %v4963_v39 = vmul.f32 %v991_v46, %v421_v11  ;;  %v4965_v3 = vmul.f32 %v1056_v12, %v486_v20  ;;  %3144 = vmatmul.msk.f32.gmra.mxu0 %vm321_vm0, %v3612_v40  ;;  %3160 = vmatmul.msk.f32.gmra.mxu1 %vm321_vm0, %v3612_v40  ;;  %v3613_v46 = vld [vmem:[%s3724_s13 + $0x60] sm:$0xff]  ;;  %v3534_v12 = vld [vmem:[%s5921_s5 + $0x1f8] sm:$0xff] }
 0x1ed   : > { %6072 = vst [vmem:[#allocation108_spill] sm:$0xff] %v4956_v6  ;;  %3176 = vmatmul.msk.f32.gmra.mxu2 %vm321_vm0, %v3612_v40  ;;  %3192 = vmatmul.msk.f32.gmra.mxu3 %vm321_vm0, %v3612_v40  ;;  %v619_v40 = vadd.f32 %v4213_v17, %v4604_v44 }
 0x1ee   : > { %2360 = vmatpush.bf16.msrb.mxu0 %v3510_v55  ;;  %2507 = vmatpush.bf16.msrb.mxu3 %v3534_v12 }
 0x1f0   : > { %v1120_v30 = vpop.f32.mrf.mxu2  ;;  %v1185_v58 = vpop.f32.mrf.mxu3 }
 0x1f1   : > { %v1121_v37 = vadd.f32 %v1120_v30, %v4611_v48  ;;  %v1186_v56 = vadd.f32 %v1185_v58, %v4614_v35  ;;  %v993_v10 = vpop.f32.mrf.mxu0  ;;  %v1058_v61 = vpop.f32.mrf.mxu1  ;;  %v424_v58 = vadd.f32 %v4190_v22, %v4856_v13 }
 0x1f2   : > { %v994_v30 = vadd.f32 %v993_v10, %v4838_v31 }
 0x1f3   : > { %v4982_v11 = vmul.f32 %v1121_v37, %v551_v23  ;;  %v4984_v20 = vmul.f32 %v1186_v56, %v616_v24  ;;  %v489_v23 = vadd.f32 %v4192_v21, %v4859_v57  ;;  %v1059_v24 = vadd.f32 %v1058_v61, %v4862_v28 }
 0x1f4   : > { %3145 = vmatmul.msk.f32.gmra.mxu0 %vm321_vm0, %v3613_v46  ;;  %3161 = vmatmul.msk.f32.gmra.mxu1 %vm321_vm0, %v3613_v46  ;;  %v427_v21 = vadd.f32 %v4215_v15, %v4856_v13  ;;  %v492_v61 = vadd.f32 %v4217_v1, %v4859_v57  ;;  %v5022_v63 = vmul.f32 %v994_v30, %v424_v58  ;;  %v3614_v1 = vld [vmem:[%s3724_s13 + $0x68] sm:$0xff] }
 0x1f5   : > { %3177 = vmatmul.msk.f32.gmra.mxu2 %vm321_vm0, %v3613_v46  ;;  %3193 = vmatmul.msk.f32.gmra.mxu3 %vm321_vm0, %v3613_v46  ;;  %v554_v46 = vadd.f32 %v4211_v8, %v4592_v52 }
 0x1f6   : > { %6073 = vst [vmem:[#allocation109_spill] sm:$0xff] %v5022_v63 }
 0x1f8   : > { %v1123_v37 = vpop.f32.mrf.mxu2  ;;  %v1188_v56 = vpop.f32.mrf.mxu3 }
 0x1f9   : > { %v1124_v10 = vadd.f32 %v1123_v37, %v4611_v48  ;;  %v1189_v45 = vadd.f32 %v1188_v56, %v4614_v35  ;;  %v996_v22 = vpop.f32.mrf.mxu0  ;;  %v1061_v55 = vpop.f32.mrf.mxu1  ;;  %v3518_v37 = vld [vmem:[%s5921_s5 + $0x178] sm:$0xff]  ;;  %v5031_v56 = vmul.f32 %v1059_v24, %v489_v23  ;;  %v557_v24 = vadd.f32 %v4230_v9, %v4592_v52  ;;  %v3525_v9 = vld [vmem:[%s5921_s5 + $0x1b0] sm:$0xff] }
 0x1fa   : > { %v997_v12 = vadd.f32 %v996_v22, %v4838_v31  ;;  %v1062_v8 = vadd.f32 %v1061_v55, %v4862_v28  ;;  %2409 = vmatpush.bf16.msrb.mxu1 %v3518_v37  ;;  %2459 = vmatpush.bf16.msrb.mxu2 %v3525_v9  ;;  %v6085_v37 = vld [vmem:[#allocation20_spill] sm:$0xff] }
 0x1fb   : > { %v5024_v17 = vmul.f32 %v1124_v10, %v554_v46  ;;  %v5026_v34 = vmul.f32 %v1189_v45, %v619_v40  ;;  %6076 = vst [vmem:[#allocation112_spill] sm:$0xff] %v5031_v56  ;;  %v622_v46 = vadd.f32 %v4232_v29, %v4604_v44  ;;  %v3509_v29 = vld [vmem:[%s5921_s5 + $0x130] sm:$0xff] }
 0x1fc   : > { %v5033_v15 = vmul.f32 %v997_v12, %v427_v21  ;;  %v5035_v54 = vmul.f32 %v1062_v8, %v492_v61  ;;  %3146 = vmatmul.msk.f32.gmra.mxu0 %vm321_vm0, %v3614_v1  ;;  %3162 = vmatmul.msk.f32.gmra.mxu1 %vm321_vm0, %v3614_v1  ;;  %v3615_v12 = vld [vmem:[%s3724_s13 + $0x70] sm:$0xff] }
 0x1fd   : > { %6074 = vst [vmem:[#allocation110_spill] sm:$0xff] %v5024_v17  ;;  %3178 = vmatmul.msk.f32.gmra.mxu2 %vm321_vm0, %v3614_v1  ;;  %3194 = vmatmul.msk.f32.gmra.mxu3 %vm321_vm0, %v3614_v1  ;;  %v3533_v8 = vld [vmem:[%s5921_s5 + $0x1f0] sm:$0xff]  ;;  %v560_v17 = vadd.f32 %v6085_v37, %v4592_v52  ;;  %v6086_v1 = vld [vmem:[#allocation21_spill] sm:$0xff] }
 0x1fe   : > { %6075 = vst [vmem:[#allocation111_spill] sm:$0xff] %v5026_v34  ;;  %2361 = vmatpush.bf16.msrb.mxu0 %v3509_v29  ;;  %v625_v34 = vadd.f32 %v6086_v1, %v4604_v44  ;;  %2508 = vmatpush.bf16.msrb.mxu3 %v3533_v8 }
 0x1ff   : > { %6077 = vst [vmem:[#allocation113_spill] sm:$0xff] %v5033_v15 }
 0x200   : > { %6078 = vst [vmem:[#allocation114_spill] sm:$0xff] %v5035_v54  ;;  %v1126_v58 = vpop.f32.mrf.mxu2  ;;  %v1191_v23 = vpop.f32.mrf.mxu3  ;;  %v6089_v54 = vld [vmem:[#allocation90_spill] sm:$0xff] }
 0x201   : > { %v1127_v10 = vadd.f32 %v1126_v58, %v4611_v48  ;;  %v1192_v45 = vadd.f32 %v1191_v23, %v4614_v35  ;;  %v999_v22 = vpop.f32.mrf.mxu0  ;;  %v1064_v55 = vpop.f32.mrf.mxu1  ;;  %v6081_v58 = vld [vmem:[#allocation4_spill] sm:$0xff] }
 0x202   : > { %v391_v23 = vadd.f32 %v6081_v58, %v4856_v13  ;;  %v1000_v40 = vadd.f32 %v999_v22, %v4838_v31  ;;  %v6087_v58 = vld [vmem:[#allocation22_spill] sm:$0xff]  ;;  %v958_v22 = vadd.f32 %v4582_v59, %v4838_v31  ;;  %v1023_v59 = vadd.f32 %v6089_v54, %v4862_v28 }
 0x203   : > { %v5052_v21 = vmul.f32 %v1127_v10, %v557_v24  ;;  %v5054_v61 = vmul.f32 %v1192_v45, %v622_v46  ;;  %v6082_v24 = vld [vmem:[#allocation5_spill] sm:$0xff]  ;;  %v6083_v10 = vld [vmem:[#allocation18_spill] sm:$0xff] }
 0x204   : > { %3147 = vmatmul.msk.f32.gmra.mxu0 %vm321_vm0, %v3615_v12  ;;  %3163 = vmatmul.msk.f32.gmra.mxu1 %vm321_vm0, %v3615_v12  ;;  %v456_v46 = vadd.f32 %v6082_v24, %v4859_v57  ;;  %v430_v45 = vadd.f32 %v6083_v10, %v4856_v13  ;;  %v1065_v24 = vadd.f32 %v1064_v55, %v4862_v28  ;;  %v6092_v54 = vld [vmem:[#allocation2_spill] sm:$0xff] }
 0x205   : > { %6079 = vst [vmem:[#allocation115_spill] sm:$0xff] %v5052_v21  ;;  %3179 = vmatmul.msk.f32.gmra.mxu2 %vm321_vm0, %v3615_v12  ;;  %3195 = vmatmul.msk.f32.gmra.mxu3 %vm321_vm0, %v3615_v12  ;;  %v6084_v12 = vld [vmem:[#allocation19_spill] sm:$0xff]  ;;  %v1026_v55 = vadd.f32 %v4633_v60, %v4862_v28 }
 0x206   : > { %6080 = vst [vmem:[#allocation116_spill] sm:$0xff] %v5054_v61  ;;  %v495_v30 = vadd.f32 %v6084_v12, %v4859_v57  ;;  %v433_v61 = vadd.f32 %v6087_v58, %v4856_v13  ;;  %v6088_v12 = vld [vmem:[#allocation23_spill] sm:$0xff]  ;;  %v961_v58 = vadd.f32 %v4631_v0, %v4838_v31  ;;  %v5104_v63 = vmul.f32 %v1000_v40, %v430_v45  ;;  %v3517_v0 = vld [vmem:[%s5921_s5 + $0x170] sm:$0xff] }
 0x207   : > { %v498_v56 = vadd.f32 %v6088_v12, %v4859_v57  ;;  %2410 = vmatpush.bf16.msrb.mxu1 %v3517_v0  ;;  %v5139_v45 = vperm.slane %v4589_v50, 4 }
 0x208   : > { %v1129_v21 = vpop.f32.mrf.mxu2  ;;  %v1194_v10 = vpop.f32.mrf.mxu3  ;;  %v5113_v15 = vmul.f32 %v1065_v24, %v495_v30  ;;  %v1468_v30 = vmul.f32 %v961_v58, %v391_v23 }
 0x209   : > { %v1130_v9 = vadd.f32 %v1129_v21, %v4611_v48  ;;  %v1195_v29 = vadd.f32 %v1194_v10, %v4614_v35  ;;  %v1002_v37 = vpop.f32.mrf.mxu0  ;;  %v1067_v1 = vpop.f32.mrf.mxu1 }
 0x20a   : > { %v1003_v8 = vadd.f32 %v1002_v37, %v4838_v31  ;;  %v1068_v12 = vadd.f32 %v1067_v1, %v4862_v28  ;;  %v3616_v1 = vld [vmem:[%s3724_s13 + $0x78] sm:$0xff] }
 0x20b   : > { %v5106_v21 = vmul.f32 %v1130_v9, %v560_v17  ;;  %v5108_v10 = vmul.f32 %v1195_v29, %v625_v34  ;;  %v388_v17 = vadd.f32 %v6092_v54, %v4856_v13  ;;  %v6093_v34 = vld [vmem:[#allocation3_spill] sm:$0xff] }
 0x20c   : > { %v5115_v60 = vmul.f32 %v1003_v8, %v433_v61  ;;  %v5117_v37 = vmul.f32 %v1068_v12, %v498_v56  ;;  %3148 = vmatmul.msk.f32.gmra.mxu0 %vm321_vm0, %v3616_v1  ;;  %3164 = vmatmul.msk.f32.gmra.mxu1 %vm321_vm0, %v3616_v1  ;;  %v453_v40 = vadd.f32 %v6093_v34, %v4859_v57  ;;  %v6094_v12 = vld [vmem:[#allocation24_spill] sm:$0xff]  ;;  %v6095_v34 = vld [vmem:[#allocation25_spill] sm:$0xff] }
 0x20d   : > { %6090 = vst [vmem:[#allocation4_spill] sm:$0xff] %v5106_v21  ;;  %3180 = vmatmul.msk.f32.gmra.mxu2 %vm321_vm0, %v3616_v1  ;;  %3196 = vmatmul.msk.f32.gmra.mxu3 %vm321_vm0, %v3616_v1  ;;  %v1469_v61 = vmul.f32 %v1026_v55, %v456_v46  ;;  %v1460_v24 = vmul.f32 %v958_v22, %v388_v17  ;;  %v5142_v22 = vperm.slane %v4589_v50, 5  ;;  %v5158_v17 = vperm.slane %v4597_v51, 5 }
 0x20e   : > { %6091 = vst [vmem:[#allocation5_spill] sm:$0xff] %v5108_v10  ;;  %v1461_v9 = vmul.f32 %v1023_v59, %v453_v40  ;;  %v563_v54 = vadd.f32 %v6094_v12, %v4592_v52  ;;  %v628_v6 = vadd.f32 %v6095_v34, %v4604_v44  ;;  %v5149_v44 = vperm.slane %v4589_v50, 6 }
 0x20f   : > { %v1588_v0 = vpack.c.bf16 %v1468_v30, %v1460_v24  ;;  %v6098_v40 = vpack.c.bf16 %v4660_v16, %v4635_v4  ;;  %v5167_v30 = vperm.slane %v4597_v51, 6  ;;  %v3508_v24 = vld [vmem:[%s5921_s5 + $0x128] sm:$0xff] }
 0x210   : > { %v1132_v29 = vpop.f32.mrf.mxu2  ;;  %v1197_v8 = vpop.f32.mrf.mxu3  ;;  %v1589_v1 = vpack.c.bf16 %v1469_v61, %v1461_v9  ;;  %v3524_v61 = vld [vmem:[%s5921_s5 + $0x1a8] sm:$0xff]  ;;  %v6101_v9 = vld [vmem:[#allocation9_spill] sm:$0xff]  ;;  %2362 = vmatpush.bf16.msrb.mxu0 %v3508_v24 }
 0x211   : > { %v1133_v23 = vadd.f32 %v1132_v29, %v4611_v48  ;;  %v1198_v46 = vadd.f32 %v1197_v8, %v4614_v35  ;;  %v1217_v58 = vpop.f32.mrf.mxu0  ;;  %v1282_v55 = vpop.f32.mrf.mxu1  ;;  %v5152_v48 = vperm.slane %v4589_v50, 7  ;;  %v5155_v35 = vperm.slane %v4597_v51, 4  ;;  %v3532_v4 = vld [vmem:[%s5921_s5 + $0x1e8] sm:$0xff]  ;;  %v6102_v8 = vld [vmem:[#allocation26_spill] sm:$0xff]  ;;  %2460 = vmatpush.bf16.msrb.mxu2 %v3524_v61 }
 0x212   : > { %v5170_v50 = vperm.slane %v4597_v51, 7  ;;  %v6100_v51 = vld [vmem:[#allocation8_spill] sm:$0xff]  ;;  %v462_v29 = vadd.f32 %v6101_v9, %v4859_v57  ;;  %v648_v12 = vadd.f32 %v6102_v8, %v5139_v45  ;;  %2509 = vmatpush.bf16.msrb.mxu3 %v3532_v4  ;;  %v6106_v8 = vld [vmem:[#allocation30_spill] sm:$0xff] }
 0x213   : > { %v5144_v59 = vmul.f32 %v1133_v23, %v563_v54  ;;  %v5146_v52 = vmul.f32 %v1198_v46, %v628_v6  ;;  %v6099_v6 = vpack.c.bf16 %v4662_v25, %v4637_v42  ;;  %v397_v25 = vadd.f32 %v6100_v51, %v4856_v13  ;;  %v6103_v54 = vld [vmem:[#allocation27_spill] sm:$0xff]  ;;  %v6104_v23 = vld [vmem:[#allocation28_spill] sm:$0xff] }
 0x214   : > { %2172 = vmatmul.bf16.vlgmr.msra.gmra.mxu0 %v1588_v0  ;;  %2221 = vmatmul.bf16.vlgmr.msra.gmra.mxu1 %v1589_v1  ;;  %v713_v34 = vadd.f32 %v6103_v54, %v5142_v22  ;;  %v778_v46 = vadd.f32 %v6104_v23, %v5149_v44  ;;  %v6105_v0 = vld [vmem:[#allocation29_spill] sm:$0xff]  ;;  %v651_v16 = vadd.f32 %v6106_v8, %v5139_v45  ;;  %v6107_v54 = vld [vmem:[#allocation31_spill] sm:$0xff] }
 0x215   : > { %6096 = vst [vmem:[#allocation18_spill] sm:$0xff] %v5144_v59  ;;  %2270 = vmatmul.bf16.vlgmr.msra.gmra.mxu2 %v6098_v40  ;;  %2319 = vmatmul.bf16.vlgmr.msra.gmra.mxu3 %v6099_v6  ;;  %v843_v1 = vadd.f32 %v6105_v0, %v5152_v48  ;;  %v1218_v40 = vadd.f32 %v1217_v58, %v5155_v35  ;;  %v6108_v8 = vld [vmem:[#allocation91_spill] sm:$0xff] }
 0x216   : > { %6097 = vst [vmem:[#allocation19_spill] sm:$0xff] %v5146_v52  ;;  %v1283_v6 = vadd.f32 %v1282_v55, %v5158_v17  ;;  %v716_v61 = vadd.f32 %v6107_v54, %v5142_v22  ;;  %v967_v58 = vadd.f32 %v4691_v62, %v4838_v31  ;;  %v1032_v55 = vadd.f32 %v4693_v43, %v4862_v28  ;;  %v6109_v54 = vld [vmem:[#allocation92_spill] sm:$0xff]  ;;  %v3516_v62 = vld [vmem:[%s5921_s5 + $0x168] sm:$0xff] }
 0x217   : > { %v964_v10 = vadd.f32 %v6108_v8, %v4838_v31  ;;  %v5222_v21 = vmul.f32 %v1218_v40, %v648_v12  ;;  %v6112_v8 = vld [vmem:[#allocation6_spill] sm:$0xff]  ;;  %2411 = vmatpush.bf16.msrb.mxu1 %v3516_v62 }
 0x218   : > { %v1347_v51 = vpop.f32.mrf.mxu2  ;;  %v1412_v9 = vpop.f32.mrf.mxu3  ;;  %v5224_v43 = vmul.f32 %v1283_v6, %v713_v34  ;;  %v394_v59 = vadd.f32 %v6112_v8, %v4856_v13 }
 0x219   : > { %v1348_v24 = vadd.f32 %v1347_v51, %v5167_v30  ;;  %v1413_v23 = vadd.f32 %v1412_v9, %v5170_v50  ;;  %v1220_v42 = vpop.f32.mrf.mxu0  ;;  %v1285_v56 = vpop.f32.mrf.mxu1  ;;  %v1029_v51 = vadd.f32 %v6109_v54, %v4862_v28 }
 0x21a   : > { %v1221_v4 = vadd.f32 %v1220_v42, %v5155_v35  ;;  %v1286_v0 = vadd.f32 %v1285_v56, %v5158_v17  ;;  %v1476_v34 = vmul.f32 %v964_v10, %v394_v59 }
 0x21b   : > { %v5215_v52 = vmul.f32 %v1348_v24, %v778_v46  ;;  %v5217_v9 = vmul.f32 %v1413_v23, %v843_v1  ;;  %v6113_v46 = vld [vmem:[#allocation7_spill] sm:$0xff]  ;;  %v1484_v1 = vmul.f32 %v967_v58, %v397_v25  ;;  %v1485_v23 = vmul.f32 %v1032_v55, %v462_v29 }
 0x21c   : > { %v5226_v42 = vmul.f32 %v1221_v4, %v651_v16  ;;  %v5228_v56 = vmul.f32 %v1286_v0, %v716_v61  ;;  %v459_v24 = vadd.f32 %v6113_v46, %v4859_v57  ;;  %v6114_v61 = vld [vmem:[#allocation32_spill] sm:$0xff]  ;;  %v6115_v0 = vld [vmem:[#allocation33_spill] sm:$0xff] }
 0x21d   : > { %6110 = vst [vmem:[#allocation20_spill] sm:$0xff] %v5215_v52  ;;  %v781_v4 = vadd.f32 %v6114_v61, %v5149_v44  ;;  %v846_v8 = vadd.f32 %v6115_v0, %v5152_v48  ;;  %v1596_v55 = vpack.c.bf16 %v1484_v1, %v1476_v34  ;;  %v6118_v1 = vpack.c.bf16 %v4722_v27, %v4697_v41  ;;  %v3507_v34 = vld [vmem:[%s5921_s5 + $0x120] sm:$0xff]  ;;  %v6122_v61 = vld [vmem:[#allocation35_spill] sm:$0xff]  ;;  %v6123_v0 = vld [vmem:[#allocation36_spill] sm:$0xff] }
 0x21e   : > { %6111 = vst [vmem:[#allocation21_spill] sm:$0xff] %v5217_v9  ;;  %v1477_v16 = vmul.f32 %v1029_v51, %v459_v24  ;;  %v6117_v24 = vpack.c.bf16 %v4720_v36, %v4695_v53  ;;  %v6120_v36 = vld [vmem:[#allocation13_spill] sm:$0xff]  ;;  %v6121_v41 = vld [vmem:[#allocation34_spill] sm:$0xff]  ;;  %2363 = vmatpush.bf16.msrb.mxu0 %v3507_v34 }
 0x21f   : > { %v654_v27 = vadd.f32 %v6121_v41, %v5139_v45  ;;  %v6126_v41 = vld [vmem:[#allocation39_spill] sm:$0xff] }
 0x220   : > { %v1350_v40 = vpop.f32.mrf.mxu2  ;;  %v1415_v6 = vpop.f32.mrf.mxu3  ;;  %v1597_v46 = vpack.c.bf16 %v1485_v23, %v1477_v16  ;;  %v3523_v23 = vld [vmem:[%s5921_s5 + $0x1a0] sm:$0xff] }
 0x221   : > { %v1351_v62 = vadd.f32 %v1350_v40, %v5167_v30  ;;  %v1416_v25 = vadd.f32 %v1415_v6, %v5170_v50  ;;  %v1223_v29 = vpop.f32.mrf.mxu0  ;;  %v1288_v58 = vpop.f32.mrf.mxu1  ;;  %v3531_v16 = vld [vmem:[%s5921_s5 + $0x1e0] sm:$0xff]  ;;  %v6119_v40 = vld [vmem:[#allocation12_spill] sm:$0xff]  ;;  %v468_v6 = vadd.f32 %v6120_v36, %v4859_v57  ;;  %2461 = vmatpush.bf16.msrb.mxu2 %v3523_v23  ;;  %v722_v23 = vadd.f32 %v6126_v41, %v5142_v22 }
 0x222   : > { %v403_v53 = vadd.f32 %v6119_v40, %v4856_v13  ;;  %2510 = vmatpush.bf16.msrb.mxu3 %v3531_v16  ;;  %v6125_v40 = vld [vmem:[#allocation38_spill] sm:$0xff] }
 0x223   : > { %v5244_v54 = vmul.f32 %v1351_v62, %v781_v4  ;;  %v5246_v10 = vmul.f32 %v1416_v25, %v846_v8  ;;  %v719_v4 = vadd.f32 %v6122_v61, %v5142_v22  ;;  %v784_v8 = vadd.f32 %v6123_v0, %v5149_v44  ;;  %v6124_v62 = vld [vmem:[#allocation37_spill] sm:$0xff]  ;;  %v6129_v41 = vld [vmem:[#allocation94_spill] sm:$0xff] }
 0x224   : > { %2177 = vmatmul.bf16.gmra.mxu0 %v1596_v55  ;;  %2226 = vmatmul.bf16.gmra.mxu1 %v1597_v46  ;;  %v849_v25 = vadd.f32 %v6124_v62, %v5152_v48  ;;  %v1224_v55 = vadd.f32 %v1223_v29, %v5155_v35  ;;  %v1289_v46 = vadd.f32 %v1288_v58, %v5158_v17  ;;  %v6127_v58 = vld [vmem:[#allocation95_spill] sm:$0xff] }
 0x225   : > { %6116 = vst [vmem:[#allocation22_spill] sm:$0xff] %v5246_v10  ;;  %2275 = vmatmul.bf16.gmra.mxu2 %v6117_v24  ;;  %2324 = vmatmul.bf16.gmra.mxu3 %v6118_v1  ;;  %v657_v36 = vadd.f32 %v6125_v40, %v5139_v45  ;;  %v973_v29 = vadd.f32 %v4751_v26, %v4838_v31  ;;  %v6128_v40 = vld [vmem:[#allocation93_spill] sm:$0xff]  ;;  %v3515_v26 = vld [vmem:[%s5921_s5 + $0x160] sm:$0xff] }
 0x226   : > { %v1038_v62 = vadd.f32 %v6127_v58, %v4862_v28  ;;  %v970_v12 = vadd.f32 %v6128_v40, %v4838_v31  ;;  %v5304_v10 = vmul.f32 %v1224_v55, %v654_v27  ;;  %v5306_v58 = vmul.f32 %v1289_v46, %v719_v4  ;;  %v6135_v40 = vld [vmem:[#allocation10_spill] sm:$0xff]  ;;  %2412 = vmatpush.bf16.msrb.mxu1 %v3515_v26 }
 0x227   : > { %v400_v52 = vadd.f32 %v6135_v40, %v4856_v13 }
 0x228   : > { %v1353_v24 = vpop.f32.mrf.mxu2  ;;  %v1418_v1 = vpop.f32.mrf.mxu3  ;;  %6132 = vst [vmem:[#allocation2_spill] sm:$0xff] %v5304_v10 }
 0x229   : > { %v1354_v34 = vadd.f32 %v1353_v24, %v5167_v30  ;;  %v1419_v61 = vadd.f32 %v1418_v1, %v5170_v50  ;;  %v1226_v0 = vpop.f32.mrf.mxu0  ;;  %v1291_v51 = vpop.f32.mrf.mxu1  ;;  %v1035_v24 = vadd.f32 %v6129_v41, %v4862_v28  ;;  %6133 = vst [vmem:[#allocation3_spill] sm:$0xff] %v5306_v58  ;;  %v1492_v4 = vmul.f32 %v970_v12, %v400_v52  ;;  %v6141_v12 = vld [vmem:[#allocation100_spill] sm:$0xff] }
 0x22a   : > { %v1227_v16 = vadd.f32 %v1226_v0, %v5155_v35  ;;  %v1292_v59 = vadd.f32 %v1291_v51, %v5158_v17 }
 0x22b   : > { %v5297_v9 = vmul.f32 %v1354_v34, %v784_v8  ;;  %v5299_v1 = vmul.f32 %v1419_v61, %v849_v25  ;;  %v6136_v8 = vld [vmem:[#allocation11_spill] sm:$0xff]  ;;  %v1500_v25 = vmul.f32 %v973_v29, %v403_v53  ;;  %v1501_v61 = vmul.f32 %v1038_v62, %v468_v6 }
 0x22c   : > { %v5308_v0 = vmul.f32 %v1227_v16, %v657_v36  ;;  %v5310_v51 = vmul.f32 %v1292_v59, %v722_v23  ;;  %v465_v34 = vadd.f32 %v6136_v8, %v4859_v57  ;;  %v6137_v36 = vld [vmem:[#allocation40_spill] sm:$0xff]  ;;  %v6138_v16 = vld [vmem:[#allocation41_spill] sm:$0xff] }
 0x22d   : > { %6130 = vst [vmem:[#allocation23_spill] sm:$0xff] %v5297_v9  ;;  %v787_v23 = vadd.f32 %v6137_v36, %v5149_v44  ;;  %v852_v40 = vadd.f32 %v6138_v16, %v5152_v48  ;;  %v1604_v62 = vpack.c.bf16 %v1500_v25, %v1492_v4  ;;  %v6144_v36 = vld [vmem:[#allocation101_spill] sm:$0xff] }
 0x22e   : > { %6131 = vst [vmem:[#allocation90_spill] sm:$0xff] %v5299_v1  ;;  %v1493_v55 = vmul.f32 %v1035_v24, %v465_v34  ;;  %v6142_v24 = vld [vmem:[#allocation96_spill] sm:$0xff]  ;;  %v6145_v16 = vld [vmem:[#allocation97_spill] sm:$0xff] }
 0x22f   : > { %6134 = vst [vmem:[#allocation24_spill] sm:$0xff] %v5310_v51  ;;  %v6143_v34 = vpack.c.bf16 %v6141_v12, %v6142_v24  ;;  %v6146_v27 = vpack.c.bf16 %v6144_v36, %v6145_v16  ;;  %v3506_v25 = vld [vmem:[%s5921_s5 + $0x118] sm:$0xff]  ;;  %v6151_v12 = vld [vmem:[#allocation44_spill] sm:$0xff] }
 0x230   : > { %v1356_v46 = vpop.f32.mrf.mxu2  ;;  %v1421_v59 = vpop.f32.mrf.mxu3  ;;  %v1605_v8 = vpack.c.bf16 %v1501_v61, %v1493_v55  ;;  %v3530_v61 = vld [vmem:[%s5921_s5 + $0x1d8] sm:$0xff]  ;;  %2364 = vmatpush.bf16.msrb.mxu0 %v3506_v25  ;;  %v790_v24 = vadd.f32 %v6151_v12, %v5149_v44 }
 0x231   : > { %v1357_v26 = vadd.f32 %v1356_v46, %v5167_v30  ;;  %v1422_v53 = vadd.f32 %v1421_v59, %v5170_v50  ;;  %v1229_v6 = vpop.f32.mrf.mxu0  ;;  %v1294_v29 = vpop.f32.mrf.mxu1  ;;  %v3522_v46 = vld [vmem:[%s5921_s5 + $0x198] sm:$0xff]  ;;  %2511 = vmatpush.bf16.msrb.mxu3 %v3530_v61 }
 0x232   : > { %2462 = vmatpush.bf16.msrb.mxu2 %v3522_v46  ;;  %v1230_v16 = vadd.f32 %v1229_v6, %v5155_v35 }
 0x233   : > { %v5326_v41 = vmul.f32 %v1357_v26, %v787_v23  ;;  %v5328_v52 = vmul.f32 %v1422_v53, %v852_v40  ;;  %v6148_v23 = vld [vmem:[#allocation17_spill] sm:$0xff]  ;;  %v6149_v26 = vld [vmem:[#allocation42_spill] sm:$0xff] }
 0x234   : > { %2182 = vmatmul.bf16.gmra.mxu0 %v1604_v62  ;;  %2231 = vmatmul.bf16.gmra.mxu1 %v1605_v8  ;;  %v474_v40 = vadd.f32 %v6148_v23, %v4859_v57  ;;  %v660_v53 = vadd.f32 %v6149_v26, %v5139_v45  ;;  %v6150_v62 = vld [vmem:[#allocation43_spill] sm:$0xff]  ;;  %v6153_v26 = vld [vmem:[#allocation46_spill] sm:$0xff] }
 0x235   : > { %6139 = vst [vmem:[#allocation25_spill] sm:$0xff] %v5326_v41  ;;  %2280 = vmatmul.bf16.gmra.mxu2 %v6143_v34  ;;  %2329 = vmatmul.bf16.gmra.mxu3 %v6146_v27  ;;  %v6147_v27 = vld [vmem:[#allocation16_spill] sm:$0xff]  ;;  %v725_v8 = vadd.f32 %v6150_v62, %v5142_v22  ;;  %v6152_v34 = vld [vmem:[#allocation45_spill] sm:$0xff]  ;;  %v663_v4 = vadd.f32 %v6153_v26, %v5139_v45  ;;  %v6154_v62 = vld [vmem:[#allocation47_spill] sm:$0xff] }
 0x236   : > { %6140 = vst [vmem:[#allocation8_spill] sm:$0xff] %v5328_v52  ;;  %v409_v59 = vadd.f32 %v6147_v27, %v4856_v13  ;;  %v855_v36 = vadd.f32 %v6152_v34, %v5152_v48  ;;  %v1295_v27 = vadd.f32 %v1294_v29, %v5158_v17  ;;  %v728_v46 = vadd.f32 %v6154_v62, %v5142_v22  ;;  %v6155_v34 = vld [vmem:[#allocation102_spill] sm:$0xff]  ;;  %v6156_v29 = vld [vmem:[#allocation103_spill] sm:$0xff] }
 0x237   : > { %v979_v6 = vadd.f32 %v6155_v34, %v4838_v31  ;;  %v1044_v9 = vadd.f32 %v6156_v29, %v4862_v28  ;;  %v6157_v26 = vld [vmem:[#allocation98_spill] sm:$0xff]  ;;  %v6158_v62 = vld [vmem:[#allocation99_spill] sm:$0xff]  ;;  %v3514_v34 = vld [vmem:[%s5921_s5 + $0x158] sm:$0xff]  ;;  %v5386_v10 = vmul.f32 %v1230_v16, %v660_v53 }
 0x238   : > { %v1359_v55 = vpop.f32.mrf.mxu2  ;;  %v1424_v23 = vpop.f32.mrf.mxu3  ;;  %v976_v58 = vadd.f32 %v6157_v26, %v4838_v31  ;;  %v5388_v29 = vmul.f32 %v1295_v27, %v725_v8  ;;  %v6159_v31 = vld [vmem:[#allocation14_spill] sm:$0xff]  ;;  %2413 = vmatpush.bf16.msrb.mxu1 %v3514_v34  ;;  %v6161_v27 = vld [vmem:[#allocation48_spill] sm:$0xff] }
 0x239   : > { %v1360_v25 = vadd.f32 %v1359_v55, %v5167_v30  ;;  %v1425_v12 = vadd.f32 %v1424_v23, %v5170_v50  ;;  %v1232_v1 = vpop.f32.mrf.mxu0  ;;  %v1297_v52 = vpop.f32.mrf.mxu1  ;;  %v1041_v55 = vadd.f32 %v6158_v62, %v4862_v28  ;;  %v406_v26 = vadd.f32 %v6159_v31, %v4856_v13  ;;  %v6160_v28 = vld [vmem:[#allocation15_spill] sm:$0xff]  ;;  %v6162_v13 = vld [vmem:[#allocation49_spill] sm:$0xff]  ;;  %v6164_v31 = vld [vmem:[#allocation104_spill] sm:$0xff] }
 0x23a   : > { %v1233_v61 = vadd.f32 %v1232_v1, %v5155_v35  ;;  %v1298_v41 = vadd.f32 %v1297_v52, %v5158_v17 }
 0x23b   : > { %v5379_v51 = vmul.f32 %v1360_v25, %v790_v24  ;;  %v5381_v23 = vmul.f32 %v1425_v12, %v855_v36  ;;  %v471_v24 = vadd.f32 %v6160_v28, %v4859_v57  ;;  %v1516_v36 = vmul.f32 %v979_v6, %v409_v59  ;;  %v6166_v28 = vld [vmem:[#allocation107_spill] sm:$0xff] }
 0x23c   : > { %v5390_v1 = vmul.f32 %v1233_v61, %v663_v4  ;;  %v5392_v52 = vmul.f32 %v1298_v41, %v728_v46  ;;  %v1517_v25 = vmul.f32 %v1044_v9, %v474_v40  ;;  %v1508_v8 = vmul.f32 %v976_v58, %v406_v26 }
 0x23d   : > { %v1509_v4 = vmul.f32 %v1041_v55, %v471_v24  ;;  %v793_v46 = vadd.f32 %v6161_v27, %v5149_v44  ;;  %v858_v61 = vadd.f32 %v6162_v13, %v5152_v48  ;;  %v6163_v55 = vld [vmem:[#allocation106_spill] sm:$0xff]  ;;  %v6167_v24 = vld [vmem:[#allocation105_spill] sm:$0xff]  ;;  %v6170_v13 = vld [vmem:[#allocation51_spill] sm:$0xff] }
 0x23e   : > { %v1612_v6 = vpack.c.bf16 %v1516_v36, %v1508_v8  ;;  %v6165_v26 = vpack.c.bf16 %v6163_v55, %v6164_v31  ;;  %v6168_v27 = vpack.c.bf16 %v6166_v28, %v6167_v24  ;;  %v3505_v36 = vld [vmem:[%s5921_s5 + $0x110] sm:$0xff] }
 0x23f   : > { %v1613_v62 = vpack.c.bf16 %v1517_v25, %v1509_v4  ;;  %v3529_v25 = vld [vmem:[%s5921_s5 + $0x1d0] sm:$0xff]  ;;  %2365 = vmatpush.bf16.msrb.mxu0 %v3505_v36 }
 0x240   : > { %v1362_v16 = vpop.f32.mrf.mxu2  ;;  %v1427_v41 = vpop.f32.mrf.mxu3  ;;  %2512 = vmatpush.bf16.msrb.mxu3 %v3529_v25  ;;  %v6171_v55 = vld [vmem:[#allocation52_spill] sm:$0xff] }
 0x241   : > { %v1363_v57 = vadd.f32 %v1362_v16, %v5167_v30  ;;  %v1428_v9 = vadd.f32 %v1427_v41, %v5170_v50  ;;  %v1235_v59 = vpop.f32.mrf.mxu0  ;;  %v1300_v40 = vpop.f32.mrf.mxu1  ;;  %v3521_v16 = vld [vmem:[%s5921_s5 + $0x190] sm:$0xff]  ;;  %v6169_v41 = vld [vmem:[#allocation50_spill] sm:$0xff]  ;;  %v796_v31 = vadd.f32 %v6171_v55, %v5149_v44 }
 0x242   : > { %2463 = vmatpush.bf16.msrb.mxu2 %v3521_v16 }
 0x243   : > { %v5408_v34 = vmul.f32 %v1363_v57, %v793_v46  ;;  %v5410_v58 = vmul.f32 %v1428_v9, %v858_v61  ;;  %v666_v46 = vadd.f32 %v6169_v41, %v5139_v45  ;;  %v731_v61 = vadd.f32 %v6170_v13, %v5142_v22  ;;  %v6173_v41 = vld [vmem:[#allocation54_spill] sm:$0xff] }
 0x244   : > { %2187 = vmatmul.bf16.gmra.mxu0 %v1612_v6  ;;  %2236 = vmatmul.bf16.gmra.mxu1 %v1613_v62  ;;  %v1236_v57 = vadd.f32 %v1235_v59, %v5155_v35  ;;  %v1301_v9 = vadd.f32 %v1300_v40, %v5158_v17  ;;  %v669_v59 = vadd.f32 %v6173_v41, %v5139_v45  ;;  %v6174_v40 = vld [vmem:[#allocation55_spill] sm:$0xff] }
 0x245   : > { %2285 = vmatmul.bf16.gmra.mxu2 %v6165_v26  ;;  %2334 = vmatmul.bf16.gmra.mxu3 %v6168_v27  ;;  %v6172_v26 = vld [vmem:[#allocation53_spill] sm:$0xff]  ;;  %v734_v13 = vadd.f32 %v6174_v40, %v5142_v22 }
 0x246   : > { %v861_v28 = vadd.f32 %v6172_v26, %v5152_v48  ;;  %v5458_v26 = vmul.f32 %v1301_v9, %v731_v61 }
 0x248   : > { %v1365_v6 = vpop.f32.mrf.mxu2  ;;  %v1430_v62 = vpop.f32.mrf.mxu3 }
 0x249   : > { %v1366_v24 = vadd.f32 %v1365_v6, %v5167_v30  ;;  %v1431_v27 = vadd.f32 %v1430_v62, %v5170_v50  ;;  %v1238_v16 = vpop.f32.mrf.mxu0  ;;  %v1303_v36 = vpop.f32.mrf.mxu1  ;;  %v3513_v6 = vld [vmem:[%s5921_s5 + $0x150] sm:$0xff]  ;;  %v5456_v62 = vmul.f32 %v1236_v57, %v666_v46  ;;  %v6176_v46 = vld [vmem:[#allocation57_spill] sm:$0xff] }
 0x24a   : > { %v1239_v25 = vadd.f32 %v1238_v16, %v5155_v35  ;;  %v1304_v4 = vadd.f32 %v1303_v36, %v5158_v17  ;;  %2414 = vmatpush.bf16.msrb.mxu1 %v3513_v6  ;;  %v864_v61 = vadd.f32 %v6176_v46, %v5152_v48  ;;  %v6178_v6 = vpack.c.bf16 %v4895_v2, %v4891_v19  ;;  %v3528_v2 = vld [vmem:[%s5921_s5 + $0x1c8] sm:$0xff] }
 0x24b   : > { %v5449_v55 = vmul.f32 %v1366_v24, %v796_v31  ;;  %v5451_v8 = vmul.f32 %v1431_v27, %v861_v28  ;;  %v6175_v27 = vld [vmem:[#allocation56_spill] sm:$0xff]  ;;  %2513 = vmatpush.bf16.msrb.mxu3 %v3528_v2 }
 0x24c   : > { %v5460_v41 = vmul.f32 %v1239_v25, %v669_v59  ;;  %v5462_v53 = vmul.f32 %v1304_v4, %v734_v13  ;;  %v799_v36 = vadd.f32 %v6175_v27, %v5149_v44  ;;  %v6177_v25 = vpack.c.bf16 %v4893_v49, %v4882_v33  ;;  %v3504_v33 = vld [vmem:[%s5921_s5 + $0x108] sm:$0xff] }
 0x24d   : > { %v6179_v27 = vpack.c.bf16 %v4912_v38, %v4884_v47  ;;  %2366 = vmatpush.bf16.msrb.mxu0 %v3504_v33  ;;  %v6182_v38 = vld [vmem:[#allocation59_spill] sm:$0xff] }
 0x250   : > { %v1368_v28 = vpop.f32.mrf.mxu2  ;;  %v1433_v24 = vpop.f32.mrf.mxu3 }
 0x251   : > { %v1369_v57 = vadd.f32 %v1368_v28, %v5167_v30  ;;  %v1434_v4 = vadd.f32 %v1433_v24, %v5170_v50  ;;  %v1241_v9 = vpop.f32.mrf.mxu0  ;;  %v1306_v59 = vpop.f32.mrf.mxu1  ;;  %v6180_v28 = vpack.c.bf16 %v4914_v7, %v4886_v5  ;;  %v3520_v24 = vld [vmem:[%s5921_s5 + $0x188] sm:$0xff]  ;;  %v6181_v5 = vld [vmem:[#allocation58_spill] sm:$0xff]  ;;  %v737_v7 = vadd.f32 %v6182_v38, %v5142_v22 }
 0x252   : > { %2464 = vmatpush.bf16.msrb.mxu2 %v3520_v24  ;;  %v672_v49 = vadd.f32 %v6181_v5, %v5139_v45  ;;  %v1307_v46 = vadd.f32 %v1306_v59, %v5158_v17  ;;  %v6185_v38 = vld [vmem:[#allocation62_spill] sm:$0xff]  ;;  %v6186_v59 = vld [vmem:[#allocation63_spill] sm:$0xff] }
 0x253   : > { %v5474_v40 = vmul.f32 %v1369_v57, %v799_v36  ;;  %v5476_v13 = vmul.f32 %v1434_v4, %v864_v61  ;;  %v1242_v36 = vadd.f32 %v1241_v9, %v5155_v35  ;;  %v6183_v4 = vld [vmem:[#allocation60_spill] sm:$0xff]  ;;  %v675_v9 = vadd.f32 %v6185_v38, %v5139_v45 }
 0x254   : > { %2192 = vmatmul.bf16.gmra.mxu0 %v6177_v25  ;;  %2241 = vmatmul.bf16.gmra.mxu1 %v6178_v6  ;;  %v802_v25 = vadd.f32 %v6183_v4, %v5149_v44  ;;  %v6184_v6 = vld [vmem:[#allocation61_spill] sm:$0xff]  ;;  %v740_v19 = vadd.f32 %v6186_v59, %v5142_v22 }
 0x255   : > { %2290 = vmatmul.bf16.gmra.mxu2 %v6179_v27  ;;  %2339 = vmatmul.bf16.gmra.mxu3 %v6180_v28  ;;  %v867_v27 = vadd.f32 %v6184_v6, %v5152_v48  ;;  %v5530_v6 = vmul.f32 %v1307_v46, %v737_v7 }
 0x258   : > { %v1371_v61 = vpop.f32.mrf.mxu2  ;;  %v1436_v57 = vpop.f32.mrf.mxu3 }
 0x259   : > { %v1372_v28 = vadd.f32 %v1371_v61, %v5167_v30  ;;  %v1437_v24 = vadd.f32 %v1436_v57, %v5170_v50  ;;  %v1244_v33 = vpop.f32.mrf.mxu0  ;;  %v1309_v5 = vpop.f32.mrf.mxu1  ;;  %v3512_v61 = vld [vmem:[%s5921_s5 + $0x148] sm:$0xff]  ;;  %v5528_v57 = vmul.f32 %v1242_v36, %v672_v49  ;;  %v6188_v49 = vld [vmem:[#allocation65_spill] sm:$0xff] }
 0x25a   : > { %v1245_v2 = vadd.f32 %v1244_v33, %v5155_v35  ;;  %v1310_v47 = vadd.f32 %v1309_v5, %v5158_v17  ;;  %2415 = vmatpush.bf16.msrb.mxu1 %v3512_v61  ;;  %v870_v7 = vadd.f32 %v6188_v49, %v5152_v48  ;;  %v6190_v61 = vpack.c.bf16 %v4965_v3, %v4961_v32  ;;  %v3527_v3 = vld [vmem:[%s5921_s5 + $0x1c0] sm:$0xff] }
 0x25b   : > { %v5521_v4 = vmul.f32 %v1372_v28, %v802_v25  ;;  %v5523_v31 = vmul.f32 %v1437_v24, %v867_v27  ;;  %v6187_v24 = vld [vmem:[#allocation64_spill] sm:$0xff]  ;;  %2514 = vmatpush.bf16.msrb.mxu3 %v3527_v3 }
 0x25c   : > { %v5532_v38 = vmul.f32 %v1245_v2, %v675_v9  ;;  %v5534_v16 = vmul.f32 %v1310_v47, %v740_v19  ;;  %v805_v5 = vadd.f32 %v6187_v24, %v5149_v44  ;;  %v6189_v2 = vpack.c.bf16 %v4963_v39, %v4952_v14  ;;  %v3503_v14 = vld [vmem:[%s5921_s5 + $0x100] sm:$0xff] }
 0x25d   : > { %v6191_v24 = vpack.c.bf16 %v4982_v11, %v4954_v18  ;;  %2367 = vmatpush.bf16.msrb.mxu0 %v3503_v14  ;;  %v6194_v39 = vld [vmem:[#allocation66_spill] sm:$0xff] }
 0x25e   : > { %v678_v11 = vadd.f32 %v6194_v39, %v5139_v45 }
 0x260   : > { %v1374_v27 = vpop.f32.mrf.mxu2  ;;  %v1439_v28 = vpop.f32.mrf.mxu3 }
 0x261   : > { %v1375_v36 = vadd.f32 %v1374_v27, %v5167_v30  ;;  %v1440_v47 = vadd.f32 %v1439_v28, %v5170_v50  ;;  %v1247_v19 = vpop.f32.mrf.mxu0  ;;  %v1312_v46 = vpop.f32.mrf.mxu1  ;;  %v6192_v27 = vld [vmem:[#allocation108_spill] sm:$0xff] }
 0x262   : > { %v6193_v28 = vpack.c.bf16 %v4984_v20, %v6192_v27  ;;  %v6195_v20 = vld [vmem:[#allocation67_spill] sm:$0xff]  ;;  %v6197_v27 = vld [vmem:[#allocation69_spill] sm:$0xff] }
 0x263   : > { %v5546_v9 = vmul.f32 %v1375_v36, %v805_v5  ;;  %v5548_v59 = vmul.f32 %v1440_v47, %v870_v7  ;;  %v3519_v5 = vld [vmem:[%s5921_s5 + $0x180] sm:$0xff]  ;;  %v743_v49 = vadd.f32 %v6195_v20, %v5142_v22  ;;  %v1248_v7 = vadd.f32 %v1247_v19, %v5155_v35 }
 0x264   : > { %2197 = vmatmul.bf16.gmra.mxu0 %v6189_v2  ;;  %2246 = vmatmul.bf16.gmra.mxu1 %v6190_v61  ;;  %v1313_v36 = vadd.f32 %v1312_v46, %v5158_v17  ;;  %v6196_v61 = vld [vmem:[#allocation68_spill] sm:$0xff]  ;;  %v6198_v20 = vld [vmem:[#allocation70_spill] sm:$0xff]  ;;  %v6199_v46 = vld [vmem:[#allocation71_spill] sm:$0xff] }
 0x265   : > { %2295 = vmatmul.bf16.gmra.mxu2 %v6191_v24  ;;  %2344 = vmatmul.bf16.gmra.mxu3 %v6193_v28  ;;  %v808_v24 = vadd.f32 %v6196_v61, %v5149_v44  ;;  %v873_v28 = vadd.f32 %v6197_v27, %v5152_v48  ;;  %v681_v19 = vadd.f32 %v6198_v20, %v5139_v45 }
 0x266   : > { %2465 = vmatpush.bf16.msrb.mxu2 %v3519_v5  ;;  %v746_v18 = vadd.f32 %v6199_v46, %v5142_v22  ;;  %v5602_v27 = vmul.f32 %v1313_v36, %v743_v49 }
 0x268   : > { %v1377_v47 = vpop.f32.mrf.mxu2  ;;  %v1442_v2 = vpop.f32.mrf.mxu3  ;;  %6203 = vst [vmem:[#allocation28_spill] sm:$0xff] %v5602_v27  ;;  %v6214_v27 = vld [vmem:[#allocation112_spill] sm:$0xff] }
 0x269   : > { %v1378_v5 = vadd.f32 %v1377_v47, %v5167_v30  ;;  %v1443_v14 = vadd.f32 %v1442_v2, %v5170_v50  ;;  %v1250_v39 = vpop.f32.mrf.mxu0  ;;  %v1315_v32 = vpop.f32.mrf.mxu1  ;;  %v3511_v47 = vld [vmem:[%s5921_s5 + $0x140] sm:$0xff]  ;;  %v5600_v2 = vmul.f32 %v1248_v7, %v678_v11  ;;  %v6207_v11 = vld [vmem:[#allocation73_spill] sm:$0xff] }
 0x26a   : > { %v1251_v3 = vadd.f32 %v1250_v39, %v5155_v35  ;;  %v1316_v25 = vadd.f32 %v1315_v32, %v5158_v17  ;;  %2416 = vmatpush.bf16.msrb.mxu1 %v3511_v47  ;;  %v876_v49 = vadd.f32 %v6207_v11, %v5152_v48  ;;  %v6211_v47 = vld [vmem:[#allocation109_spill] sm:$0xff]  ;;  %v6213_v32 = vld [vmem:[#allocation114_spill] sm:$0xff] }
 0x26b   : > { %v5593_v61 = vmul.f32 %v1378_v5, %v808_v24  ;;  %v5595_v33 = vmul.f32 %v1443_v14, %v873_v28  ;;  %6202 = vst [vmem:[#allocation27_spill] sm:$0xff] %v5600_v2  ;;  %v6206_v14 = vld [vmem:[#allocation72_spill] sm:$0xff]  ;;  %v6217_v11 = vld [vmem:[#allocation110_spill] sm:$0xff] }
 0x26c   : > { %v5604_v20 = vmul.f32 %v1251_v3, %v681_v19  ;;  %v5606_v12 = vmul.f32 %v1316_v25, %v746_v18  ;;  %v811_v39 = vadd.f32 %v6206_v14, %v5149_v44  ;;  %v6210_v3 = vld [vmem:[#allocation113_spill] sm:$0xff]  ;;  %v6215_v14 = vpack.c.bf16 %v6213_v32, %v6214_v27  ;;  %v6223_v27 = vld [vmem:[#allocation75_spill] sm:$0xff] }
 0x26d   : > { %6200 = vst [vmem:[#allocation9_spill] sm:$0xff] %v5593_v61  ;;  %v6212_v24 = vpack.c.bf16 %v6210_v3, %v6211_v47  ;;  %v749_v32 = vadd.f32 %v6223_v27, %v5142_v22  ;;  %v6226_v27 = vld [vmem:[#allocation78_spill] sm:$0xff] }
 0x26e   : > { %6201 = vst [vmem:[#allocation26_spill] sm:$0xff] %v5595_v33 }
 0x26f   : > { %6204 = vst [vmem:[#allocation29_spill] sm:$0xff] %v5604_v20 }
 0x270   : > { %6205 = vst [vmem:[#allocation30_spill] sm:$0xff] %v5606_v12  ;;  %v1380_v28 = vpop.f32.mrf.mxu2  ;;  %v1445_v5 = vpop.f32.mrf.mxu3  ;;  %v6216_v12 = vld [vmem:[#allocation115_spill] sm:$0xff] }
 0x271   : > { %v1381_v7 = vadd.f32 %v1380_v28, %v5167_v30  ;;  %v1446_v25 = vadd.f32 %v1445_v5, %v5170_v50  ;;  %v1253_v18 = vpop.f32.mrf.mxu0  ;;  %v1318_v36 = vpop.f32.mrf.mxu1  ;;  %v6218_v2 = vpack.c.bf16 %v6216_v12, %v6217_v11  ;;  %v6219_v28 = vld [vmem:[#allocation116_spill] sm:$0xff]  ;;  %v6220_v5 = vld [vmem:[#allocation111_spill] sm:$0xff] }
 0x272   : > { %v6221_v20 = vpack.c.bf16 %v6219_v28, %v6220_v5  ;;  %v1319_v12 = vadd.f32 %v1318_v36, %v5158_v17 }
 0x273   : > { %v5618_v19 = vmul.f32 %v1381_v7, %v811_v39  ;;  %v5620_v46 = vmul.f32 %v1446_v25, %v876_v49  ;;  %v1254_v25 = vadd.f32 %v1253_v18, %v5155_v35  ;;  %v687_v39 = vadd.f32 %v6226_v27, %v5139_v45  ;;  %v6227_v18 = vld [vmem:[#allocation79_spill] sm:$0xff] }
 0x274   : > { %2202 = vmatmul.bf16.gmra.mxu0 %v6212_v24  ;;  %2251 = vmatmul.bf16.gmra.mxu1 %v6215_v14  ;;  %v6222_v24 = vld [vmem:[#allocation74_spill] sm:$0xff]  ;;  %v6225_v14 = vld [vmem:[#allocation77_spill] sm:$0xff]  ;;  %v752_v36 = vadd.f32 %v6227_v18, %v5142_v22 }
 0x275   : > { %6208 = vst [vmem:[#allocation31_spill] sm:$0xff] %v5618_v19  ;;  %2300 = vmatmul.bf16.gmra.mxu2 %v6218_v2  ;;  %2349 = vmatmul.bf16.gmra.mxu3 %v6221_v20  ;;  %v684_v7 = vadd.f32 %v6222_v24, %v5139_v45  ;;  %v6224_v20 = vld [vmem:[#allocation76_spill] sm:$0xff]  ;;  %v879_v11 = vadd.f32 %v6225_v14, %v5152_v48 }
 0x276   : > { %6209 = vst [vmem:[#allocation91_spill] sm:$0xff] %v5620_v46  ;;  %v814_v47 = vadd.f32 %v6224_v20, %v5149_v44 }
 0x277   : > { %v5660_v14 = vmul.f32 %v1254_v25, %v684_v7  ;;  %v6231_v7 = vld [vmem:[#allocation81_spill] sm:$0xff] }
 0x278   : > { %v1383_v2 = vpop.f32.mrf.mxu2  ;;  %v1448_v3 = vpop.f32.mrf.mxu3  ;;  %v882_v25 = vadd.f32 %v6231_v7, %v5152_v48  ;;  %v6237_v7 = vld [vmem:[#allocation4_spill] sm:$0xff] }
 0x279   : > { %v1384_v28 = vadd.f32 %v1383_v2, %v5167_v30  ;;  %v1449_v5 = vadd.f32 %v1448_v3, %v5170_v50  ;;  %v1256_v24 = vpop.f32.mrf.mxu0  ;;  %v1321_v49 = vpop.f32.mrf.mxu1  ;;  %v5662_v2 = vmul.f32 %v1319_v12, %v749_v32 }
 0x27a   : > { %v1257_v33 = vadd.f32 %v1256_v24, %v5155_v35  ;;  %v1322_v46 = vadd.f32 %v1321_v49, %v5158_v17 }
 0x27b   : > { %v5656_v20 = vmul.f32 %v1384_v28, %v814_v47  ;;  %v5658_v61 = vmul.f32 %v1449_v5, %v879_v11  ;;  %v6230_v47 = vld [vmem:[#allocation80_spill] sm:$0xff]  ;;  %v6234_v5 = vpack.c.bf16 %v5115_v60, %v5104_v63  ;;  %v6242_v63 = vld [vmem:[#allocation82_spill] sm:$0xff] }
 0x27c   : > { %v5664_v3 = vmul.f32 %v1257_v33, %v687_v39  ;;  %v5666_v19 = vmul.f32 %v1322_v46, %v752_v36  ;;  %v817_v11 = vadd.f32 %v6230_v47, %v5149_v44  ;;  %v6235_v36 = vpack.c.bf16 %v5117_v37, %v5113_v15  ;;  %v6236_v47 = vld [vmem:[#allocation18_spill] sm:$0xff]  ;;  %v6243_v15 = vld [vmem:[#allocation83_spill] sm:$0xff] }
 0x27d   : > { %6228 = vst [vmem:[#allocation92_spill] sm:$0xff] %v5656_v20  ;;  %v6238_v24 = vpack.c.bf16 %v6236_v47, %v6237_v7  ;;  %v690_v60 = vadd.f32 %v6242_v63, %v5139_v45  ;;  %v755_v37 = vadd.f32 %v6243_v15, %v5142_v22  ;;  %v6245_v47 = vld [vmem:[#allocation85_spill] sm:$0xff]  ;;  %v6246_v15 = vld [vmem:[#allocation86_spill] sm:$0xff] }
 0x27e   : > { %6229 = vst [vmem:[#allocation6_spill] sm:$0xff] %v5658_v61  ;;  %v885_v7 = vadd.f32 %v6245_v47, %v5152_v48 }
 0x280   : > { %v1386_v18 = vpop.f32.mrf.mxu2  ;;  %v1451_v49 = vpop.f32.mrf.mxu3 }
 0x281   : > { %v1387_v32 = vadd.f32 %v1386_v18, %v5167_v30  ;;  %v1452_v33 = vadd.f32 %v1451_v49, %v5170_v50  ;;  %v1259_v46 = vpop.f32.mrf.mxu0  ;;  %v1324_v39 = vpop.f32.mrf.mxu1  ;;  %v6239_v18 = vld [vmem:[#allocation19_spill] sm:$0xff]  ;;  %v6240_v49 = vld [vmem:[#allocation5_spill] sm:$0xff] }
 0x282   : > { %v6241_v27 = vpack.c.bf16 %v6239_v18, %v6240_v49 }
 0x283   : > { %v5678_v12 = vmul.f32 %v1387_v32, %v817_v11  ;;  %v5680_v28 = vmul.f32 %v1452_v33, %v882_v25  ;;  %v1260_v32 = vadd.f32 %v1259_v46, %v5155_v35  ;;  %v693_v11 = vadd.f32 %v6246_v15, %v5139_v45  ;;  %v6247_v46 = vld [vmem:[#allocation87_spill] sm:$0xff] }
 0x284   : > { %2207 = vmatmul.bf16.gmra.mxu0 %v6234_v5  ;;  %2256 = vmatmul.bf16.gmra.mxu1 %v6235_v36 }
 0x285   : > { %6232 = vst [vmem:[#allocation7_spill] sm:$0xff] %v5678_v12  ;;  %2305 = vmatmul.bf16.gmra.mxu2 %v6238_v24  ;;  %2354 = vmatmul.bf16.gmra.mxu3 %v6241_v27  ;;  %v1325_v24 = vadd.f32 %v1324_v39, %v5158_v17  ;;  %v6244_v27 = vld [vmem:[#allocation84_spill] sm:$0xff]  ;;  %v758_v39 = vadd.f32 %v6247_v46, %v5142_v22 }
 0x286   : > { %6233 = vst [vmem:[#allocation32_spill] sm:$0xff] %v5680_v28  ;;  %v820_v36 = vadd.f32 %v6244_v27, %v5149_v44  ;;  %v5720_v47 = vmul.f32 %v1260_v32, %v690_v60  ;;  %v6249_v60 = vld [vmem:[#allocation89_spill] sm:$0xff] }
 0x287   : > { %v888_v32 = vadd.f32 %v6249_v60, %v5152_v48  ;;  %v6252_v48 = vld [vmem:[#allocation20_spill] sm:$0xff] }
 0x288   : > { %v1389_v33 = vpop.f32.mrf.mxu2  ;;  %v1454_v5 = vpop.f32.mrf.mxu3 }
 0x289   : > { %v1390_v18 = vadd.f32 %v1389_v33, %v5167_v30  ;;  %v1455_v49 = vadd.f32 %v1454_v5, %v5170_v50  ;;  %v1262_v63 = vpop.f32.mrf.mxu0  ;;  %v1327_v25 = vpop.f32.mrf.mxu1  ;;  %v5722_v33 = vmul.f32 %v1325_v24, %v755_v37 }
 0x28a   : > { %v1263_v61 = vadd.f32 %v1262_v63, %v5155_v35  ;;  %v1328_v28 = vadd.f32 %v1327_v25, %v5158_v17  ;;  %v6248_v25 = vld [vmem:[#allocation88_spill] sm:$0xff]  ;;  %v6255_v63 = vld [vmem:[#allocation21_spill] sm:$0xff] }
 0x28b   : > { %v5716_v27 = vmul.f32 %v1390_v18, %v820_v36  ;;  %v5718_v20 = vmul.f32 %v1455_v49, %v885_v7  ;;  %v823_v36 = vadd.f32 %v6248_v25, %v5149_v44  ;;  %v6250_v49 = vpack.c.bf16 %v5226_v42, %v5222_v21 }
 0x28c   : > { %v5724_v5 = vmul.f32 %v1263_v61, %v693_v11  ;;  %v5726_v12 = vmul.f32 %v1328_v28, %v758_v39  ;;  %v6251_v44 = vpack.c.bf16 %v5228_v56, %v5224_v43 }
 0x28e   : > { %v1648_v45 = vpack.c.bf16 %v5724_v5, %v5720_v47  ;;  %v1649_v22 = vpack.c.bf16 %v5726_v12, %v5722_v33 }
 0x290   : > { %v1392_v35 = vpop.f32.mrf.mxu2  ;;  %v1457_v17 = vpop.f32.mrf.mxu3 }
 0x291   : > { %v1393_v37 = vadd.f32 %v1392_v35, %v5167_v30  ;;  %v1458_v61 = vadd.f32 %v1457_v17, %v5170_v50  ;;  %v2173_v28 = vpop.f32.mrf.mxu0  ;;  %v2222_v11 = vpop.f32.mrf.mxu1  ;;  %v6253_v30 = vpack.c.bf16 %v5244_v54, %v6252_v48  ;;  %v6254_v50 = vld [vmem:[#allocation22_spill] sm:$0xff]  ;;  %v6260_v48 = vld [vmem:[#allocation3_spill] sm:$0xff] }
 0x292   : > { %v2223_v24 = vadd.f32 %v2222_v11, %v2173_v28  ;;  %v6256_v15 = vpack.c.bf16 %v6254_v50, %v6255_v63  ;;  %v6257_v11 = vld [vmem:[#allocation2_spill] sm:$0xff]  ;;  %v6263_v50 = vld [vmem:[#allocation23_spill] sm:$0xff] }
 0x293   : > { %v5738_v7 = vmul.f32 %v1393_v37, %v823_v36  ;;  %v5740_v18 = vmul.f32 %v1458_v61, %v888_v32 }
 0x294   : > { %2368 = vmatmul.bf16.vlgmr.msrb.gmra.mxu0 %v6250_v49  ;;  %2417 = vmatmul.bf16.vlgmr.msrb.gmra.mxu1 %v6251_v44  ;;  %v6258_v49 = vpack.c.bf16 %v5308_v0, %v6257_v11  ;;  %v6259_v44 = vld [vmem:[#allocation24_spill] sm:$0xff] }
 0x295   : > { %2466 = vmatmul.bf16.vlgmr.msrb.gmra.mxu2 %v6253_v30  ;;  %2515 = vmatmul.bf16.vlgmr.msrb.gmra.mxu3 %v6256_v15  ;;  %v1650_v46 = vpack.c.bf16 %v5738_v7, %v5716_v27  ;;  %v1651_v39 = vpack.c.bf16 %v5740_v18, %v5718_v20  ;;  %v6262_v30 = vld [vmem:[#allocation25_spill] sm:$0xff]  ;;  %v6265_v15 = vld [vmem:[#allocation8_spill] sm:$0xff] }
 0x296   : > { %v6264_v63 = vpack.c.bf16 %v6262_v30, %v6263_v50  ;;  %v6270_v30 = vpack.c.bf16 %v5408_v34, %v5379_v51  ;;  %v6271_v50 = vpack.c.bf16 %v5410_v58, %v5381_v23  ;;  %v6272_v23 = vpack.c.bf16 %v5460_v41, %v5456_v62 }
 0x297   : > { %v6273_v34 = vpack.c.bf16 %v5462_v53, %v5458_v26  ;;  %v6274_v58 = vpack.c.bf16 %v5474_v40, %v5449_v55  ;;  %v6277_v40 = vpack.c.bf16 %v5534_v16, %v5530_v6 }
 0x298   : > { %v2271_v21 = vpop.f32.mrf.mxu2  ;;  %v2320_v42 = vpop.f32.mrf.mxu3 }
 0x299   : > { %v2272_v35 = vadd.f32 %v2271_v21, %v2223_v24  ;;  %v2175_v17 = vpop.f32.mrf.mxu0  ;;  %v2224_v43 = vpop.f32.mrf.mxu1  ;;  %v6261_v24 = vpack.c.bf16 %v6259_v44, %v6260_v48  ;;  %v6266_v21 = vld [vmem:[#allocation90_spill] sm:$0xff] }
 0x29a   : > { %v2225_v56 = vadd.f32 %v2224_v43, %v2175_v17 }
 0x29b   : > { %v5758_v25 = vadd.f32 %v2320_v42, %v2272_v35  ;;  %v6267_v42 = vpack.c.bf16 %v6265_v15, %v6266_v21 }
 0x2a0   : > { %v2273_v54 = vpop.f32.mrf.mxu2  ;;  %v2322_v36 = vpop.f32.mrf.mxu3 }
 0x2a1   : > { %v2274_v60 = vadd.f32 %v2273_v54, %v2225_v56  ;;  %v2178_v32 = vpop.f32.mrf.mxu0  ;;  %v2227_v37 = vpop.f32.mrf.mxu1 }
 0x2a2   : > { %v2228_v61 = vadd.f32 %v2227_v37, %v2178_v32 }
 0x2a3   : > { %v5760_v28 = vadd.f32 %v2322_v36, %v2274_v60 }
 0x2a4   : > { %2373 = vmatmul.bf16.gmra.mxu0 %v6258_v49  ;;  %2422 = vmatmul.bf16.gmra.mxu1 %v6261_v24  ;;  %v6268_v24 = vpack.c.bf16 %v5390_v1, %v5386_v10 }
 0x2a5   : > { %2471 = vmatmul.bf16.gmra.mxu2 %v6264_v63  ;;  %2520 = vmatmul.bf16.gmra.mxu3 %v6267_v42 }
 0x2a8   : > { %v2276_v35 = vpop.f32.mrf.mxu2  ;;  %v2325_v17 = vpop.f32.mrf.mxu3 }
 0x2a9   : > { %v2277_v43 = vadd.f32 %v2276_v35, %v2228_v61  ;;  %v2180_v56 = vpop.f32.mrf.mxu0  ;;  %v2229_v54 = vpop.f32.mrf.mxu1  ;;  %v6269_v61 = vpack.c.bf16 %v5392_v52, %v5388_v29 }
 0x2aa   : > { %v2230_v36 = vadd.f32 %v2229_v54, %v2180_v56 }
 0x2ab   : > { %v5774_v0 = vadd.f32 %v2325_v17, %v2277_v43 }
 0x2b0   : > { %v2278_v60 = vpop.f32.mrf.mxu2  ;;  %v2327_v32 = vpop.f32.mrf.mxu3 }
 0x2b1   : > { %v2279_v37 = vadd.f32 %v2278_v60, %v2230_v36  ;;  %v2183_v11 = vpop.f32.mrf.mxu0  ;;  %v2232_v49 = vpop.f32.mrf.mxu1  ;;  %v6275_v36 = vpack.c.bf16 %v5476_v13, %v5451_v8  ;;  %v6276_v8 = vpack.c.bf16 %v5532_v38, %v5528_v57  ;;  %v6278_v13 = vpack.c.bf16 %v5546_v9, %v5521_v4  ;;  %v6280_v9 = vld [vmem:[#allocation29_spill] sm:$0xff] }
 0x2b2   : > { %v2233_v44 = vadd.f32 %v2232_v49, %v2183_v11 }
 0x2b3   : > { %v5776_v48 = vadd.f32 %v2327_v32, %v2279_v37 }
 0x2b4   : > { %2378 = vmatmul.bf16.gmra.mxu0 %v6268_v24  ;;  %2427 = vmatmul.bf16.gmra.mxu1 %v6269_v61 }
 0x2b5   : > { %2476 = vmatmul.bf16.gmra.mxu2 %v6270_v30  ;;  %2525 = vmatmul.bf16.gmra.mxu3 %v6271_v50  ;;  %v6279_v50 = vpack.c.bf16 %v5548_v59, %v5523_v31  ;;  %v6283_v59 = vld [vmem:[#allocation30_spill] sm:$0xff] }
 0x2b8   : > { %v2281_v63 = vpop.f32.mrf.mxu2  ;;  %v2330_v15 = vpop.f32.mrf.mxu3 }
 0x2b9   : > { %v2282_v21 = vadd.f32 %v2281_v63, %v2233_v44  ;;  %v2185_v42 = vpop.f32.mrf.mxu0  ;;  %v2234_v35 = vpop.f32.mrf.mxu1 }
 0x2ba   : > { %v2235_v17 = vadd.f32 %v2234_v35, %v2185_v42 }
 0x2bb   : > { %v5790_v10 = vadd.f32 %v2330_v15, %v2282_v21 }
 0x2c0   : > { %v2283_v1 = vpop.f32.mrf.mxu2  ;;  %v2332_v43 = vpop.f32.mrf.mxu3 }
 0x2c1   : > { %v2284_v29 = vadd.f32 %v2283_v1, %v2235_v17  ;;  %v2188_v52 = vpop.f32.mrf.mxu0  ;;  %v2237_v56 = vpop.f32.mrf.mxu1 }
 0x2c2   : > { %v2238_v54 = vadd.f32 %v2237_v56, %v2188_v52  ;;  %v6281_v52 = vld [vmem:[#allocation27_spill] sm:$0xff]  ;;  %v6284_v56 = vld [vmem:[#allocation28_spill] sm:$0xff] }
 0x2c3   : > { %v5792_v51 = vadd.f32 %v2332_v43, %v2284_v29  ;;  %v6282_v31 = vpack.c.bf16 %v6280_v9, %v6281_v52 }
 0x2c4   : > { %2383 = vmatmul.bf16.gmra.mxu0 %v6272_v23  ;;  %2432 = vmatmul.bf16.gmra.mxu1 %v6273_v34  ;;  %v6286_v23 = vld [vmem:[#allocation31_spill] sm:$0xff]  ;;  %v6287_v34 = vld [vmem:[#allocation9_spill] sm:$0xff] }
 0x2c5   : > { %2481 = vmatmul.bf16.gmra.mxu2 %v6274_v58  ;;  %2530 = vmatmul.bf16.gmra.mxu3 %v6275_v36  ;;  %v6288_v58 = vpack.c.bf16 %v6286_v23, %v6287_v34  ;;  %v6289_v36 = vld [vmem:[#allocation91_spill] sm:$0xff] }
 0x2c8   : > { %v2286_v60 = vpop.f32.mrf.mxu2  ;;  %v2335_v32 = vpop.f32.mrf.mxu3 }
 0x2c9   : > { %v2287_v37 = vadd.f32 %v2286_v60, %v2238_v54  ;;  %v2190_v11 = vpop.f32.mrf.mxu0  ;;  %v2239_v49 = vpop.f32.mrf.mxu1  ;;  %v6285_v54 = vpack.c.bf16 %v6283_v59, %v6284_v56  ;;  %v6290_v60 = vld [vmem:[#allocation26_spill] sm:$0xff] }
 0x2ca   : > { %v2240_v44 = vadd.f32 %v2239_v49, %v2190_v11 }
 0x2cb   : > { %v5806_v62 = vadd.f32 %v2335_v32, %v2287_v37  ;;  %v6291_v32 = vpack.c.bf16 %v6289_v36, %v6290_v60 }
 0x2d0   : > { %v2288_v41 = vpop.f32.mrf.mxu2  ;;  %v2337_v24 = vpop.f32.mrf.mxu3 }
 0x2d1   : > { %v2289_v53 = vadd.f32 %v2288_v41, %v2240_v44  ;;  %v2193_v26 = vpop.f32.mrf.mxu0  ;;  %v2242_v61 = vpop.f32.mrf.mxu1 }
 0x2d2   : > { %v2243_v30 = vadd.f32 %v2242_v61, %v2193_v26 }
 0x2d3   : > { %v5808_v55 = vadd.f32 %v2337_v24, %v2289_v53 }
 0x2d4   : > { %2388 = vmatmul.bf16.gmra.mxu0 %v6276_v8  ;;  %2437 = vmatmul.bf16.gmra.mxu1 %v6277_v40 }
 0x2d5   : > { %2486 = vmatmul.bf16.gmra.mxu2 %v6278_v13  ;;  %2535 = vmatmul.bf16.gmra.mxu3 %v6279_v50 }
 0x2d8   : > { %v2291_v63 = vpop.f32.mrf.mxu2  ;;  %v2340_v15 = vpop.f32.mrf.mxu3 }
 0x2d9   : > { %v2292_v21 = vadd.f32 %v2291_v63, %v2243_v30  ;;  %v2195_v42 = vpop.f32.mrf.mxu0  ;;  %v2244_v35 = vpop.f32.mrf.mxu1  ;;  %v6292_v63 = vpack.c.bf16 %v5664_v3, %v5660_v14 }
 0x2da   : > { %v2245_v17 = vadd.f32 %v2244_v35, %v2195_v42  ;;  %v6295_v42 = vld [vmem:[#allocation92_spill] sm:$0xff] }
 0x2db   : > { %v5822_v57 = vadd.f32 %v2340_v15, %v2292_v21  ;;  %v6293_v15 = vpack.c.bf16 %v5666_v19, %v5662_v2  ;;  %v6294_v21 = vld [vmem:[#allocation7_spill] sm:$0xff] }
 0x2dc   : > { %v6296_v35 = vpack.c.bf16 %v6294_v21, %v6295_v42 }
 0x2e0   : > { %v2293_v38 = vpop.f32.mrf.mxu2  ;;  %v2342_v1 = vpop.f32.mrf.mxu3 }
 0x2e1   : > { %v2294_v16 = vadd.f32 %v2293_v38, %v2245_v17  ;;  %v2198_v6 = vpop.f32.mrf.mxu0  ;;  %v2247_v43 = vpop.f32.mrf.mxu1  ;;  %v6297_v17 = vld [vmem:[#allocation32_spill] sm:$0xff]  ;;  %v6298_v38 = vld [vmem:[#allocation6_spill] sm:$0xff] }
 0x2e2   : > { %v2248_v29 = vadd.f32 %v2247_v43, %v2198_v6 }
 0x2e3   : > { %v5824_v4 = vadd.f32 %v2342_v1, %v2294_v16  ;;  %v6299_v1 = vpack.c.bf16 %v6297_v17, %v6298_v38 }
 0x2e4   : > { %2393 = vmatmul.bf16.gmra.mxu0 %v6282_v31  ;;  %2442 = vmatmul.bf16.gmra.mxu1 %v6285_v54 }
 0x2e5   : > { %2491 = vmatmul.bf16.gmra.mxu2 %v6288_v58  ;;  %2540 = vmatmul.bf16.gmra.mxu3 %v6291_v32 }
 0x2e8   : > { %v2296_v37 = vpop.f32.mrf.mxu2  ;;  %v2345_v11 = vpop.f32.mrf.mxu3 }
 0x2e9   : > { %v2297_v49 = vadd.f32 %v2296_v37, %v2248_v29  ;;  %v2200_v44 = vpop.f32.mrf.mxu0  ;;  %v2249_v41 = vpop.f32.mrf.mxu1 }
 0x2ea   : > { %v2250_v24 = vadd.f32 %v2249_v41, %v2200_v44 }
 0x2eb   : > { %v5838_v53 = vadd.f32 %v2345_v11, %v2297_v49 }
 0x2f0   : > { %v2298_v26 = vpop.f32.mrf.mxu2  ;;  %v2347_v61 = vpop.f32.mrf.mxu3 }
 0x2f1   : > { %v2299_v30 = vadd.f32 %v2298_v26, %v2250_v24  ;;  %v2203_v8 = vpop.f32.mrf.mxu0  ;;  %v2252_v40 = vpop.f32.mrf.mxu1 }
 0x2f2   : > { %v2253_v13 = vadd.f32 %v2252_v40, %v2203_v8 }
 0x2f3   : > { %v5840_v50 = vadd.f32 %v2347_v61, %v2299_v30 }
 0x2f4   : > { %2398 = vmatmul.bf16.gmra.mxu0 %v6292_v63  ;;  %2447 = vmatmul.bf16.gmra.mxu1 %v6293_v15 }
 0x2f5   : > { %2496 = vmatmul.bf16.gmra.mxu2 %v6296_v35  ;;  %2545 = vmatmul.bf16.gmra.mxu3 %v6299_v1 }
 0x2f8   : > { %v2301_v16 = vpop.f32.mrf.mxu2  ;;  %v2350_v6 = vpop.f32.mrf.mxu3 }
 0x2f9   : > { %v2302_v43 = vadd.f32 %v2301_v16, %v2253_v13  ;;  %v2205_v29 = vpop.f32.mrf.mxu0  ;;  %v2254_v9 = vpop.f32.mrf.mxu1 }
 0x2fa   : > { %v2255_v52 = vadd.f32 %v2254_v9, %v2205_v29 }
 0x2fb   : > { %v5854_v14 = vadd.f32 %v2350_v6, %v2302_v43 }
 0x300   : > { %v2303_v3 = vpop.f32.mrf.mxu2  ;;  %v2352_v31 = vpop.f32.mrf.mxu3 }
 0x301   : > { %v2304_v19 = vadd.f32 %v2303_v3, %v2255_v52  ;;  %v2208_v2 = vpop.f32.mrf.mxu0  ;;  %v2257_v59 = vpop.f32.mrf.mxu1 }
 0x302   : > { %v2258_v56 = vadd.f32 %v2257_v59, %v2208_v2 }
 0x303   : > { %v5856_v54 = vadd.f32 %v2352_v31, %v2304_v19 }
 0x304   : > { %2403 = vmatmul.bf16.gmra.mxu0 %v1648_v45  ;;  %2452 = vmatmul.bf16.gmra.mxu1 %v1649_v22 }
 0x305   : > { %2501 = vmatmul.bf16.gmra.mxu2 %v1650_v46  ;;  %2550 = vmatmul.bf16.gmra.mxu3 %v1651_v39 }
 0x308   : > { %v2306_v23 = vpop.f32.mrf.mxu2  ;;  %v2355_v34 = vpop.f32.mrf.mxu3 }
 0x309   : > { %v2307_v58 = vadd.f32 %v2306_v23, %v2258_v56  ;;  %v2210_v36 = vpop.f32.mrf.mxu0  ;;  %v2259_v60 = vpop.f32.mrf.mxu1 }
 0x30a   : > { %v2260_v32 = vadd.f32 %v2259_v60, %v2210_v36 }
 0x30b   : > { %v5870_v47 = vadd.f32 %v2355_v34, %v2307_v58 }
 0x310   : > { %v2308_v5 = vpop.f32.mrf.mxu2  ;;  %v2357_v45 = vpop.f32.mrf.mxu3 }
 0x311   : > { %v2309_v12 = vadd.f32 %v2308_v5, %v2260_v32  ;;  %v2369_v33 = vpop.f32.mrf.mxu0  ;;  %v2418_v22 = vpop.f32.mrf.mxu1 }
 0x312   : > { %v2370_v27 = vadd.f32 %v2369_v33, %v5758_v25 }
 0x313   : > { %v5872_v37 = vadd.f32 %v2357_v45, %v2309_v12 }
 0x314   : > { %v2419_v7 = vadd.f32 %v2418_v22, %v2370_v27 }
 0x318   : > { %v2467_v20 = vpop.f32.mrf.mxu2  ;;  %v2516_v18 = vpop.f32.mrf.mxu3 }
 0x319   : > { %v2468_v46 = vadd.f32 %v2467_v20, %v2419_v7  ;;  %v2371_v39 = vpop.f32.mrf.mxu0  ;;  %v2420_v11 = vpop.f32.mrf.mxu1 }
 0x31a   : > { %v2372_v44 = vadd.f32 %v2371_v39, %v5760_v28 }
 0x31b   : > { %v2517_v49 = vadd.f32 %v2516_v18, %v2468_v46 }
 0x31c   : > { %v2421_v24 = vadd.f32 %v2420_v11, %v2372_v44 }
 0x31d   : > { %v3453_v41 = vmul.f32 -1.442695, %v2517_v49 }
 0x31f   : > { %3543 = vpow2.f32 %v3453_v41 }
 0x320   : > { %v2469_v26 = vpop.f32.mrf.mxu2  ;;  %v2518_v61 = vpop.f32.mrf.mxu3 }
 0x321   : > { %v2470_v30 = vadd.f32 %v2469_v26, %v2421_v24  ;;  %v2374_v8 = vpop.f32.mrf.mxu0  ;;  %v2423_v40 = vpop.f32.mrf.mxu1 }
 0x322   : > { %v2375_v25 = vadd.f32 %v2374_v8, %v5774_v0 }
 0x323   : > { %v2519_v13 = vadd.f32 %v2518_v61, %v2470_v30 }
 0x324   : > { %v2424_v42 = vadd.f32 %v2423_v40, %v2375_v25 }
 0x325   : > { %v3544_v63 = vpop.eup %3543  ;;  %v3454_v15 = vmul.f32 -1.442695, %v2519_v13 }
 0x326   : > { %v2604_v21 = vadd.f32 1.0, %v3544_v63 }
 0x327   : > { %3545 = vpow2.f32 %v3454_v15 }
 0x328   : > { %3547 = vrcp.f32 %v2604_v21  ;;  %v2472_v35 = vpop.f32.mrf.mxu2  ;;  %v2521_v17 = vpop.f32.mrf.mxu3  ;;  %v2629_v34 = vand.u32 2147483647, %v2604_v21  ;;  %v2631_v58 = vand.u32 2147483648, %v2604_v21  ;;  %vm2625_vm2 = vweird.f32 %v2604_v21 }
 0x329   : > { %v2473_v28 = vadd.f32 %v2472_v35, %v2424_v42  ;;  %v2376_v38 = vpop.f32.mrf.mxu0  ;;  %v2425_v1 = vpop.f32.mrf.mxu1 }
 0x32a   : > { %v2377_v6 = vadd.f32 %v2376_v38, %v5776_v48  ;;  %vm2630_vm4 = vcmp.eq.f32.partialorder %v2629_v34, 8.507059e+37  ;;  %v2632_v33 = vor.u32 1.1754944e-38, %v2631_v58 }
 0x32b   : > { %v2522_v16 = vadd.f32 %v2521_v17, %v2473_v28 }
 0x32c   : > { %v2426_v0 = vadd.f32 %v2425_v1, %v2377_v6 }
 0x32d   : > { %v3546_v43 = vpop.eup %3545  ;;  %v3455_v29 = vmul.f32 -1.442695, %v2522_v16 }
 0x32e   : > { %v3548_v9 = vpop.eup %3547  ;;  %v2605_v52 = vadd.f32 1.0, %v3546_v43 }
 0x32f   : > { %v2621_v3 = vmul.f32 %v3548_v9, %v2604_v21  ;;  %3549 = vpow2.f32 %v3455_v29  ;;  %vm2626_vm1 = vweird.f32 %v3548_v9 }
 0x330   : > { %3551 = vrcp.f32 %v2605_v52  ;;  %v2474_v31 = vpop.f32.mrf.mxu2  ;;  %v2523_v19 = vpop.f32.mrf.mxu3  ;;  %vm2627_vm3 = vmor %vm2625_vm2, %vm2626_vm1  ;;  %v2644_v41 = vand.u32 2147483647, %v2605_v52  ;;  %v2646_v24 = vand.u32 2147483648, %v2605_v52  ;;  %vm2640_vm6 = vweird.f32 %v2605_v52 }
 0x331   : > { %v2622_v2 = vsub.f32 1.0, %v2621_v3  ;;  %v2475_v59 = vadd.f32 %v2474_v31, %v2426_v0  ;;  %v2379_v56 = vpop.f32.mrf.mxu0  ;;  %v2428_v23 = vpop.f32.mrf.mxu1 }
 0x332   : > { %v2380_v60 = vadd.f32 %v2379_v56, %v5790_v10  ;;  %vm2645_vm8 = vcmp.eq.f32.partialorder %v2644_v41, 8.507059e+37  ;;  %v2647_v63 = vor.u32 1.1754944e-38, %v2646_v24 }
 0x333   : > { %v2623_v36 = vmul.f32 %v3548_v9, %v2622_v2  ;;  %v2524_v48 = vadd.f32 %v2523_v19, %v2475_v59 }
 0x334   : > { %v2429_v10 = vadd.f32 %v2428_v23, %v2380_v60 }
 0x335   : > { %v3550_v32 = vpop.eup %3549  ;;  %v2624_v5 = vadd.f32 %v3548_v9, %v2623_v36  ;;  %v3456_v45 = vmul.f32 -1.442695, %v2524_v48 }
 0x336   : > { %v3552_v12 = vpop.eup %3551  ;;  %v2606_v22 = vadd.f32 1.0, %v3550_v32 }
 0x337   : > { %v2628_v27 = vsel %vm2627_vm3, %v3548_v9, %v2624_v5  ;;  %v2636_v7 = vmul.f32 %v3552_v12, %v2605_v52  ;;  %3553 = vpow2.f32 %v3456_v45  ;;  %vm2641_vm5 = vweird.f32 %v3552_v12 }
 0x338   : > { %v2633_v20 = vsel %vm2630_vm4, %v2632_v33, %v2628_v27  ;;  %3555 = vrcp.f32 %v2606_v22  ;;  %v2477_v18 = vpop.f32.mrf.mxu2  ;;  %v2526_v46 = vpop.f32.mrf.mxu3  ;;  %vm2642_vm7 = vmor %vm2640_vm6, %vm2641_vm5  ;;  %v2659_v43 = vand.u32 2147483647, %v2606_v22  ;;  %v2661_v29 = vand.u32 2147483648, %v2606_v22 }
 0x339   : > { %2860 = vst [vmem:[%s5884_s22] sm:$0xff] %v2633_v20  ;;  %v2637_v39 = vsub.f32 1.0, %v2636_v7  ;;  %v2478_v11 = vadd.f32 %v2477_v18, %v2429_v10  ;;  %v2381_v49 = vpop.f32.mrf.mxu0  ;;  %v2430_v44 = vpop.f32.mrf.mxu1  ;;  %vm2655_vm10 = vweird.f32 %v2606_v22 }
 0x33a   : > { %v2382_v30 = vadd.f32 %v2381_v49, %v5792_v51  ;;  %vm2660_vm12 = vcmp.eq.f32.partialorder %v2659_v43, 8.507059e+37  ;;  %v2662_v59 = vor.u32 1.1754944e-38, %v2661_v29 }
 0x33b   : > { %v2638_v26 = vmul.f32 %v3552_v12, %v2637_v39  ;;  %v2527_v61 = vadd.f32 %v2526_v46, %v2478_v11 }
 0x33c   : > { %v2431_v35 = vadd.f32 %v2430_v44, %v2382_v30 }
 0x33d   : > { %v3554_v8 = vpop.eup %3553  ;;  %v2639_v40 = vadd.f32 %v3552_v12, %v2638_v26  ;;  %v3457_v13 = vmul.f32 -1.442695, %v2527_v61 }
 0x33e   : > { %v3556_v25 = vpop.eup %3555  ;;  %v2607_v15 = vadd.f32 1.0, %v3554_v8 }
 0x33f   : > { %v2643_v21 = vsel %vm2642_vm7, %v3552_v12, %v2639_v40  ;;  %v2651_v42 = vmul.f32 %v3556_v25, %v2606_v22  ;;  %3557 = vpow2.f32 %v3457_v13  ;;  %vm2656_vm9 = vweird.f32 %v3556_v25 }
 0x340   : > { %v2648_v17 = vsel %vm2645_vm8, %v2647_v63, %v2643_v21  ;;  %3559 = vrcp.f32 %v2607_v15  ;;  %v2479_v28 = vpop.f32.mrf.mxu2  ;;  %v2528_v38 = vpop.f32.mrf.mxu3  ;;  %vm2657_vm11 = vmor %vm2655_vm10, %vm2656_vm9  ;;  %v2674_v12 = vand.u32 2147483647, %v2607_v15  ;;  %v2676_v33 = vand.u32 2147483648, %v2607_v15 }
 0x341   : > { %2861 = vst [vmem:[%s5884_s22 + $0x8] sm:$0xff] %v2648_v17  ;;  %v2652_v51 = vsub.f32 1.0, %v2651_v42  ;;  %v2480_v1 = vadd.f32 %v2479_v28, %v2431_v35  ;;  %v2384_v16 = vpop.f32.mrf.mxu0  ;;  %v2433_v6 = vpop.f32.mrf.mxu1  ;;  %vm2670_vm14 = vweird.f32 %v2607_v15 }
 0x342   : > { %v2385_v3 = vadd.f32 %v2384_v16, %v5806_v62  ;;  %vm2675_vm0 = vcmp.eq.f32.partialorder %v2674_v12, 8.507059e+37  ;;  %v2677_v39 = vor.u32 1.1754944e-38, %v2676_v33 }
 0x343   : > { %v2653_v9 = vmul.f32 %v3556_v25, %v2652_v51  ;;  %v2529_v52 = vadd.f32 %v2528_v38, %v2480_v1 }
 0x344   : > { %v2434_v58 = vadd.f32 %v2433_v6, %v2385_v3 }
 0x345   : > { %v3558_v0 = vpop.eup %3557  ;;  %v2654_v31 = vadd.f32 %v3556_v25, %v2653_v9  ;;  %v3458_v19 = vmul.f32 -1.442695, %v2529_v52 }
 0x346   : > { %v3560_v2 = vpop.eup %3559  ;;  %v2608_v56 = vadd.f32 1.0, %v3558_v0 }
 0x347   : > { %v2658_v23 = vsel %vm2657_vm11, %v3556_v25, %v2654_v31  ;;  %v2666_v34 = vmul.f32 %v3560_v2, %v2607_v15  ;;  %3561 = vpow2.f32 %v3458_v19  ;;  %vm2671_vm13 = vweird.f32 %v3560_v2 }
 0x348   : > { %v2663_v36 = vsel %vm2660_vm12, %v2662_v59, %v2658_v23  ;;  %3563 = vrcp.f32 %v2608_v56  ;;  %v2482_v48 = vpop.f32.mrf.mxu2  ;;  %v2531_v60 = vpop.f32.mrf.mxu3  ;;  %vm2672_vm15 = vmor %vm2670_vm14, %vm2671_vm13  ;;  %v2689_v13 = vand.u32 2147483647, %v2608_v56  ;;  %v2691_v25 = vand.u32 2147483648, %v2608_v56 }
 0x349   : > { %2862 = vst [vmem:[%s5884_s22 + $0x10] sm:$0xff] %v2663_v36  ;;  %v2667_v62 = vsub.f32 1.0, %v2666_v34  ;;  %v2483_v32 = vadd.f32 %v2482_v48, %v2434_v58  ;;  %v2386_v5 = vpop.f32.mrf.mxu0  ;;  %v2435_v45 = vpop.f32.mrf.mxu1  ;;  %vm2685_vm2 = vweird.f32 %v2608_v56 }
 0x34a   : > { %v2387_v7 = vadd.f32 %v2386_v5, %v5808_v55  ;;  %vm2690_vm4 = vcmp.eq.f32.partialorder %v2689_v13, 8.507059e+37  ;;  %v2692_v38 = vor.u32 1.1754944e-38, %v2691_v25 }
 0x34b   : > { %v2668_v22 = vmul.f32 %v3560_v2, %v2667_v62  ;;  %v2532_v27 = vadd.f32 %v2531_v60, %v2483_v32 }
 0x34c   : > { %v2436_v41 = vadd.f32 %v2435_v45, %v2387_v7 }
 0x34d   : > { %v3562_v10 = vpop.eup %3561  ;;  %v2669_v20 = vadd.f32 %v3560_v2, %v2668_v22  ;;  %v3459_v18 = vmul.f32 -1.442695, %v2532_v27 }
 0x34e   : > { %v3564_v46 = vpop.eup %3563  ;;  %v2609_v11 = vadd.f32 1.0, %v3562_v10 }
 0x34f   : > { %v2673_v49 = vsel %vm2672_vm15, %v3560_v2, %v2669_v20  ;;  %v2681_v44 = vmul.f32 %v3564_v46, %v2608_v56  ;;  %3565 = vpow2.f32 %v3459_v18  ;;  %vm2686_vm1 = vweird.f32 %v3564_v46 }
 0x350   : > { %v2678_v24 = vsel %vm2675_vm0, %v2677_v39, %v2673_v49  ;;  %3567 = vrcp.f32 %v2609_v11  ;;  %v2484_v26 = vpop.f32.mrf.mxu2  ;;  %v2533_v61 = vpop.f32.mrf.mxu3  ;;  %vm2687_vm3 = vmor %vm2685_vm2, %vm2686_vm1  ;;  %v2704_v31 = vand.u32 2147483647, %v2609_v11  ;;  %v2706_v19 = vand.u32 2147483648, %v2609_v11 }
 0x351   : > { %2863 = vst [vmem:[%s5884_s22 + $0x18] sm:$0xff] %v2678_v24  ;;  %v2682_v55 = vsub.f32 1.0, %v2681_v44  ;;  %v2485_v30 = vadd.f32 %v2484_v26, %v2436_v41  ;;  %v2389_v8 = vpop.f32.mrf.mxu0  ;;  %v2438_v40 = vpop.f32.mrf.mxu1  ;;  %vm2700_vm6 = vweird.f32 %v2609_v11 }
 0x352   : > { %v2390_v21 = vadd.f32 %v2389_v8, %v5822_v57  ;;  %vm2705_vm8 = vcmp.eq.f32.partialorder %v2704_v31, 8.507059e+37  ;;  %v2707_v48 = vor.u32 1.1754944e-38, %v2706_v19 }
 0x353   : > { %v2683_v63 = vmul.f32 %v3564_v46, %v2682_v55  ;;  %v2534_v15 = vadd.f32 %v2533_v61, %v2485_v30 }
 0x354   : > { %v2439_v6 = vadd.f32 %v2438_v40, %v2390_v21 }
 0x355   : > { %v3566_v42 = vpop.eup %3565  ;;  %v2684_v35 = vadd.f32 %v3564_v46, %v2683_v63  ;;  %v3460_v17 = vmul.f32 -1.442695, %v2534_v15 }
 0x356   : > { %v3568_v28 = vpop.eup %3567  ;;  %v2610_v51 = vadd.f32 1.0, %v3566_v42 }
 0x357   : > { %v2688_v1 = vsel %vm2687_vm3, %v3564_v46, %v2684_v35  ;;  %v2696_v16 = vmul.f32 %v3568_v28, %v2609_v11  ;;  %3569 = vpow2.f32 %v3460_v17  ;;  %vm2701_vm5 = vweird.f32 %v3568_v28 }
 0x358   : > { %v2693_v43 = vsel %vm2690_vm4, %v2692_v38, %v2688_v1  ;;  %3571 = vrcp.f32 %v2610_v51  ;;  %v2487_v29 = vpop.f32.mrf.mxu2  ;;  %v2536_v9 = vpop.f32.mrf.mxu3  ;;  %vm2702_vm7 = vmor %vm2700_vm6, %vm2701_vm5  ;;  %v2719_v10 = vand.u32 2147483647, %v2610_v51  ;;  %v2721_v20 = vand.u32 2147483648, %v2610_v51 }
 0x359   : > { %2864 = vst [vmem:[%s5884_s22 + $0x20] sm:$0xff] %v2693_v43  ;;  %v2697_v57 = vsub.f32 1.0, %v2696_v16  ;;  %v2488_v52 = vadd.f32 %v2487_v29, %v2439_v6  ;;  %v2391_v3 = vpop.f32.mrf.mxu0  ;;  %v2440_v0 = vpop.f32.mrf.mxu1  ;;  %vm2715_vm10 = vweird.f32 %v2610_v51 }
 0x35a   : > { %v2392_v56 = vadd.f32 %v2391_v3, %v5824_v4  ;;  %vm2720_vm12 = vcmp.eq.f32.partialorder %v2719_v10, 8.507059e+37  ;;  %v2722_v24 = vor.u32 1.1754944e-38, %v2721_v20 }
 0x35b   : > { %v2698_v2 = vmul.f32 %v3568_v28, %v2697_v57  ;;  %v2537_v59 = vadd.f32 %v2536_v9, %v2488_v52 }
 0x35c   : > { %v2441_v5 = vadd.f32 %v2440_v0, %v2392_v56 }
 0x35d   : > { %v3570_v23 = vpop.eup %3569  ;;  %v2699_v34 = vadd.f32 %v3568_v28, %v2698_v2  ;;  %v3461_v58 = vmul.f32 -1.442695, %v2537_v59 }
 0x35e   : > { %v3572_v36 = vpop.eup %3571  ;;  %v2611_v60 = vadd.f32 1.0, %v3570_v23 }
 0x35f   : > { %v2703_v62 = vsel %vm2702_vm7, %v3568_v28, %v2699_v34  ;;  %v2711_v32 = vmul.f32 %v3572_v36, %v2610_v51  ;;  %3573 = vpow2.f32 %v3461_v58  ;;  %vm2716_vm9 = vweird.f32 %v3572_v36 }
 0x360   : > { %v2708_v45 = vsel %vm2705_vm8, %v2707_v48, %v2703_v62  ;;  %3575 = vrcp.f32 %v2611_v60  ;;  %v2489_v12 = vpop.f32.mrf.mxu2  ;;  %v2538_v33 = vpop.f32.mrf.mxu3  ;;  %vm2717_vm11 = vmor %vm2715_vm10, %vm2716_vm9  ;;  %v2734_v21 = vand.u32 2147483647, %v2611_v60  ;;  %v2736_v42 = vand.u32 2147483648, %v2611_v60 }
 0x361   : > { %2865 = vst [vmem:[%s5884_s22 + $0x28] sm:$0xff] %v2708_v45  ;;  %v2712_v4 = vsub.f32 1.0, %v2711_v32  ;;  %v2490_v22 = vadd.f32 %v2489_v12, %v2441_v5  ;;  %v2394_v27 = vpop.f32.mrf.mxu0  ;;  %v2443_v7 = vpop.f32.mrf.mxu1  ;;  %vm2730_vm14 = vweird.f32 %v2611_v60 }
 0x362   : > { %v2395_v39 = vadd.f32 %v2394_v27, %v5838_v53  ;;  %vm2735_vm0 = vcmp.eq.f32.partialorder %v2734_v21, 8.507059e+37  ;;  %v2737_v6 = vor.u32 1.1754944e-38, %v2736_v42 }
 0x363   : > { %v2713_v18 = vmul.f32 %v3572_v36, %v2712_v4  ;;  %v2539_v46 = vadd.f32 %v2538_v33, %v2490_v22 }
 0x364   : > { %v2444_v30 = vadd.f32 %v2443_v7, %v2395_v39 }
 0x365   : > { %v3574_v11 = vpop.eup %3573  ;;  %v2714_v49 = vadd.f32 %v3572_v36, %v2713_v18  ;;  %v3462_v44 = vmul.f32 -1.442695, %v2539_v46 }
 0x366   : > { %v3576_v41 = vpop.eup %3575  ;;  %v2612_v26 = vadd.f32 1.0, %v3574_v11 }
 0x367   : > { %v2718_v61 = vsel %vm2717_vm11, %v3572_v36, %v2714_v49  ;;  %v2726_v55 = vmul.f32 %v3576_v41, %v2611_v60  ;;  %3577 = vpow2.f32 %v3462_v44  ;;  %vm2731_vm13 = vweird.f32 %v3576_v41 }
 0x368   : > { %v2723_v8 = vsel %vm2720_vm12, %v2722_v24, %v2718_v61  ;;  %3579 = vrcp.f32 %v2612_v26  ;;  %v2492_v40 = vpop.f32.mrf.mxu2  ;;  %v2541_v13 = vpop.f32.mrf.mxu3  ;;  %vm2732_vm15 = vmor %vm2730_vm14, %vm2731_vm13  ;;  %v2749_v59 = vand.u32 2147483647, %v2612_v26  ;;  %v2751_v56 = vand.u32 2147483648, %v2612_v26 }
 0x369   : > { %2866 = vst [vmem:[%s5884_s22 + $0x30] sm:$0xff] %v2723_v8  ;;  %v2727_v53 = vsub.f32 1.0, %v2726_v55  ;;  %v2493_v25 = vadd.f32 %v2492_v40, %v2444_v30  ;;  %v2396_v63 = vpop.f32.mrf.mxu0  ;;  %v2445_v15 = vpop.f32.mrf.mxu1  ;;  %vm2745_vm2 = vweird.f32 %v2612_v26 }
 0x36a   : > { %v2397_v28 = vadd.f32 %v2396_v63, %v5840_v50  ;;  %vm2750_vm4 = vcmp.eq.f32.partialorder %v2749_v59, 8.507059e+37  ;;  %v2752_v32 = vor.u32 1.1754944e-38, %v2751_v56 }
 0x36b   : > { %v2728_v35 = vmul.f32 %v3576_v41, %v2727_v53  ;;  %v2542_v17 = vadd.f32 %v2541_v13, %v2493_v25 }
 0x36c   : > { %v2446_v57 = vadd.f32 %v2445_v15, %v2397_v28 }
 0x36d   : > { %v3578_v38 = vpop.eup %3577  ;;  %v2729_v51 = vadd.f32 %v3576_v41, %v2728_v35  ;;  %v3463_v1 = vmul.f32 -1.442695, %v2542_v17 }
 0x36e   : > { %v3580_v16 = vpop.eup %3579  ;;  %v2613_v43 = vadd.f32 1.0, %v3578_v38 }
 0x36f   : > { %v2733_v29 = vsel %vm2732_vm15, %v3576_v41, %v2729_v51  ;;  %v2741_v9 = vmul.f32 %v3580_v16, %v2612_v26  ;;  %3581 = vpow2.f32 %v3463_v1  ;;  %vm2746_vm1 = vweird.f32 %v3580_v16 }
 0x370   : > { %v2738_v52 = vsel %vm2735_vm0, %v2737_v6, %v2733_v29  ;;  %3583 = vrcp.f32 %v2613_v43  ;;  %v2494_v3 = vpop.f32.mrf.mxu2  ;;  %v2543_v0 = vpop.f32.mrf.mxu3  ;;  %vm2747_vm3 = vmor %vm2745_vm2, %vm2746_vm1  ;;  %v2764_v20 = vand.u32 2147483647, %v2613_v43  ;;  %v2766_v18 = vand.u32 2147483648, %v2613_v43 }
 0x371   : > { %2867 = vst [vmem:[%s5884_s22 + $0x38] sm:$0xff] %v2738_v52  ;;  %v2742_v50 = vsub.f32 1.0, %v2741_v9  ;;  %v2495_v31 = vadd.f32 %v2494_v3, %v2446_v57  ;;  %v2399_v19 = vpop.f32.mrf.mxu0  ;;  %v2448_v2 = vpop.f32.mrf.mxu1  ;;  %vm2760_vm6 = vweird.f32 %v2613_v43 }
 0x372   : > { %v2400_v58 = vadd.f32 %v2399_v19, %v5854_v14  ;;  %vm2765_vm8 = vcmp.eq.f32.partialorder %v2764_v20, 8.507059e+37  ;;  %v2767_v61 = vor.u32 1.1754944e-38, %v2766_v18 }
 0x373   : > { %v2743_v23 = vmul.f32 %v3580_v16, %v2742_v50  ;;  %v2544_v34 = vadd.f32 %v2543_v0, %v2495_v31 }
 0x374   : > { %v2449_v33 = vadd.f32 %v2448_v2, %v2400_v58 }
 0x375   : > { %v3582_v36 = vpop.eup %3581  ;;  %v2744_v48 = vadd.f32 %v3580_v16, %v2743_v23  ;;  %v3464_v60 = vmul.f32 -1.442695, %v2544_v34 }
 0x376   : > { %v3584_v62 = vpop.eup %3583  ;;  %v2614_v5 = vadd.f32 1.0, %v3582_v36 }
 0x377   : > { %v2748_v45 = vsel %vm2747_vm3, %v3580_v16, %v2744_v48  ;;  %v2756_v12 = vmul.f32 %v3584_v62, %v2613_v43  ;;  %3585 = vpow2.f32 %v3464_v60  ;;  %vm2761_vm5 = vweird.f32 %v3584_v62 }
 0x378   : > { %v2753_v4 = vsel %vm2750_vm4, %v2752_v32, %v2748_v45  ;;  %3587 = vrcp.f32 %v2614_v5  ;;  %v2497_v22 = vpop.f32.mrf.mxu2  ;;  %v2546_v27 = vpop.f32.mrf.mxu3  ;;  %vm2762_vm7 = vmor %vm2760_vm6, %vm2761_vm5  ;;  %v2779_v21 = vand.u32 2147483647, %v2614_v5  ;;  %v2781_v42 = vand.u32 2147483648, %v2614_v5 }
 0x379   : > { %2868 = vst [vmem:[%s5884_s22 + $0x40] sm:$0xff] %v2753_v4  ;;  %v2757_v14 = vsub.f32 1.0, %v2756_v12  ;;  %v2498_v7 = vadd.f32 %v2497_v22, %v2449_v33  ;;  %v2401_v10 = vpop.f32.mrf.mxu0  ;;  %v2450_v46 = vpop.f32.mrf.mxu1  ;;  %vm2775_vm10 = vweird.f32 %v2614_v5 }
 0x37a   : > { %v2402_v49 = vadd.f32 %v2401_v10, %v5856_v54  ;;  %vm2780_vm12 = vcmp.eq.f32.partialorder %v2779_v21, 8.507059e+37  ;;  %v2782_v43 = vor.u32 1.1754944e-38, %v2781_v42 }
 0x37b   : > { %v2758_v39 = vmul.f32 %v3584_v62, %v2757_v14  ;;  %v2547_v11 = vadd.f32 %v2546_v27, %v2498_v7 }
 0x37c   : > { %v2451_v40 = vadd.f32 %v2450_v46, %v2402_v49 }
 0x37d   : > { %v3586_v44 = vpop.eup %3585  ;;  %v2759_v41 = vadd.f32 %v3584_v62, %v2758_v39  ;;  %v3465_v24 = vmul.f32 -1.442695, %v2547_v11 }
 0x37e   : > { %v3588_v26 = vpop.eup %3587  ;;  %v2615_v55 = vadd.f32 1.0, %v3586_v44 }
 0x37f   : > { %v2763_v30 = vsel %vm2762_vm7, %v3584_v62, %v2759_v41  ;;  %v2771_v8 = vmul.f32 %v3588_v26, %v2614_v5  ;;  %3589 = vpow2.f32 %v3465_v24  ;;  %vm2776_vm9 = vweird.f32 %v3588_v26 }
 0x380   : > { %v2768_v13 = vsel %vm2765_vm8, %v2767_v61, %v2763_v30  ;;  %3591 = vrcp.f32 %v2615_v55  ;;  %v2499_v53 = vpop.f32.mrf.mxu2  ;;  %v2548_v25 = vpop.f32.mrf.mxu3  ;;  %vm2777_vm11 = vmor %vm2775_vm10, %vm2776_vm9  ;;  %v2794_v2 = vand.u32 2147483647, %v2615_v55  ;;  %v2796_v59 = vand.u32 2147483648, %v2615_v55 }
 0x381   : > { %2869 = vst [vmem:[%s5884_s22 + $0x48] sm:$0xff] %v2768_v13  ;;  %v2772_v54 = vsub.f32 1.0, %v2771_v8  ;;  %v2500_v63 = vadd.f32 %v2499_v53, %v2451_v40  ;;  %v2404_v15 = vpop.f32.mrf.mxu0  ;;  %v2453_v38 = vpop.f32.mrf.mxu1  ;;  %vm2790_vm14 = vweird.f32 %v2615_v55 }
 0x382   : > { %v2405_v28 = vadd.f32 %v2404_v15, %v5870_v47  ;;  %vm2795_vm0 = vcmp.eq.f32.partialorder %v2794_v2, 8.507059e+37  ;;  %v2797_v62 = vor.u32 1.1754944e-38, %v2796_v59 }
 0x383   : > { %v2773_v35 = vmul.f32 %v3588_v26, %v2772_v54  ;;  %v2549_v17 = vadd.f32 %v2548_v25, %v2500_v63 }
 0x384   : > { %v2454_v52 = vadd.f32 %v2453_v38, %v2405_v28 }
 0x385   : > { %v3590_v51 = vpop.eup %3589  ;;  %v2774_v1 = vadd.f32 %v3588_v26, %v2773_v35  ;;  %v3466_v16 = vmul.f32 -1.442695, %v2549_v17 }
 0x386   : > { %v3592_v6 = vpop.eup %3591  ;;  %v2616_v29 = vadd.f32 1.0, %v3590_v51 }
 0x387   : > { %v2778_v9 = vsel %vm2777_vm11, %v3588_v26, %v2774_v1  ;;  %v2786_v57 = vmul.f32 %v3592_v6, %v2615_v55  ;;  %3593 = vpow2.f32 %v3466_v16  ;;  %vm2791_vm13 = vweird.f32 %v3592_v6 }
 0x388   : > { %v2783_v3 = vsel %vm2780_vm12, %v2782_v43, %v2778_v9  ;;  %3595 = vrcp.f32 %v2616_v29  ;;  %v2502_v0 = vpop.f32.mrf.mxu2  ;;  %v2551_v50 = vpop.f32.mrf.mxu3  ;;  %vm2792_vm15 = vmor %vm2790_vm14, %vm2791_vm13  ;;  %v2811_v14 = vand.u32 2147483648, %v2616_v29  ;;  %v2809_v20 = vand.u32 2147483647, %v2616_v29 }
 0x389   : > { %2870 = vst [vmem:[%s5884_s22 + $0x50] sm:$0xff] %v2783_v3  ;;  %v2787_v47 = vsub.f32 1.0, %v2786_v57  ;;  %v2503_v31 = vadd.f32 %v2502_v0, %v2454_v52  ;;  %v2406_v19 = vpop.f32.mrf.mxu0  ;;  %v2455_v5 = vpop.f32.mrf.mxu1  ;;  %vm2805_vm2 = vweird.f32 %v2616_v29 }
 0x38a   : > { %v2407_v34 = vadd.f32 %v2406_v19, %v5872_v37  ;;  %v2812_v44 = vor.u32 1.1754944e-38, %v2811_v14  ;;  %vm2810_vm4 = vcmp.eq.f32.partialorder %v2809_v20, 8.507059e+37 }
 0x38b   : > { %v2788_v56 = vmul.f32 %v3592_v6, %v2787_v47  ;;  %v2552_v23 = vadd.f32 %v2551_v50, %v2503_v31 }
 0x38c   : > { %v2456_v33 = vadd.f32 %v2455_v5, %v2407_v34 }
 0x38d   : > { %v3594_v58 = vpop.eup %3593  ;;  %v2789_v36 = vadd.f32 %v3592_v6, %v2788_v56  ;;  %v3467_v48 = vmul.f32 -1.442695, %v2552_v23 }
 0x38e   : > { %v3596_v60 = vpop.eup %3595  ;;  %v2617_v32 = vadd.f32 1.0, %v3594_v58 }
 0x38f   : > { %v2793_v45 = vsel %vm2792_vm15, %v3592_v6, %v2789_v36  ;;  %v2801_v12 = vmul.f32 %v3596_v60, %v2616_v29  ;;  %3597 = vpow2.f32 %v3467_v48  ;;  %vm2806_vm1 = vweird.f32 %v3596_v60 }
 0x390   : > { %v2798_v4 = vsel %vm2795_vm0, %v2797_v62, %v2793_v45  ;;  %3599 = vrcp.f32 %v2617_v32  ;;  %v2504_v22 = vpop.f32.mrf.mxu2  ;;  %v2553_v7 = vpop.f32.mrf.mxu3  ;;  %vm2807_vm3 = vmor %vm2805_vm2, %vm2806_vm1  ;;  %v2826_v30 = vand.u32 2147483648, %v2617_v32  ;;  %v2824_v40 = vand.u32 2147483647, %v2617_v32 }
 0x391   : > { %2871 = vst [vmem:[%s5884_s22 + $0x58] sm:$0xff] %v2798_v4  ;;  %v2802_v37 = vsub.f32 1.0, %v2801_v12  ;;  %v2505_v27 = vadd.f32 %v2504_v22, %v2456_v33  ;;  %vm2820_vm6 = vweird.f32 %v2617_v32 }
 0x392   : > { %v2827_v54 = vor.u32 1.1754944e-38, %v2826_v30  ;;  %vm2825_vm8 = vcmp.eq.f32.partialorder %v2824_v40, 8.507059e+37 }
 0x393   : > { %v2803_v10 = vmul.f32 %v3596_v60, %v2802_v37  ;;  %v2554_v18 = vadd.f32 %v2553_v7, %v2505_v27 }
 0x395   : > { %v3598_v46 = vpop.eup %3597  ;;  %v2804_v39 = vadd.f32 %v3596_v60, %v2803_v10  ;;  %v3468_v11 = vmul.f32 -1.442695, %v2554_v18 }
 0x396   : > { %v3600_v49 = vpop.eup %3599  ;;  %v2618_v41 = vadd.f32 1.0, %v3598_v46 }
 0x397   : > { %v2808_v24 = vsel %vm2807_vm3, %v3596_v60, %v2804_v39  ;;  %v2816_v26 = vmul.f32 %v3600_v49, %v2617_v32  ;;  %3601 = vpow2.f32 %v3468_v11  ;;  %vm2821_vm5 = vweird.f32 %v3600_v49 }
 0x398   : > { %v2813_v61 = vsel %vm2810_vm4, %v2812_v44, %v2808_v24  ;;  %3603 = vrcp.f32 %v2618_v41  ;;  %vm2822_vm7 = vmor %vm2820_vm6, %vm2821_vm5  ;;  %v2841_v17 = vand.u32 2147483648, %v2618_v41  ;;  %v2839_v38 = vand.u32 2147483647, %v2618_v41 }
 0x399   : > { %2872 = vst [vmem:[%s5884_s22 + $0x60] sm:$0xff] %v2813_v61  ;;  %v2817_v55 = vsub.f32 1.0, %v2816_v26  ;;  %vm2835_vm10 = vweird.f32 %v2618_v41 }
 0x39a   : > { %v2842_v16 = vor.u32 1.1754944e-38, %v2841_v17  ;;  %vm2840_vm12 = vcmp.eq.f32.partialorder %v2839_v38, 8.507059e+37 }
 0x39b   : > { %v2818_v8 = vmul.f32 %v3600_v49, %v2817_v55 }
 0x39d   : > { %v3602_v13 = vpop.eup %3601  ;;  %v2819_v53 = vadd.f32 %v3600_v49, %v2818_v8 }
 0x39e   : > { %v3604_v25 = vpop.eup %3603  ;;  %v2619_v63 = vadd.f32 1.0, %v3602_v13 }
 0x39f   : > { %v2823_v15 = vsel %vm2822_vm7, %v3600_v49, %v2819_v53  ;;  %v2831_v21 = vmul.f32 %v3604_v25, %v2618_v41  ;;  %vm2836_vm9 = vweird.f32 %v3604_v25 }
 0x3a0   : > { %v2828_v42 = vsel %vm2825_vm8, %v2827_v54, %v2823_v15  ;;  %3605 = vrcp.f32 %v2619_v63  ;;  %vm2837_vm11 = vmor %vm2835_vm10, %vm2836_vm9  ;;  %v2856_v57 = vand.u32 2147483648, %v2619_v63  ;;  %v2854_v3 = vand.u32 2147483647, %v2619_v63 }
 0x3a1   : > { %2873 = vst [vmem:[%s5884_s22 + $0x68] sm:$0xff] %v2828_v42  ;;  %v2832_v35 = vsub.f32 1.0, %v2831_v21  ;;  %vm2850_vm14 = vweird.f32 %v2619_v63 }
 0x3a2   : > { %v2857_v50 = vor.u32 1.1754944e-38, %v2856_v57  ;;  %vm2855_vm0 = vcmp.eq.f32.partialorder %v2854_v3, 8.507059e+37 }
 0x3a3   : > { %v2833_v28 = vmul.f32 %v3604_v25, %v2832_v35 }
 0x3a5   : > { %v2834_v51 = vadd.f32 %v3604_v25, %v2833_v28 }
 0x3a6   : > { %v3606_v1 = vpop.eup %3605 }
 0x3a7   : > { %v2838_v6 = vsel %vm2837_vm11, %v3604_v25, %v2834_v51  ;;  %v2846_v43 = vmul.f32 %v3606_v1, %v2619_v63  ;;  %vm2851_vm13 = vweird.f32 %v3606_v1 }
 0x3a8   : > { %v2843_v29 = vsel %vm2840_vm12, %v2842_v16, %v2838_v6  ;;  %vm2852_vm15 = vmor %vm2850_vm14, %vm2851_vm13 }
 0x3a9   : > { %2874 = vst [vmem:[%s5884_s22 + $0x70] sm:$0xff] %v2843_v29  ;;  %v2847_v9 = vsub.f32 1.0, %v2846_v43 }
 0x3ab   : > { %v2848_v52 = vmul.f32 %v3606_v1, %v2847_v9 }
 0x3ad   : > { %v2849_v0 = vadd.f32 %v3606_v1, %v2848_v52 }
 0x3af   : > { %v2853_v47 = vsel %vm2852_vm15, %v3606_v1, %v2849_v0 }
 0x3b0   : > { %v2858_v31 = vsel %vm2855_vm0, %v2857_v50, %v2853_v47 }
 0x3b1   : > { %2875 = vst [vmem:[%s5884_s22 + $0x78] sm:$0xff] %v2858_v31 }
 0x3b2 PF: > { %s16_s21 = sadd.s32 1, %s3623_s21  }
 0x3b3   : > { %p13_p4 = scmp.ge.s32.totalorder %s16_s21, 5  }
 0x3b5   :  { %15 = sbr.rel (!%p13_p4) target bundleno = 1 (0x1), region = 74 }

</bundles_post_ra>
